<compile_context>
chip_gen: v5e
topology: v5e:2x2
jax: 0.10.0
libtpu: 0.0.40
codegen_flags: <defaults>
</compile_context>

<pallas_src>
import jax
import jax.numpy as jnp
from jax.experimental import pallas as pl
from jax.experimental.pallas import tpu as pltpu

# ------------------------- small synthetic ViT config -------------------------
PATCH = 16                 # patch size (as in vit_small_patch16_224)
IMG = 32                   # small image -> 2x2 = 4 patches
IN_CH = 3
EMBED = 32                 # feature_dim (ViT-Small would be 384; kept small & synthetic)
DEPTH = 2
HEADS = 4
HEAD_DIM = EMBED // HEADS
MLP_HIDDEN = 4 * EMBED     # 128 -> lane aligned
NUM_GRADES = 3
BATCH = 2

N_PATCH = (IMG // PATCH) ** 2          # 4
N_TOK = N_PATCH + 1                    # 5 (cls + patches)
PATCH_DIM = IN_CH * PATCH * PATCH      # 768 = 6*128 -> lane aligned
ATTN_SCALE = HEAD_DIM ** -0.5


# ------------------------------ in-kernel helpers ------------------------------
def _layernorm(x, g, b, eps):
    mean = jnp.mean(x, axis=-1, keepdims=True)
    var = jnp.mean((x - mean) ** 2, axis=-1, keepdims=True)
    return (x - mean) * jax.lax.rsqrt(var + eps) * g + b


def _erf(x):
    # Abramowitz & Stegun 7.1.26 rational approximation, |error| < 1.5e-7.
    a = jnp.abs(x)
    t = 1.0 / (1.0 + 0.3275911 * a)
    poly = t * (0.254829592
                + t * (-0.284496736
                       + t * (1.421413741
                              + t * (-1.453152027 + t * 1.061405429))))
    e = 1.0 - poly * jnp.exp(-(a * a))
    return jnp.where(x >= 0.0, e, -e)


def _gelu(x):
    # erf-form GELU (PyTorch nn.GELU default).
    return 0.5 * x * (1.0 + _erf(x * 0.7071067811865476))


# ------------------------------ the fused kernel -------------------------------
def _vit_forward_kernel(
    patches_ref,                 # (1, N_TOK, PATCH_DIM)  row 0 is zeros (cls slot)
    patch_w_ref,                 # (PATCH_DIM, E)
    tok_bias_ref,                # (N_TOK, E)  row0 = cls+pos0, rows1.. = patch_b+pos
    ln1_g_ref, ln1_b_ref,        # (DEPTH, 1, E)
    qkv_w_ref, qkv_b_ref,        # (DEPTH*3*HEADS, E, HD), (DEPTH*3*HEADS, 1, HD)
    proj_w_ref, proj_b_ref,      # (DEPTH*HEADS, HD, E), (DEPTH, 1, E)
    ln2_g_ref, ln2_b_ref,        # (DEPTH, 1, E)
    fc1_w_ref, fc1_b_ref,        # (DEPTH, E, MH), (DEPTH, 1, MH)
    fc2_w_ref, fc2_b_ref,        # (DEPTH, MH, E), (DEPTH, 1, E)
    norm_g_ref, norm_b_ref,      # (1, E)
    ci_w_ref, ci_b_ref,          # (1, E), (1, 1)
    gh_g_f_ref, gh_g_c_ref,      # (1, E), (1, 1)   grade-head LN gamma (split)
    gh_bt_f_ref, gh_bt_c_ref,    # (1, E), (1, 1)   grade-head LN beta  (split)
    gh_w_f_ref, gh_w_c_ref,      # (E, G), (1, G)   grade-head Linear weight (split)
    gh_b_ref,                    # (1, G)
    grade_ref, ci_out_ref,       # outputs: (1, 1, G), (1, 1, 1)
):
    f32 = jnp.float32

    # --- patch embedding (Conv2d(3,E,16,stride=16) == per-patch linear) fused
    #     with cls-token + positional embedding (pos_drop == identity at eval) ---
    x = jnp.dot(patches_ref[0], patch_w_ref[...],
                preferred_element_type=f32) + tok_bias_ref[...]          # (N_TOK, E)

    # --- transformer blocks, statically unrolled; everything stays in VMEM ---
    for d in range(DEPTH):
        # attention sub-block: x = x + proj(MHSA(LN1(x)))
        xn = _layernorm(x, ln1_g_ref[d], ln1_b_ref[d], 1e-6)
        attn_out = None
        for h in range(HEADS):
            qi = (d * 3 + 0) * HEADS + h
            ki = (d * 3 + 1) * HEADS + h
            vi = (d * 3 + 2) * HEADS + h
            # scale folded into q (cheaper than scaling the SxS score matrix)
            q = (jnp.dot(xn, qkv_w_ref[qi], preferred_element_type=f32)
                 + qkv_b_ref[qi]) * ATTN_SCALE                           # (N, HD)
            k = jnp.dot(xn, qkv_w_ref[ki], preferred_element_type=f32) + qkv_b_ref[ki]
            v = jnp.dot(xn, qkv_w_ref[vi], preferred_element_type=f32) + qkv_b_ref[vi]
            s = jnp.dot(q, k.T, preferred_element_type=f32)              # (N, N)
            s = s - jnp.max(s, axis=-1, keepdims=True)
            p = jnp.exp(s)
            # approx reciprocal runs on the EUP slot; ~last-ulp deviation only.
            p = p * pl.reciprocal(jnp.sum(p, axis=-1, keepdims=True), approx=True)
            o_h = jnp.dot(p, v, preferred_element_type=f32)              # (N, HD)
            # per-head slice of the output projection, accumulated directly
            contrib = jnp.dot(o_h, proj_w_ref[d * HEADS + h],
                              preferred_element_type=f32)                # (N, E)
            attn_out = contrib if attn_out is None else attn_out + contrib
        x = x + attn_out + proj_b_ref[d]

        # MLP sub-block: x = x + fc2(GELU(fc1(LN2(x))))
        xn = _layernorm(x, ln2_g_ref[d], ln2_b_ref[d], 1e-6)
        h1 = jnp.dot(xn, fc1_w_ref[d], preferred_element_type=f32) + fc1_b_ref[d]
        h1 = _gelu(h1)
        x = x + jnp.dot(h1, fc2_w_ref[d], preferred_element_type=f32) + fc2_b_ref[d]

    # --- final norm + cls-token pooling (timm global_pool='token', head=Identity) ---
    xn = _layernorm(x, norm_g_ref[...], norm_b_ref[...], 1e-6)
    feat = xn[0:1, :]                                                    # (1, E)

    # --- CINumberHead: Dropout(0.4) -> Linear(E, 1)  (dropout identity at eval) ---
    ci = jnp.sum(feat * ci_w_ref[...], axis=-1, keepdims=True) + ci_b_ref[...]   # (1, 1)

    # --- grade head: cat([feat, ci]) -> LayerNorm(E+1) -> Dropout(0.5) -> Linear ---
    # Implemented without materializing the 33-wide concat: LN statistics are
    # computed over the 33 virtual features and the gamma/beta/Linear weights
    # are pre-split into their "feature" and "ci" parts.
    d1 = float(EMBED + 1)
    mean = (jnp.sum(feat, axis=-1, keepdims=True) + ci) / d1             # (1, 1)
    df = feat - mean
    dc = ci - mean
    var = (jnp.sum(df * df, axis=-1, keepdims=True) + dc * dc) / d1
    inv = jax.lax.rsqrt(var + 1e-5)
    yf = df * inv * gh_g_f_ref[...] + gh_bt_f_ref[...]                   # (1, E)
    yc = dc * inv * gh_g_c_ref[...] + gh_bt_c_ref[...]                   # (1, 1)
    grade = (jnp.dot(yf, gh_w_f_ref[...], preferred_element_type=f32)
             + yc * gh_w_c_ref[...] + gh_b_ref[...])                     # (1, G)

    grade_ref[0] = grade
    ci_out_ref[0] = ci


# ------------------------------ parameter handling ------------------------------
def init_params(key):
    """Synthetic parameters laid out like the PyTorch module's state_dict."""
    def nrm(k, shape, scale=0.02):
        return scale * jax.random.normal(k, shape, dtype=jnp.float32)

    keys = iter(jax.random.split(key, 64))
    params = {
        # Conv2d(3, D, 16, stride=16) flattened as (c, ph, pw) x D
        "patch_w": nrm(next(keys), (PATCH_DIM, EMBED)),
        "patch_b": jnp.zeros((EMBED,), jnp.float32),
        "cls_token": nrm(next(keys), (1, EMBED)),
        "pos_embed": nrm(next(keys), (N_TOK, EMBED)),
        "norm_g": jnp.ones((EMBED,), jnp.float32),
        "norm_b": jnp.zeros((EMBED,), jnp.float32),
        # CINumberHead: Linear(D, 1)
        "ci_w": nrm(next(keys), (EMBED, 1)),
        "ci_b": jnp.zeros((1,), jnp.float32),
        # grade head: LayerNorm(D+1) + Linear(D+1, num_grades)
        "gh_ln_g": jnp.ones((EMBED + 1,), jnp.float32),
        "gh_ln_b": jnp.zeros((EMBED + 1,), jnp.float32),
        "gh_w": nrm(next(keys), (EMBED + 1, NUM_GRADES)),
        "gh_b": jnp.zeros((NUM_GRADES,), jnp.float32),
        "blocks": [],
    }
    for _ in range(DEPTH):
        params["blocks"].append({
            "ln1_g": jnp.ones((EMBED,), jnp.float32),
            "ln1_b": jnp.zeros((EMBED,), jnp.float32),
            "qkv_w": nrm(next(keys), (EMBED, 3 * EMBED)),
            "qkv_b": jnp.zeros((3 * EMBED,), jnp.float32),
            "proj_w": nrm(next(keys), (EMBED, EMBED)),
            "proj_b": jnp.zeros((EMBED,), jnp.float32),
            "ln2_g": jnp.ones((EMBED,), jnp.float32),
            "ln2_b": jnp.zeros((EMBED,), jnp.float32),
            "fc1_w": nrm(next(keys), (EMBED, MLP_HIDDEN)),
            "fc1_b": jnp.zeros((MLP_HIDDEN,), jnp.float32),
            "fc2_w": nrm(next(keys), (MLP_HIDDEN, EMBED)),
            "fc2_b": jnp.zeros((EMBED,), jnp.float32),
        })
    return params


def _pack_params(p):
    """Repack PyTorch-style params into the fused-kernel layout: stacked over
    depth, per-(q/k/v, head) weight slabs, 2-D biases, grade head split.
    Constant-folded at compile time when params are jit constants."""
    def stack(name):
        return jnp.stack([blk[name] for blk in p["blocks"]], axis=0)

    ln1_g = stack("ln1_g")[:, None, :]
    ln1_b = stack("ln1_b")[:, None, :]
    ln2_g = stack("ln2_g")[:, None, :]
    ln2_b = stack("ln2_b")[:, None, :]
    proj_b = stack("proj_b")[:, None, :]
    fc1_w = stack("fc1_w")
    fc1_b = stack("fc1_b")[:, None, :]
    fc2_w = stack("fc2_w")
    fc2_b = stack("fc2_b")[:, None, :]

    # qkv: (E, 3E) -> per (q/k/v, head) slabs of (E, HD); split order matches
    # timm's qkv.reshape(B, N, 3, heads, head_dim).
    qkv_w = stack("qkv_w").reshape(DEPTH, EMBED, 3, HEADS, HEAD_DIM)
    qkv_w = qkv_w.transpose(0, 2, 3, 1, 4).reshape(DEPTH * 3 * HEADS, EMBED, HEAD_DIM)
    qkv_b = stack("qkv_b").reshape(DEPTH * 3 * HEADS, 1, HEAD_DIM)

    # proj: rows h*HD:(h+1)*HD act on head h's output.
    proj_w = stack("proj_w").reshape(DEPTH * HEADS, HEAD_DIM, EMBED)

    # cls token + pos embed + patch-embedding bias folded into one additive term
    # (the patch matrix gets a zero row prepended for the cls slot).
    tok_bias = jnp.concatenate(
        [p["cls_token"].reshape(1, EMBED) + p["pos_embed"][0:1],
         p["patch_b"].reshape(1, EMBED) + p["pos_embed"][1:]], axis=0)   # (N_TOK, E)

    return dict(
        patch_w=p["patch_w"],
        tok_bias=tok_bias,
        ln1_g=ln1_g, ln1_b=ln1_b,
        qkv_w=qkv_w, qkv_b=qkv_b,
        proj_w=proj_w, proj_b=proj_b,
        ln2_g=ln2_g, ln2_b=ln2_b,
        fc1_w=fc1_w, fc1_b=fc1_b,
        fc2_w=fc2_w, fc2_b=fc2_b,
        norm_g=p["norm_g"].reshape(1, EMBED),
        norm_b=p["norm_b"].reshape(1, EMBED),
        ci_w=p["ci_w"].reshape(1, EMBED),
        ci_b=p["ci_b"].reshape(1, 1),
        gh_g_f=p["gh_ln_g"][:EMBED].reshape(1, EMBED),
        gh_g_c=p["gh_ln_g"][EMBED:].reshape(1, 1),
        gh_bt_f=p["gh_ln_b"][:EMBED].reshape(1, EMBED),
        gh_bt_c=p["gh_ln_b"][EMBED:].reshape(1, 1),
        gh_w_f=p["gh_w"][:EMBED],
        gh_w_c=p["gh_w"][EMBED:],
        gh_b=p["gh_b"].reshape(1, NUM_GRADES),
    )


def _const_index_map(ndim):
    def im(b):
        return (0,) * ndim
    return im


def _const_spec(a):
    return pl.BlockSpec(a.shape, _const_index_map(a.ndim))


# ----------------------------------- forward ------------------------------------
def vit_multitask_forward(x, params):
    """x: (B, C, H, W) float32 (NCHW, same as the PyTorch module)."""
    B, C, H, W = x.shape
    Hp, Wp = H // PATCH, W // PATCH
    assert C == IN_CH and Hp * Wp == N_PATCH

    # Conv2d(k=16, s=16) == per-patch linear; flatten order (c, ph, pw) matches
    # conv_weight.view(D, -1).  A zero row is prepended so that the cls-token
    # slot falls out of the same matmul inside the kernel.
    patches = (x.reshape(B, C, Hp, PATCH, Wp, PATCH)
               .transpose(0, 2, 4, 1, 3, 5)
               .reshape(B, N_PATCH, PATCH_DIM))
    patches = jnp.pad(patches, ((0, 0), (1, 0), (0, 0)))                 # (B, N_TOK, PD)

    kp = _pack_params(params)
    weights = [
        kp["patch_w"], kp["tok_bias"],
        kp["ln1_g"], kp["ln1_b"], kp["qkv_w"], kp["qkv_b"],
        kp["proj_w"], kp["proj_b"], kp["ln2_g"], kp["ln2_b"],
        kp["fc1_w"], kp["fc1_b"], kp["fc2_w"], kp["fc2_b"],
        kp["norm_g"], kp["norm_b"], kp["ci_w"], kp["ci_b"],
        kp["gh_g_f"], kp["gh_g_c"], kp["gh_bt_f"], kp["gh_bt_c"],
        kp["gh_w_f"], kp["gh_w_c"], kp["gh_b"],
    ]

    in_specs = [pl.BlockSpec((1, N_TOK, PATCH_DIM), lambda b: (b, 0, 0))]
    in_specs += [_const_spec(a) for a in weights]      # weights DMA'd once

    grade3, ci3 = pl.pallas_call(
        _vit_forward_kernel,
        out_shape=(
            jax.ShapeDtypeStruct((B, 1, NUM_GRADES), jnp.float32),
            jax.ShapeDtypeStruct((B, 1, 1), jnp.float32),
        ),
        grid=(B,),
        in_specs=in_specs,
        out_specs=(
            pl.BlockSpec((1, 1, NUM_GRADES), lambda b: (b, 0, 0)),
            pl.BlockSpec((1, 1, 1), lambda b: (b, 0, 0)),
        ),
        compiler_params=pltpu.CompilerParams(
            dimension_semantics=("parallel",)),        # batch -> both TCs on v7x
    )(patches, *weights)

    return {"grade": grade3.reshape(B, NUM_GRADES),
            "cinumber": ci3.reshape(B, 1)}


# ------------------------------------- main --------------------------------------
if __name__ == "__main__":
    key = jax.random.PRNGKey(0)
    k_params, k_input = jax.random.split(key)
    params = init_params(k_params)
    x = jax.random.normal(k_input, (BATCH, IN_CH, IMG, IMG), dtype=jnp.float32)

    fwd = jax.jit(lambda inp: vit_multitask_forward(inp, params))
    out = fwd(x)
    jax.block_until_ready(out)

    assert out["grade"].shape == (BATCH, NUM_GRADES)
    assert out["cinumber"].shape == (BATCH, 1)
    assert bool(jnp.all(jnp.isfinite(out["grade"])))
    assert bool(jnp.all(jnp.isfinite(out["cinumber"])))
    print("KERNEL_OK")
</pallas_src>

<mosaic_0001>
module attributes {stable_mosaic.version = 11 : i64} {
  func.func @_vit_forward_kernel(%arg0: i32, %arg1: memref<1x5x768xf32, #tpu.memory_space<vmem>>, %arg2: memref<768x32xf32, #tpu.memory_space<vmem>>, %arg3: memref<5x32xf32, #tpu.memory_space<vmem>>, %arg4: memref<2x1x32xf32, #tpu.memory_space<vmem>>, %arg5: memref<2x1x32xf32, #tpu.memory_space<vmem>>, %arg6: memref<24x32x8xf32, #tpu.memory_space<vmem>>, %arg7: memref<24x1x8xf32, #tpu.memory_space<vmem>>, %arg8: memref<8x8x32xf32, #tpu.memory_space<vmem>>, %arg9: memref<2x1x32xf32, #tpu.memory_space<vmem>>, %arg10: memref<2x1x32xf32, #tpu.memory_space<vmem>>, %arg11: memref<2x1x32xf32, #tpu.memory_space<vmem>>, %arg12: memref<2x32x128xf32, #tpu.memory_space<vmem>>, %arg13: memref<2x1x128xf32, #tpu.memory_space<vmem>>, %arg14: memref<2x128x32xf32, #tpu.memory_space<vmem>>, %arg15: memref<2x1x32xf32, #tpu.memory_space<vmem>>, %arg16: memref<1x32xf32, #tpu.memory_space<vmem>>, %arg17: memref<1x32xf32, #tpu.memory_space<vmem>>, %arg18: memref<1x32xf32, #tpu.memory_space<vmem>>, %arg19: memref<1x1xf32, #tpu.memory_space<vmem>>, %arg20: memref<1x32xf32, #tpu.memory_space<vmem>>, %arg21: memref<1x1xf32, #tpu.memory_space<vmem>>, %arg22: memref<1x32xf32, #tpu.memory_space<vmem>>, %arg23: memref<1x1xf32, #tpu.memory_space<vmem>>, %arg24: memref<32x3xf32, #tpu.memory_space<vmem>>, %arg25: memref<1x3xf32, #tpu.memory_space<vmem>>, %arg26: memref<1x3xf32, #tpu.memory_space<vmem>>, %arg27: memref<1x1x3xf32, #tpu.memory_space<vmem>>, %arg28: memref<1x1x1xf32, #tpu.memory_space<vmem>>) attributes {dimension_semantics = [#tpu.dimension_semantics<parallel>], iteration_bounds = array<i64: 2>, scalar_prefetch = 0 : i64, scratch_operands = 0 : i64, tpu.core_type = #tpu.core_type<tc>, window_params = [{transform_indices = @transform_0, window_bounds = array<i64: 1, 5, 768>}, {pipeline_mode = #tpu.pipeline_mode<synchronous>, transform_indices = @transform_1, window_bounds = array<i64: 768, 32>}, {pipeline_mode = #tpu.pipeline_mode<synchronous>, transform_indices = @transform_2, window_bounds = array<i64: 5, 32>}, {pipeline_mode = #tpu.pipeline_mode<synchronous>, transform_indices = @transform_3, window_bounds = array<i64: 2, 1, 32>}, {pipeline_mode = #tpu.pipeline_mode<synchronous>, transform_indices = @transform_4, window_bounds = array<i64: 2, 1, 32>}, {pipeline_mode = #tpu.pipeline_mode<synchronous>, transform_indices = @transform_5, window_bounds = array<i64: 24, 32, 8>}, {pipeline_mode = #tpu.pipeline_mode<synchronous>, transform_indices = @transform_6, window_bounds = array<i64: 24, 1, 8>}, {pipeline_mode = #tpu.pipeline_mode<synchronous>, transform_indices = @transform_7, window_bounds = array<i64: 8, 8, 32>}, {pipeline_mode = #tpu.pipeline_mode<synchronous>, transform_indices = @transform_8, window_bounds = array<i64: 2, 1, 32>}, {pipeline_mode = #tpu.pipeline_mode<synchronous>, transform_indices = @transform_9, window_bounds = array<i64: 2, 1, 32>}, {pipeline_mode = #tpu.pipeline_mode<synchronous>, transform_indices = @transform_10, window_bounds = array<i64: 2, 1, 32>}, {pipeline_mode = #tpu.pipeline_mode<synchronous>, transform_indices = @transform_11, window_bounds = array<i64: 2, 32, 128>}, {pipeline_mode = #tpu.pipeline_mode<synchronous>, transform_indices = @transform_12, window_bounds = array<i64: 2, 1, 128>}, {pipeline_mode = #tpu.pipeline_mode<synchronous>, transform_indices = @transform_13, window_bounds = array<i64: 2, 128, 32>}, {pipeline_mode = #tpu.pipeline_mode<synchronous>, transform_indices = @transform_14, window_bounds = array<i64: 2, 1, 32>}, {pipeline_mode = #tpu.pipeline_mode<synchronous>, transform_indices = @transform_15, window_bounds = array<i64: 1, 32>}, {pipeline_mode = #tpu.pipeline_mode<synchronous>, transform_indices = @transform_16, window_bounds = array<i64: 1, 32>}, {pipeline_mode = #tpu.pipeline_mode<synchronous>, transform_indices = @transform_17, window_bounds = array<i64: 1, 32>}, {pipeline_mode = #tpu.pipeline_mode<synchronous>, transform_indices = @transform_18, window_bounds = array<i64: 1, 1>}, {pipeline_mode = #tpu.pipeline_mode<synchronous>, transform_indices = @transform_19, window_bounds = array<i64: 1, 32>}, {pipeline_mode = #tpu.pipeline_mode<synchronous>, transform_indices = @transform_20, window_bounds = array<i64: 1, 1>}, {pipeline_mode = #tpu.pipeline_mode<synchronous>, transform_indices = @transform_21, window_bounds = array<i64: 1, 32>}, {pipeline_mode = #tpu.pipeline_mode<synchronous>, transform_indices = @transform_22, window_bounds = array<i64: 1, 1>}, {pipeline_mode = #tpu.pipeline_mode<synchronous>, transform_indices = @transform_23, window_bounds = array<i64: 32, 3>}, {pipeline_mode = #tpu.pipeline_mode<synchronous>, transform_indices = @transform_24, window_bounds = array<i64: 1, 3>}, {pipeline_mode = #tpu.pipeline_mode<synchronous>, transform_indices = @transform_25, window_bounds = array<i64: 1, 3>}, {transform_indices = @transform_26, window_bounds = array<i64: 1, 1, 3>}, {transform_indices = @transform_27, window_bounds = array<i64: 1, 1, 1>}]} {
    %c0 = arith.constant 0 : index
    %c0_0 = arith.constant 0 : index
    %c0_1 = arith.constant 0 : index
    %0 = vector.load %arg1[%c0, %c0_0, %c0_1] : memref<1x5x768xf32, #tpu.memory_space<vmem>>, vector<1x5x768xf32>
    %1 = vector.shape_cast %0 : vector<1x5x768xf32> to vector<5x768xf32>
    %c0_2 = arith.constant 0 : index
    %c0_3 = arith.constant 0 : index
    %2 = vector.load %arg2[%c0_2, %c0_3] : memref<768x32xf32, #tpu.memory_space<vmem>>, vector<768x32xf32>
    %cst = arith.constant dense<0.000000e+00> : vector<5x32xf32>
    %3 = tpu.matmul %1, %2, %cst {dimension_numbers = #tpu.dot_dimension_numbers<[1], [0], [0], [1], [0, 0, 1, 1], [], []>} : vector<5x768xf32>, vector<768x32xf32>, vector<5x32xf32> -> vector<5x32xf32>
    %c0_4 = arith.constant 0 : index
    %c0_5 = arith.constant 0 : index
    %4 = vector.load %arg3[%c0_4, %c0_5] : memref<5x32xf32, #tpu.memory_space<vmem>>, vector<5x32xf32>
    %5 = arith.addf %3, %4 : vector<5x32xf32>
    %c0_6 = arith.constant 0 : index
    %c0_7 = arith.constant 0 : index
    %c0_8 = arith.constant 0 : index
    %6 = vector.load %arg4[%c0_6, %c0_7, %c0_8] : memref<2x1x32xf32, #tpu.memory_space<vmem>>, vector<1x1x32xf32>
    %7 = vector.shape_cast %6 : vector<1x1x32xf32> to vector<1x32xf32>
    %c0_9 = arith.constant 0 : index
    %c0_10 = arith.constant 0 : index
    %c0_11 = arith.constant 0 : index
    %8 = vector.load %arg5[%c0_9, %c0_10, %c0_11] : memref<2x1x32xf32, #tpu.memory_space<vmem>>, vector<1x1x32xf32>
    %9 = vector.shape_cast %8 : vector<1x1x32xf32> to vector<1x32xf32>
    %cst_12 = arith.constant dense<0.000000e+00> : vector<5xf32>
    %10 = vector.multi_reduction <add>, %5, %cst_12 [1] : vector<5x32xf32> to vector<5xf32>
    %11 = vector.shape_cast %10 : vector<5xf32> to vector<5x1xf32>
    %cst_13 = arith.constant 3.200000e+01 : f32
    %12 = vector.broadcast %cst_13 : f32 to vector<5x1xf32>
    %13 = arith.divf %11, %12 : vector<5x1xf32>
    %14 = vector.broadcast %13 : vector<5x1xf32> to vector<5x32xf32>
    %15 = arith.subf %5, %14 : vector<5x32xf32>
    %16 = arith.mulf %15, %15 : vector<5x32xf32>
    %cst_14 = arith.constant dense<0.000000e+00> : vector<5xf32>
    %17 = vector.multi_reduction <add>, %16, %cst_14 [1] : vector<5x32xf32> to vector<5xf32>
    %18 = vector.shape_cast %17 : vector<5xf32> to vector<5x1xf32>
    %cst_15 = arith.constant 3.200000e+01 : f32
    %19 = vector.broadcast %cst_15 : f32 to vector<5x1xf32>
    %20 = arith.divf %18, %19 : vector<5x1xf32>
    %21 = vector.broadcast %13 : vector<5x1xf32> to vector<5x32xf32>
    %22 = arith.subf %5, %21 : vector<5x32xf32>
    %cst_16 = arith.constant 9.99999997E-7 : f32
    %23 = vector.broadcast %cst_16 : f32 to vector<5x1xf32>
    %24 = arith.addf %20, %23 : vector<5x1xf32>
    %25 = math.rsqrt %24 : vector<5x1xf32>
    %26 = vector.broadcast %25 : vector<5x1xf32> to vector<5x32xf32>
    %27 = arith.mulf %22, %26 : vector<5x32xf32>
    %28 = vector.broadcast %7 : vector<1x32xf32> to vector<5x32xf32>
    %29 = arith.mulf %27, %28 : vector<5x32xf32>
    %30 = vector.broadcast %9 : vector<1x32xf32> to vector<5x32xf32>
    %31 = arith.addf %29, %30 : vector<5x32xf32>
    %c0_17 = arith.constant 0 : index
    %c0_18 = arith.constant 0 : index
    %c0_19 = arith.constant 0 : index
    %32 = vector.load %arg6[%c0_17, %c0_18, %c0_19] : memref<24x32x8xf32, #tpu.memory_space<vmem>>, vector<1x32x8xf32>
    %33 = vector.shape_cast %32 : vector<1x32x8xf32> to vector<32x8xf32>
    %cst_20 = arith.constant dense<0.000000e+00> : vector<5x8xf32>
    %34 = tpu.matmul %31, %33, %cst_20 {dimension_numbers = #tpu.dot_dimension_numbers<[1], [0], [0], [1], [0, 0, 1, 1], [], []>} : vector<5x32xf32>, vector<32x8xf32>, vector<5x8xf32> -> vector<5x8xf32>
    %c0_21 = arith.constant 0 : index
    %c0_22 = arith.constant 0 : index
    %c0_23 = arith.constant 0 : index
    %35 = vector.load %arg7[%c0_21, %c0_22, %c0_23] : memref<24x1x8xf32, #tpu.memory_space<vmem>>, vector<1x1x8xf32>
    %36 = vector.shape_cast %35 : vector<1x1x8xf32> to vector<1x8xf32>
    %37 = vector.broadcast %36 : vector<1x8xf32> to vector<5x8xf32>
    %38 = arith.addf %34, %37 : vector<5x8xf32>
    %cst_24 = arith.constant 0.353553385 : f32
    %39 = vector.broadcast %cst_24 : f32 to vector<5x8xf32>
    %40 = arith.mulf %38, %39 : vector<5x8xf32>
    %c4 = arith.constant 4 : index
    %c0_25 = arith.constant 0 : index
    %c0_26 = arith.constant 0 : index
    %41 = vector.load %arg6[%c4, %c0_25, %c0_26] : memref<24x32x8xf32, #tpu.memory_space<vmem>>, vector<1x32x8xf32>
    %42 = vector.shape_cast %41 : vector<1x32x8xf32> to vector<32x8xf32>
    %cst_27 = arith.constant dense<0.000000e+00> : vector<5x8xf32>
    %43 = tpu.matmul %31, %42, %cst_27 {dimension_numbers = #tpu.dot_dimension_numbers<[1], [0], [0], [1], [0, 0, 1, 1], [], []>} : vector<5x32xf32>, vector<32x8xf32>, vector<5x8xf32> -> vector<5x8xf32>
    %c4_28 = arith.constant 4 : index
    %c0_29 = arith.constant 0 : index
    %c0_30 = arith.constant 0 : index
    %44 = vector.load %arg7[%c4_28, %c0_29, %c0_30] : memref<24x1x8xf32, #tpu.memory_space<vmem>>, vector<1x1x8xf32>
    %45 = vector.shape_cast %44 : vector<1x1x8xf32> to vector<1x8xf32>
    %46 = vector.broadcast %45 : vector<1x8xf32> to vector<5x8xf32>
    %47 = arith.addf %43, %46 : vector<5x8xf32>
    %c8 = arith.constant 8 : index
    %c0_31 = arith.constant 0 : index
    %c0_32 = arith.constant 0 : index
    %48 = vector.load %arg6[%c8, %c0_31, %c0_32] : memref<24x32x8xf32, #tpu.memory_space<vmem>>, vector<1x32x8xf32>
    %49 = vector.shape_cast %48 : vector<1x32x8xf32> to vector<32x8xf32>
    %cst_33 = arith.constant dense<0.000000e+00> : vector<5x8xf32>
    %50 = tpu.matmul %31, %49, %cst_33 {dimension_numbers = #tpu.dot_dimension_numbers<[1], [0], [0], [1], [0, 0, 1, 1], [], []>} : vector<5x32xf32>, vector<32x8xf32>, vector<5x8xf32> -> vector<5x8xf32>
    %c8_34 = arith.constant 8 : index
    %c0_35 = arith.constant 0 : index
    %c0_36 = arith.constant 0 : index
    %51 = vector.load %arg7[%c8_34, %c0_35, %c0_36] : memref<24x1x8xf32, #tpu.memory_space<vmem>>, vector<1x1x8xf32>
    %52 = vector.shape_cast %51 : vector<1x1x8xf32> to vector<1x8xf32>
    %53 = vector.broadcast %52 : vector<1x8xf32> to vector<5x8xf32>
    %54 = arith.addf %50, %53 : vector<5x8xf32>
    %55 = tpu.transpose %47, [1, 0] : vector<5x8xf32> -> vector<8x5xf32>
    %cst_37 = arith.constant dense<0.000000e+00> : vector<5x5xf32>
    %56 = tpu.matmul %40, %55, %cst_37 {dimension_numbers = #tpu.dot_dimension_numbers<[1], [0], [0], [1], [0, 0, 1, 1], [], []>} : vector<5x8xf32>, vector<8x5xf32>, vector<5x5xf32> -> vector<5x5xf32>
    %cst_38 = arith.constant dense<0xFF800000> : vector<5xf32>
    %57 = vector.multi_reduction <maximumf>, %56, %cst_38 [1] : vector<5x5xf32> to vector<5xf32>
    %58 = vector.shape_cast %57 : vector<5xf32> to vector<5x1xf32>
    %59 = vector.broadcast %58 : vector<5x1xf32> to vector<5x5xf32>
    %60 = arith.subf %56, %59 : vector<5x5xf32>
    %61 = math.exp %60 : vector<5x5xf32>
    %cst_39 = arith.constant dense<0.000000e+00> : vector<5xf32>
    %62 = vector.multi_reduction <add>, %61, %cst_39 [1] : vector<5x5xf32> to vector<5xf32>
    %63 = vector.shape_cast %62 : vector<5xf32> to vector<5x1xf32>
    %64 = tpu.reciprocal %63 {approx = true} : vector<5x1xf32> -> vector<5x1xf32>
    %65 = vector.broadcast %64 : vector<5x1xf32> to vector<5x5xf32>
    %66 = arith.mulf %61, %65 : vector<5x5xf32>
    %cst_40 = arith.constant dense<0.000000e+00> : vector<5x8xf32>
    %67 = tpu.matmul %66, %54, %cst_40 {dimension_numbers = #tpu.dot_dimension_numbers<[1], [0], [0], [1], [0, 0, 1, 1], [], []>} : vector<5x5xf32>, vector<5x8xf32>, vector<5x8xf32> -> vector<5x8xf32>
    %c0_41 = arith.constant 0 : index
    %c0_42 = arith.constant 0 : index
    %c0_43 = arith.constant 0 : index
    %68 = vector.load %arg8[%c0_41, %c0_42, %c0_43] : memref<8x8x32xf32, #tpu.memory_space<vmem>>, vector<1x8x32xf32>
    %69 = vector.shape_cast %68 : vector<1x8x32xf32> to vector<8x32xf32>
    %cst_44 = arith.constant dense<0.000000e+00> : vector<5x32xf32>
    %70 = tpu.matmul %67, %69, %cst_44 {dimension_numbers = #tpu.dot_dimension_numbers<[1], [0], [0], [1], [0, 0, 1, 1], [], []>} : vector<5x8xf32>, vector<8x32xf32>, vector<5x32xf32> -> vector<5x32xf32>
    %c1 = arith.constant 1 : index
    %c0_45 = arith.constant 0 : index
    %c0_46 = arith.constant 0 : index
    %71 = vector.load %arg6[%c1, %c0_45, %c0_46] : memref<24x32x8xf32, #tpu.memory_space<vmem>>, vector<1x32x8xf32>
    %72 = vector.shape_cast %71 : vector<1x32x8xf32> to vector<32x8xf32>
    %cst_47 = arith.constant dense<0.000000e+00> : vector<5x8xf32>
    %73 = tpu.matmul %31, %72, %cst_47 {dimension_numbers = #tpu.dot_dimension_numbers<[1], [0], [0], [1], [0, 0, 1, 1], [], []>} : vector<5x32xf32>, vector<32x8xf32>, vector<5x8xf32> -> vector<5x8xf32>
    %c1_48 = arith.constant 1 : index
    %c0_49 = arith.constant 0 : index
    %c0_50 = arith.constant 0 : index
    %74 = vector.load %arg7[%c1_48, %c0_49, %c0_50] : memref<24x1x8xf32, #tpu.memory_space<vmem>>, vector<1x1x8xf32>
    %75 = vector.shape_cast %74 : vector<1x1x8xf32> to vector<1x8xf32>
    %76 = vector.broadcast %75 : vector<1x8xf32> to vector<5x8xf32>
    %77 = arith.addf %73, %76 : vector<5x8xf32>
    %cst_51 = arith.constant 0.353553385 : f32
    %78 = vector.broadcast %cst_51 : f32 to vector<5x8xf32>
    %79 = arith.mulf %77, %78 : vector<5x8xf32>
    %c5 = arith.constant 5 : index
    %c0_52 = arith.constant 0 : index
    %c0_53 = arith.constant 0 : index
    %80 = vector.load %arg6[%c5, %c0_52, %c0_53] : memref<24x32x8xf32, #tpu.memory_space<vmem>>, vector<1x32x8xf32>
    %81 = vector.shape_cast %80 : vector<1x32x8xf32> to vector<32x8xf32>
    %cst_54 = arith.constant dense<0.000000e+00> : vector<5x8xf32>
    %82 = tpu.matmul %31, %81, %cst_54 {dimension_numbers = #tpu.dot_dimension_numbers<[1], [0], [0], [1], [0, 0, 1, 1], [], []>} : vector<5x32xf32>, vector<32x8xf32>, vector<5x8xf32> -> vector<5x8xf32>
    %c5_55 = arith.constant 5 : index
    %c0_56 = arith.constant 0 : index
    %c0_57 = arith.constant 0 : index
    %83 = vector.load %arg7[%c5_55, %c0_56, %c0_57] : memref<24x1x8xf32, #tpu.memory_space<vmem>>, vector<1x1x8xf32>
    %84 = vector.shape_cast %83 : vector<1x1x8xf32> to vector<1x8xf32>
    %85 = vector.broadcast %84 : vector<1x8xf32> to vector<5x8xf32>
    %86 = arith.addf %82, %85 : vector<5x8xf32>
    %c9 = arith.constant 9 : index
    %c0_58 = arith.constant 0 : index
    %c0_59 = arith.constant 0 : index
    %87 = vector.load %arg6[%c9, %c0_58, %c0_59] : memref<24x32x8xf32, #tpu.memory_space<vmem>>, vector<1x32x8xf32>
    %88 = vector.shape_cast %87 : vector<1x32x8xf32> to vector<32x8xf32>
    %cst_60 = arith.constant dense<0.000000e+00> : vector<5x8xf32>
    %89 = tpu.matmul %31, %88, %cst_60 {dimension_numbers = #tpu.dot_dimension_numbers<[1], [0], [0], [1], [0, 0, 1, 1], [], []>} : vector<5x32xf32>, vector<32x8xf32>, vector<5x8xf32> -> vector<5x8xf32>
    %c9_61 = arith.constant 9 : index
    %c0_62 = arith.constant 0 : index
    %c0_63 = arith.constant 0 : index
    %90 = vector.load %arg7[%c9_61, %c0_62, %c0_63] : memref<24x1x8xf32, #tpu.memory_space<vmem>>, vector<1x1x8xf32>
    %91 = vector.shape_cast %90 : vector<1x1x8xf32> to vector<1x8xf32>
    %92 = vector.broadcast %91 : vector<1x8xf32> to vector<5x8xf32>
    %93 = arith.addf %89, %92 : vector<5x8xf32>
    %94 = tpu.transpose %86, [1, 0] : vector<5x8xf32> -> vector<8x5xf32>
    %cst_64 = arith.constant dense<0.000000e+00> : vector<5x5xf32>
    %95 = tpu.matmul %79, %94, %cst_64 {dimension_numbers = #tpu.dot_dimension_numbers<[1], [0], [0], [1], [0, 0, 1, 1], [], []>} : vector<5x8xf32>, vector<8x5xf32>, vector<5x5xf32> -> vector<5x5xf32>
    %cst_65 = arith.constant dense<0xFF800000> : vector<5xf32>
    %96 = vector.multi_reduction <maximumf>, %95, %cst_65 [1] : vector<5x5xf32> to vector<5xf32>
    %97 = vector.shape_cast %96 : vector<5xf32> to vector<5x1xf32>
    %98 = vector.broadcast %97 : vector<5x1xf32> to vector<5x5xf32>
    %99 = arith.subf %95, %98 : vector<5x5xf32>
    %100 = math.exp %99 : vector<5x5xf32>
    %cst_66 = arith.constant dense<0.000000e+00> : vector<5xf32>
    %101 = vector.multi_reduction <add>, %100, %cst_66 [1] : vector<5x5xf32> to vector<5xf32>
    %102 = vector.shape_cast %101 : vector<5xf32> to vector<5x1xf32>
    %103 = tpu.reciprocal %102 {approx = true} : vector<5x1xf32> -> vector<5x1xf32>
    %104 = vector.broadcast %103 : vector<5x1xf32> to vector<5x5xf32>
    %105 = arith.mulf %100, %104 : vector<5x5xf32>
    %cst_67 = arith.constant dense<0.000000e+00> : vector<5x8xf32>
    %106 = tpu.matmul %105, %93, %cst_67 {dimension_numbers = #tpu.dot_dimension_numbers<[1], [0], [0], [1], [0, 0, 1, 1], [], []>} : vector<5x5xf32>, vector<5x8xf32>, vector<5x8xf32> -> vector<5x8xf32>
    %c1_68 = arith.constant 1 : index
    %c0_69 = arith.constant 0 : index
    %c0_70 = arith.constant 0 : index
    %107 = vector.load %arg8[%c1_68, %c0_69, %c0_70] : memref<8x8x32xf32, #tpu.memory_space<vmem>>, vector<1x8x32xf32>
    %108 = vector.shape_cast %107 : vector<1x8x32xf32> to vector<8x32xf32>
    %cst_71 = arith.constant dense<0.000000e+00> : vector<5x32xf32>
    %109 = tpu.matmul %106, %108, %cst_71 {dimension_numbers = #tpu.dot_dimension_numbers<[1], [0], [0], [1], [0, 0, 1, 1], [], []>} : vector<5x8xf32>, vector<8x32xf32>, vector<5x32xf32> -> vector<5x32xf32>
    %110 = arith.addf %70, %109 : vector<5x32xf32>
    %c2 = arith.constant 2 : index
    %c0_72 = arith.constant 0 : index
    %c0_73 = arith.constant 0 : index
    %111 = vector.load %arg6[%c2, %c0_72, %c0_73] : memref<24x32x8xf32, #tpu.memory_space<vmem>>, vector<1x32x8xf32>
    %112 = vector.shape_cast %111 : vector<1x32x8xf32> to vector<32x8xf32>
    %cst_74 = arith.constant dense<0.000000e+00> : vector<5x8xf32>
    %113 = tpu.matmul %31, %112, %cst_74 {dimension_numbers = #tpu.dot_dimension_numbers<[1], [0], [0], [1], [0, 0, 1, 1], [], []>} : vector<5x32xf32>, vector<32x8xf32>, vector<5x8xf32> -> vector<5x8xf32>
    %c2_75 = arith.constant 2 : index
    %c0_76 = arith.constant 0 : index
    %c0_77 = arith.constant 0 : index
    %114 = vector.load %arg7[%c2_75, %c0_76, %c0_77] : memref<24x1x8xf32, #tpu.memory_space<vmem>>, vector<1x1x8xf32>
    %115 = vector.shape_cast %114 : vector<1x1x8xf32> to vector<1x8xf32>
    %116 = vector.broadcast %115 : vector<1x8xf32> to vector<5x8xf32>
    %117 = arith.addf %113, %116 : vector<5x8xf32>
    %cst_78 = arith.constant 0.353553385 : f32
    %118 = vector.broadcast %cst_78 : f32 to vector<5x8xf32>
    %119 = arith.mulf %117, %118 : vector<5x8xf32>
    %c6 = arith.constant 6 : index
    %c0_79 = arith.constant 0 : index
    %c0_80 = arith.constant 0 : index
    %120 = vector.load %arg6[%c6, %c0_79, %c0_80] : memref<24x32x8xf32, #tpu.memory_space<vmem>>, vector<1x32x8xf32>
    %121 = vector.shape_cast %120 : vector<1x32x8xf32> to vector<32x8xf32>
    %cst_81 = arith.constant dense<0.000000e+00> : vector<5x8xf32>
    %122 = tpu.matmul %31, %121, %cst_81 {dimension_numbers = #tpu.dot_dimension_numbers<[1], [0], [0], [1], [0, 0, 1, 1], [], []>} : vector<5x32xf32>, vector<32x8xf32>, vector<5x8xf32> -> vector<5x8xf32>
    %c6_82 = arith.constant 6 : index
    %c0_83 = arith.constant 0 : index
    %c0_84 = arith.constant 0 : index
    %123 = vector.load %arg7[%c6_82, %c0_83, %c0_84] : memref<24x1x8xf32, #tpu.memory_space<vmem>>, vector<1x1x8xf32>
    %124 = vector.shape_cast %123 : vector<1x1x8xf32> to vector<1x8xf32>
    %125 = vector.broadcast %124 : vector<1x8xf32> to vector<5x8xf32>
    %126 = arith.addf %122, %125 : vector<5x8xf32>
    %c10 = arith.constant 10 : index
    %c0_85 = arith.constant 0 : index
    %c0_86 = arith.constant 0 : index
    %127 = vector.load %arg6[%c10, %c0_85, %c0_86] : memref<24x32x8xf32, #tpu.memory_space<vmem>>, vector<1x32x8xf32>
    %128 = vector.shape_cast %127 : vector<1x32x8xf32> to vector<32x8xf32>
    %cst_87 = arith.constant dense<0.000000e+00> : vector<5x8xf32>
    %129 = tpu.matmul %31, %128, %cst_87 {dimension_numbers = #tpu.dot_dimension_numbers<[1], [0], [0], [1], [0, 0, 1, 1], [], []>} : vector<5x32xf32>, vector<32x8xf32>, vector<5x8xf32> -> vector<5x8xf32>
    %c10_88 = arith.constant 10 : index
    %c0_89 = arith.constant 0 : index
    %c0_90 = arith.constant 0 : index
    %130 = vector.load %arg7[%c10_88, %c0_89, %c0_90] : memref<24x1x8xf32, #tpu.memory_space<vmem>>, vector<1x1x8xf32>
    %131 = vector.shape_cast %130 : vector<1x1x8xf32> to vector<1x8xf32>
    %132 = vector.broadcast %131 : vector<1x8xf32> to vector<5x8xf32>
    %133 = arith.addf %129, %132 : vector<5x8xf32>
    %134 = tpu.transpose %126, [1, 0] : vector<5x8xf32> -> vector<8x5xf32>
    %cst_91 = arith.constant dense<0.000000e+00> : vector<5x5xf32>
    %135 = tpu.matmul %119, %134, %cst_91 {dimension_numbers = #tpu.dot_dimension_numbers<[1], [0], [0], [1], [0, 0, 1, 1], [], []>} : vector<5x8xf32>, vector<8x5xf32>, vector<5x5xf32> -> vector<5x5xf32>
    %cst_92 = arith.constant dense<0xFF800000> : vector<5xf32>
    %136 = vector.multi_reduction <maximumf>, %135, %cst_92 [1] : vector<5x5xf32> to vector<5xf32>
    %137 = vector.shape_cast %136 : vector<5xf32> to vector<5x1xf32>
    %138 = vector.broadcast %137 : vector<5x1xf32> to vector<5x5xf32>
    %139 = arith.subf %135, %138 : vector<5x5xf32>
    %140 = math.exp %139 : vector<5x5xf32>
    %cst_93 = arith.constant dense<0.000000e+00> : vector<5xf32>
    %141 = vector.multi_reduction <add>, %140, %cst_93 [1] : vector<5x5xf32> to vector<5xf32>
    %142 = vector.shape_cast %141 : vector<5xf32> to vector<5x1xf32>
    %143 = tpu.reciprocal %142 {approx = true} : vector<5x1xf32> -> vector<5x1xf32>
    %144 = vector.broadcast %143 : vector<5x1xf32> to vector<5x5xf32>
    %145 = arith.mulf %140, %144 : vector<5x5xf32>
    %cst_94 = arith.constant dense<0.000000e+00> : vector<5x8xf32>
    %146 = tpu.matmul %145, %133, %cst_94 {dimension_numbers = #tpu.dot_dimension_numbers<[1], [0], [0], [1], [0, 0, 1, 1], [], []>} : vector<5x5xf32>, vector<5x8xf32>, vector<5x8xf32> -> vector<5x8xf32>
    %c2_95 = arith.constant 2 : index
    %c0_96 = arith.constant 0 : index
    %c0_97 = arith.constant 0 : index
    %147 = vector.load %arg8[%c2_95, %c0_96, %c0_97] : memref<8x8x32xf32, #tpu.memory_space<vmem>>, vector<1x8x32xf32>
    %148 = vector.shape_cast %147 : vector<1x8x32xf32> to vector<8x32xf32>
    %cst_98 = arith.constant dense<0.000000e+00> : vector<5x32xf32>
    %149 = tpu.matmul %146, %148, %cst_98 {dimension_numbers = #tpu.dot_dimension_numbers<[1], [0], [0], [1], [0, 0, 1, 1], [], []>} : vector<5x8xf32>, vector<8x32xf32>, vector<5x32xf32> -> vector<5x32xf32>
    %150 = arith.addf %110, %149 : vector<5x32xf32>
    %c3 = arith.constant 3 : index
    %c0_99 = arith.constant 0 : index
    %c0_100 = arith.constant 0 : index
    %151 = vector.load %arg6[%c3, %c0_99, %c0_100] : memref<24x32x8xf32, #tpu.memory_space<vmem>>, vector<1x32x8xf32>
    %152 = vector.shape_cast %151 : vector<1x32x8xf32> to vector<32x8xf32>
    %cst_101 = arith.constant dense<0.000000e+00> : vector<5x8xf32>
    %153 = tpu.matmul %31, %152, %cst_101 {dimension_numbers = #tpu.dot_dimension_numbers<[1], [0], [0], [1], [0, 0, 1, 1], [], []>} : vector<5x32xf32>, vector<32x8xf32>, vector<5x8xf32> -> vector<5x8xf32>
    %c3_102 = arith.constant 3 : index
    %c0_103 = arith.constant 0 : index
    %c0_104 = arith.constant 0 : index
    %154 = vector.load %arg7[%c3_102, %c0_103, %c0_104] : memref<24x1x8xf32, #tpu.memory_space<vmem>>, vector<1x1x8xf32>
    %155 = vector.shape_cast %154 : vector<1x1x8xf32> to vector<1x8xf32>
    %156 = vector.broadcast %155 : vector<1x8xf32> to vector<5x8xf32>
    %157 = arith.addf %153, %156 : vector<5x8xf32>
    %cst_105 = arith.constant 0.353553385 : f32
    %158 = vector.broadcast %cst_105 : f32 to vector<5x8xf32>
    %159 = arith.mulf %157, %158 : vector<5x8xf32>
    %c7 = arith.constant 7 : index
    %c0_106 = arith.constant 0 : index
    %c0_107 = arith.constant 0 : index
    %160 = vector.load %arg6[%c7, %c0_106, %c0_107] : memref<24x32x8xf32, #tpu.memory_space<vmem>>, vector<1x32x8xf32>
    %161 = vector.shape_cast %160 : vector<1x32x8xf32> to vector<32x8xf32>
    %cst_108 = arith.constant dense<0.000000e+00> : vector<5x8xf32>
    %162 = tpu.matmul %31, %161, %cst_108 {dimension_numbers = #tpu.dot_dimension_numbers<[1], [0], [0], [1], [0, 0, 1, 1], [], []>} : vector<5x32xf32>, vector<32x8xf32>, vector<5x8xf32> -> vector<5x8xf32>
    %c7_109 = arith.constant 7 : index
    %c0_110 = arith.constant 0 : index
    %c0_111 = arith.constant 0 : index
    %163 = vector.load %arg7[%c7_109, %c0_110, %c0_111] : memref<24x1x8xf32, #tpu.memory_space<vmem>>, vector<1x1x8xf32>
    %164 = vector.shape_cast %163 : vector<1x1x8xf32> to vector<1x8xf32>
    %165 = vector.broadcast %164 : vector<1x8xf32> to vector<5x8xf32>
    %166 = arith.addf %162, %165 : vector<5x8xf32>
    %c11 = arith.constant 11 : index
    %c0_112 = arith.constant 0 : index
    %c0_113 = arith.constant 0 : index
    %167 = vector.load %arg6[%c11, %c0_112, %c0_113] : memref<24x32x8xf32, #tpu.memory_space<vmem>>, vector<1x32x8xf32>
    %168 = vector.shape_cast %167 : vector<1x32x8xf32> to vector<32x8xf32>
    %cst_114 = arith.constant dense<0.000000e+00> : vector<5x8xf32>
    %169 = tpu.matmul %31, %168, %cst_114 {dimension_numbers = #tpu.dot_dimension_numbers<[1], [0], [0], [1], [0, 0, 1, 1], [], []>} : vector<5x32xf32>, vector<32x8xf32>, vector<5x8xf32> -> vector<5x8xf32>
    %c11_115 = arith.constant 11 : index
    %c0_116 = arith.constant 0 : index
    %c0_117 = arith.constant 0 : index
    %170 = vector.load %arg7[%c11_115, %c0_116, %c0_117] : memref<24x1x8xf32, #tpu.memory_space<vmem>>, vector<1x1x8xf32>
    %171 = vector.shape_cast %170 : vector<1x1x8xf32> to vector<1x8xf32>
    %172 = vector.broadcast %171 : vector<1x8xf32> to vector<5x8xf32>
    %173 = arith.addf %169, %172 : vector<5x8xf32>
    %174 = tpu.transpose %166, [1, 0] : vector<5x8xf32> -> vector<8x5xf32>
    %cst_118 = arith.constant dense<0.000000e+00> : vector<5x5xf32>
    %175 = tpu.matmul %159, %174, %cst_118 {dimension_numbers = #tpu.dot_dimension_numbers<[1], [0], [0], [1], [0, 0, 1, 1], [], []>} : vector<5x8xf32>, vector<8x5xf32>, vector<5x5xf32> -> vector<5x5xf32>
    %cst_119 = arith.constant dense<0xFF800000> : vector<5xf32>
    %176 = vector.multi_reduction <maximumf>, %175, %cst_119 [1] : vector<5x5xf32> to vector<5xf32>
    %177 = vector.shape_cast %176 : vector<5xf32> to vector<5x1xf32>
    %178 = vector.broadcast %177 : vector<5x1xf32> to vector<5x5xf32>
    %179 = arith.subf %175, %178 : vector<5x5xf32>
    %180 = math.exp %179 : vector<5x5xf32>
    %cst_120 = arith.constant dense<0.000000e+00> : vector<5xf32>
    %181 = vector.multi_reduction <add>, %180, %cst_120 [1] : vector<5x5xf32> to vector<5xf32>
    %182 = vector.shape_cast %181 : vector<5xf32> to vector<5x1xf32>
    %183 = tpu.reciprocal %182 {approx = true} : vector<5x1xf32> -> vector<5x1xf32>
    %184 = vector.broadcast %183 : vector<5x1xf32> to vector<5x5xf32>
    %185 = arith.mulf %180, %184 : vector<5x5xf32>
    %cst_121 = arith.constant dense<0.000000e+00> : vector<5x8xf32>
    %186 = tpu.matmul %185, %173, %cst_121 {dimension_numbers = #tpu.dot_dimension_numbers<[1], [0], [0], [1], [0, 0, 1, 1], [], []>} : vector<5x5xf32>, vector<5x8xf32>, vector<5x8xf32> -> vector<5x8xf32>
    %c3_122 = arith.constant 3 : index
    %c0_123 = arith.constant 0 : index
    %c0_124 = arith.constant 0 : index
    %187 = vector.load %arg8[%c3_122, %c0_123, %c0_124] : memref<8x8x32xf32, #tpu.memory_space<vmem>>, vector<1x8x32xf32>
    %188 = vector.shape_cast %187 : vector<1x8x32xf32> to vector<8x32xf32>
    %cst_125 = arith.constant dense<0.000000e+00> : vector<5x32xf32>
    %189 = tpu.matmul %186, %188, %cst_125 {dimension_numbers = #tpu.dot_dimension_numbers<[1], [0], [0], [1], [0, 0, 1, 1], [], []>} : vector<5x8xf32>, vector<8x32xf32>, vector<5x32xf32> -> vector<5x32xf32>
    %190 = arith.addf %150, %189 : vector<5x32xf32>
    %191 = arith.addf %5, %190 : vector<5x32xf32>
    %c0_126 = arith.constant 0 : index
    %c0_127 = arith.constant 0 : index
    %c0_128 = arith.constant 0 : index
    %192 = vector.load %arg9[%c0_126, %c0_127, %c0_128] : memref<2x1x32xf32, #tpu.memory_space<vmem>>, vector<1x1x32xf32>
    %193 = vector.shape_cast %192 : vector<1x1x32xf32> to vector<1x32xf32>
    %194 = vector.broadcast %193 : vector<1x32xf32> to vector<5x32xf32>
    %195 = arith.addf %191, %194 : vector<5x32xf32>
    %c0_129 = arith.constant 0 : index
    %c0_130 = arith.constant 0 : index
    %c0_131 = arith.constant 0 : index
    %196 = vector.load %arg10[%c0_129, %c0_130, %c0_131] : memref<2x1x32xf32, #tpu.memory_space<vmem>>, vector<1x1x32xf32>
    %197 = vector.shape_cast %196 : vector<1x1x32xf32> to vector<1x32xf32>
    %c0_132 = arith.constant 0 : index
    %c0_133 = arith.constant 0 : index
    %c0_134 = arith.constant 0 : index
    %198 = vector.load %arg11[%c0_132, %c0_133, %c0_134] : memref<2x1x32xf32, #tpu.memory_space<vmem>>, vector<1x1x32xf32>
    %199 = vector.shape_cast %198 : vector<1x1x32xf32> to vector<1x32xf32>
    %cst_135 = arith.constant dense<0.000000e+00> : vector<5xf32>
    %200 = vector.multi_reduction <add>, %195, %cst_135 [1] : vector<5x32xf32> to vector<5xf32>
    %201 = vector.shape_cast %200 : vector<5xf32> to vector<5x1xf32>
    %cst_136 = arith.constant 3.200000e+01 : f32
    %202 = vector.broadcast %cst_136 : f32 to vector<5x1xf32>
    %203 = arith.divf %201, %202 : vector<5x1xf32>
    %204 = vector.broadcast %203 : vector<5x1xf32> to vector<5x32xf32>
    %205 = arith.subf %195, %204 : vector<5x32xf32>
    %206 = arith.mulf %205, %205 : vector<5x32xf32>
    %cst_137 = arith.constant dense<0.000000e+00> : vector<5xf32>
    %207 = vector.multi_reduction <add>, %206, %cst_137 [1] : vector<5x32xf32> to vector<5xf32>
    %208 = vector.shape_cast %207 : vector<5xf32> to vector<5x1xf32>
    %cst_138 = arith.constant 3.200000e+01 : f32
    %209 = vector.broadcast %cst_138 : f32 to vector<5x1xf32>
    %210 = arith.divf %208, %209 : vector<5x1xf32>
    %211 = vector.broadcast %203 : vector<5x1xf32> to vector<5x32xf32>
    %212 = arith.subf %195, %211 : vector<5x32xf32>
    %cst_139 = arith.constant 9.99999997E-7 : f32
    %213 = vector.broadcast %cst_139 : f32 to vector<5x1xf32>
    %214 = arith.addf %210, %213 : vector<5x1xf32>
    %215 = math.rsqrt %214 : vector<5x1xf32>
    %216 = vector.broadcast %215 : vector<5x1xf32> to vector<5x32xf32>
    %217 = arith.mulf %212, %216 : vector<5x32xf32>
    %218 = vector.broadcast %197 : vector<1x32xf32> to vector<5x32xf32>
    %219 = arith.mulf %217, %218 : vector<5x32xf32>
    %220 = vector.broadcast %199 : vector<1x32xf32> to vector<5x32xf32>
    %221 = arith.addf %219, %220 : vector<5x32xf32>
    %c0_140 = arith.constant 0 : index
    %c0_141 = arith.constant 0 : index
    %c0_142 = arith.constant 0 : index
    %222 = vector.load %arg12[%c0_140, %c0_141, %c0_142] : memref<2x32x128xf32, #tpu.memory_space<vmem>>, vector<1x32x128xf32>
    %223 = vector.shape_cast %222 : vector<1x32x128xf32> to vector<32x128xf32>
    %cst_143 = arith.constant dense<0.000000e+00> : vector<5x128xf32>
    %224 = tpu.matmul %221, %223, %cst_143 {dimension_numbers = #tpu.dot_dimension_numbers<[1], [0], [0], [1], [0, 0, 1, 1], [], []>} : vector<5x32xf32>, vector<32x128xf32>, vector<5x128xf32> -> vector<5x128xf32>
    %c0_144 = arith.constant 0 : index
    %c0_145 = arith.constant 0 : index
    %c0_146 = arith.constant 0 : index
    %225 = vector.load %arg13[%c0_144, %c0_145, %c0_146] : memref<2x1x128xf32, #tpu.memory_space<vmem>>, vector<1x1x128xf32>
    %226 = vector.shape_cast %225 : vector<1x1x128xf32> to vector<1x128xf32>
    %227 = vector.broadcast %226 : vector<1x128xf32> to vector<5x128xf32>
    %228 = arith.addf %224, %227 : vector<5x128xf32>
    %cst_147 = arith.constant 5.000000e-01 : f32
    %229 = vector.broadcast %cst_147 : f32 to vector<5x128xf32>
    %230 = arith.mulf %229, %228 : vector<5x128xf32>
    %cst_148 = arith.constant 0.707106769 : f32
    %231 = vector.broadcast %cst_148 : f32 to vector<5x128xf32>
    %232 = arith.mulf %228, %231 : vector<5x128xf32>
    %233 = math.absf %232 : vector<5x128xf32>
    %cst_149 = arith.constant 0.327591091 : f32
    %234 = vector.broadcast %cst_149 : f32 to vector<5x128xf32>
    %235 = arith.mulf %234, %233 : vector<5x128xf32>
    %cst_150 = arith.constant 1.000000e+00 : f32
    %236 = vector.broadcast %cst_150 : f32 to vector<5x128xf32>
    %237 = arith.addf %236, %235 : vector<5x128xf32>
    %cst_151 = arith.constant 1.000000e+00 : f32
    %238 = vector.broadcast %cst_151 : f32 to vector<5x128xf32>
    %239 = arith.divf %238, %237 : vector<5x128xf32>
    %cst_152 = arith.constant 1.06140542 : f32
    %240 = vector.broadcast %cst_152 : f32 to vector<5x128xf32>
    %241 = arith.mulf %239, %240 : vector<5x128xf32>
    %cst_153 = arith.constant -1.45315206 : f32
    %242 = vector.broadcast %cst_153 : f32 to vector<5x128xf32>
    %243 = arith.addf %242, %241 : vector<5x128xf32>
    %244 = arith.mulf %239, %243 : vector<5x128xf32>
    %cst_154 = arith.constant 1.42141378 : f32
    %245 = vector.broadcast %cst_154 : f32 to vector<5x128xf32>
    %246 = arith.addf %245, %244 : vector<5x128xf32>
    %247 = arith.mulf %239, %246 : vector<5x128xf32>
    %cst_155 = arith.constant -0.284496725 : f32
    %248 = vector.broadcast %cst_155 : f32 to vector<5x128xf32>
    %249 = arith.addf %248, %247 : vector<5x128xf32>
    %250 = arith.mulf %239, %249 : vector<5x128xf32>
    %cst_156 = arith.constant 0.254829586 : f32
    %251 = vector.broadcast %cst_156 : f32 to vector<5x128xf32>
    %252 = arith.addf %251, %250 : vector<5x128xf32>
    %253 = arith.mulf %239, %252 : vector<5x128xf32>
    %254 = arith.mulf %233, %233 : vector<5x128xf32>
    %cst_157 = arith.constant 0.000000e+00 : f32
    %255 = vector.broadcast %cst_157 : f32 to vector<5x128xf32>
    %256 = arith.subf %255, %254 : vector<5x128xf32>
    %257 = math.exp %256 : vector<5x128xf32>
    %258 = arith.mulf %253, %257 : vector<5x128xf32>
    %cst_158 = arith.constant 1.000000e+00 : f32
    %259 = vector.broadcast %cst_158 : f32 to vector<5x128xf32>
    %260 = arith.subf %259, %258 : vector<5x128xf32>
    %cst_159 = arith.constant 0.000000e+00 : f32
    %261 = vector.broadcast %cst_159 : f32 to vector<5x128xf32>
    %262 = arith.cmpf oge, %232, %261 : vector<5x128xf32>
    %cst_160 = arith.constant 0.000000e+00 : f32
    %263 = vector.broadcast %cst_160 : f32 to vector<5x128xf32>
    %264 = arith.subf %263, %260 : vector<5x128xf32>
    %265 = arith.select %262, %260, %264 : vector<5x128xi1>, vector<5x128xf32>
    %cst_161 = arith.constant 1.000000e+00 : f32
    %266 = vector.broadcast %cst_161 : f32 to vector<5x128xf32>
    %267 = arith.addf %266, %265 : vector<5x128xf32>
    %268 = arith.mulf %230, %267 : vector<5x128xf32>
    %c0_162 = arith.constant 0 : index
    %c0_163 = arith.constant 0 : index
    %c0_164 = arith.constant 0 : index
    %269 = vector.load %arg14[%c0_162, %c0_163, %c0_164] : memref<2x128x32xf32, #tpu.memory_space<vmem>>, vector<1x128x32xf32>
    %270 = vector.shape_cast %269 : vector<1x128x32xf32> to vector<128x32xf32>
    %cst_165 = arith.constant dense<0.000000e+00> : vector<5x32xf32>
    %271 = tpu.matmul %268, %270, %cst_165 {dimension_numbers = #tpu.dot_dimension_numbers<[1], [0], [0], [1], [0, 0, 1, 1], [], []>} : vector<5x128xf32>, vector<128x32xf32>, vector<5x32xf32> -> vector<5x32xf32>
    %272 = arith.addf %195, %271 : vector<5x32xf32>
    %c0_166 = arith.constant 0 : index
    %c0_167 = arith.constant 0 : index
    %c0_168 = arith.constant 0 : index
    %273 = vector.load %arg15[%c0_166, %c0_167, %c0_168] : memref<2x1x32xf32, #tpu.memory_space<vmem>>, vector<1x1x32xf32>
    %274 = vector.shape_cast %273 : vector<1x1x32xf32> to vector<1x32xf32>
    %275 = vector.broadcast %274 : vector<1x32xf32> to vector<5x32xf32>
    %276 = arith.addf %272, %275 : vector<5x32xf32>
    %c1_169 = arith.constant 1 : index
    %c0_170 = arith.constant 0 : index
    %c0_171 = arith.constant 0 : index
    %277 = vector.load %arg4[%c1_169, %c0_170, %c0_171] : memref<2x1x32xf32, #tpu.memory_space<vmem>>, vector<1x1x32xf32>
    %278 = vector.shape_cast %277 : vector<1x1x32xf32> to vector<1x32xf32>
    %c1_172 = arith.constant 1 : index
    %c0_173 = arith.constant 0 : index
    %c0_174 = arith.constant 0 : index
    %279 = vector.load %arg5[%c1_172, %c0_173, %c0_174] : memref<2x1x32xf32, #tpu.memory_space<vmem>>, vector<1x1x32xf32>
    %280 = vector.shape_cast %279 : vector<1x1x32xf32> to vector<1x32xf32>
    %cst_175 = arith.constant dense<0.000000e+00> : vector<5xf32>
    %281 = vector.multi_reduction <add>, %276, %cst_175 [1] : vector<5x32xf32> to vector<5xf32>
    %282 = vector.shape_cast %281 : vector<5xf32> to vector<5x1xf32>
    %cst_176 = arith.constant 3.200000e+01 : f32
    %283 = vector.broadcast %cst_176 : f32 to vector<5x1xf32>
    %284 = arith.divf %282, %283 : vector<5x1xf32>
    %285 = vector.broadcast %284 : vector<5x1xf32> to vector<5x32xf32>
    %286 = arith.subf %276, %285 : vector<5x32xf32>
    %287 = arith.mulf %286, %286 : vector<5x32xf32>
    %cst_177 = arith.constant dense<0.000000e+00> : vector<5xf32>
    %288 = vector.multi_reduction <add>, %287, %cst_177 [1] : vector<5x32xf32> to vector<5xf32>
    %289 = vector.shape_cast %288 : vector<5xf32> to vector<5x1xf32>
    %cst_178 = arith.constant 3.200000e+01 : f32
    %290 = vector.broadcast %cst_178 : f32 to vector<5x1xf32>
    %291 = arith.divf %289, %290 : vector<5x1xf32>
    %292 = vector.broadcast %284 : vector<5x1xf32> to vector<5x32xf32>
    %293 = arith.subf %276, %292 : vector<5x32xf32>
    %cst_179 = arith.constant 9.99999997E-7 : f32
    %294 = vector.broadcast %cst_179 : f32 to vector<5x1xf32>
    %295 = arith.addf %291, %294 : vector<5x1xf32>
    %296 = math.rsqrt %295 : vector<5x1xf32>
    %297 = vector.broadcast %296 : vector<5x1xf32> to vector<5x32xf32>
    %298 = arith.mulf %293, %297 : vector<5x32xf32>
    %299 = vector.broadcast %278 : vector<1x32xf32> to vector<5x32xf32>
    %300 = arith.mulf %298, %299 : vector<5x32xf32>
    %301 = vector.broadcast %280 : vector<1x32xf32> to vector<5x32xf32>
    %302 = arith.addf %300, %301 : vector<5x32xf32>
    %c12 = arith.constant 12 : index
    %c0_180 = arith.constant 0 : index
    %c0_181 = arith.constant 0 : index
    %303 = vector.load %arg6[%c12, %c0_180, %c0_181] : memref<24x32x8xf32, #tpu.memory_space<vmem>>, vector<1x32x8xf32>
    %304 = vector.shape_cast %303 : vector<1x32x8xf32> to vector<32x8xf32>
    %cst_182 = arith.constant dense<0.000000e+00> : vector<5x8xf32>
    %305 = tpu.matmul %302, %304, %cst_182 {dimension_numbers = #tpu.dot_dimension_numbers<[1], [0], [0], [1], [0, 0, 1, 1], [], []>} : vector<5x32xf32>, vector<32x8xf32>, vector<5x8xf32> -> vector<5x8xf32>
    %c12_183 = arith.constant 12 : index
    %c0_184 = arith.constant 0 : index
    %c0_185 = arith.constant 0 : index
    %306 = vector.load %arg7[%c12_183, %c0_184, %c0_185] : memref<24x1x8xf32, #tpu.memory_space<vmem>>, vector<1x1x8xf32>
    %307 = vector.shape_cast %306 : vector<1x1x8xf32> to vector<1x8xf32>
    %308 = vector.broadcast %307 : vector<1x8xf32> to vector<5x8xf32>
    %309 = arith.addf %305, %308 : vector<5x8xf32>
    %cst_186 = arith.constant 0.353553385 : f32
    %310 = vector.broadcast %cst_186 : f32 to vector<5x8xf32>
    %311 = arith.mulf %309, %310 : vector<5x8xf32>
    %c16 = arith.constant 16 : index
    %c0_187 = arith.constant 0 : index
    %c0_188 = arith.constant 0 : index
    %312 = vector.load %arg6[%c16, %c0_187, %c0_188] : memref<24x32x8xf32, #tpu.memory_space<vmem>>, vector<1x32x8xf32>
    %313 = vector.shape_cast %312 : vector<1x32x8xf32> to vector<32x8xf32>
    %cst_189 = arith.constant dense<0.000000e+00> : vector<5x8xf32>
    %314 = tpu.matmul %302, %313, %cst_189 {dimension_numbers = #tpu.dot_dimension_numbers<[1], [0], [0], [1], [0, 0, 1, 1], [], []>} : vector<5x32xf32>, vector<32x8xf32>, vector<5x8xf32> -> vector<5x8xf32>
    %c16_190 = arith.constant 16 : index
    %c0_191 = arith.constant 0 : index
    %c0_192 = arith.constant 0 : index
    %315 = vector.load %arg7[%c16_190, %c0_191, %c0_192] : memref<24x1x8xf32, #tpu.memory_space<vmem>>, vector<1x1x8xf32>
    %316 = vector.shape_cast %315 : vector<1x1x8xf32> to vector<1x8xf32>
    %317 = vector.broadcast %316 : vector<1x8xf32> to vector<5x8xf32>
    %318 = arith.addf %314, %317 : vector<5x8xf32>
    %c20 = arith.constant 20 : index
    %c0_193 = arith.constant 0 : index
    %c0_194 = arith.constant 0 : index
    %319 = vector.load %arg6[%c20, %c0_193, %c0_194] : memref<24x32x8xf32, #tpu.memory_space<vmem>>, vector<1x32x8xf32>
    %320 = vector.shape_cast %319 : vector<1x32x8xf32> to vector<32x8xf32>
    %cst_195 = arith.constant dense<0.000000e+00> : vector<5x8xf32>
    %321 = tpu.matmul %302, %320, %cst_195 {dimension_numbers = #tpu.dot_dimension_numbers<[1], [0], [0], [1], [0, 0, 1, 1], [], []>} : vector<5x32xf32>, vector<32x8xf32>, vector<5x8xf32> -> vector<5x8xf32>
    %c20_196 = arith.constant 20 : index
    %c0_197 = arith.constant 0 : index
    %c0_198 = arith.constant 0 : index
    %322 = vector.load %arg7[%c20_196, %c0_197, %c0_198] : memref<24x1x8xf32, #tpu.memory_space<vmem>>, vector<1x1x8xf32>
    %323 = vector.shape_cast %322 : vector<1x1x8xf32> to vector<1x8xf32>
    %324 = vector.broadcast %323 : vector<1x8xf32> to vector<5x8xf32>
    %325 = arith.addf %321, %324 : vector<5x8xf32>
    %326 = tpu.transpose %318, [1, 0] : vector<5x8xf32> -> vector<8x5xf32>
    %cst_199 = arith.constant dense<0.000000e+00> : vector<5x5xf32>
    %327 = tpu.matmul %311, %326, %cst_199 {dimension_numbers = #tpu.dot_dimension_numbers<[1], [0], [0], [1], [0, 0, 1, 1], [], []>} : vector<5x8xf32>, vector<8x5xf32>, vector<5x5xf32> -> vector<5x5xf32>
    %cst_200 = arith.constant dense<0xFF800000> : vector<5xf32>
    %328 = vector.multi_reduction <maximumf>, %327, %cst_200 [1] : vector<5x5xf32> to vector<5xf32>
    %329 = vector.shape_cast %328 : vector<5xf32> to vector<5x1xf32>
    %330 = vector.broadcast %329 : vector<5x1xf32> to vector<5x5xf32>
    %331 = arith.subf %327, %330 : vector<5x5xf32>
    %332 = math.exp %331 : vector<5x5xf32>
    %cst_201 = arith.constant dense<0.000000e+00> : vector<5xf32>
    %333 = vector.multi_reduction <add>, %332, %cst_201 [1] : vector<5x5xf32> to vector<5xf32>
    %334 = vector.shape_cast %333 : vector<5xf32> to vector<5x1xf32>
    %335 = tpu.reciprocal %334 {approx = true} : vector<5x1xf32> -> vector<5x1xf32>
    %336 = vector.broadcast %335 : vector<5x1xf32> to vector<5x5xf32>
    %337 = arith.mulf %332, %336 : vector<5x5xf32>
    %cst_202 = arith.constant dense<0.000000e+00> : vector<5x8xf32>
    %338 = tpu.matmul %337, %325, %cst_202 {dimension_numbers = #tpu.dot_dimension_numbers<[1], [0], [0], [1], [0, 0, 1, 1], [], []>} : vector<5x5xf32>, vector<5x8xf32>, vector<5x8xf32> -> vector<5x8xf32>
    %c4_203 = arith.constant 4 : index
    %c0_204 = arith.constant 0 : index
    %c0_205 = arith.constant 0 : index
    %339 = vector.load %arg8[%c4_203, %c0_204, %c0_205] : memref<8x8x32xf32, #tpu.memory_space<vmem>>, vector<1x8x32xf32>
    %340 = vector.shape_cast %339 : vector<1x8x32xf32> to vector<8x32xf32>
    %cst_206 = arith.constant dense<0.000000e+00> : vector<5x32xf32>
    %341 = tpu.matmul %338, %340, %cst_206 {dimension_numbers = #tpu.dot_dimension_numbers<[1], [0], [0], [1], [0, 0, 1, 1], [], []>} : vector<5x8xf32>, vector<8x32xf32>, vector<5x32xf32> -> vector<5x32xf32>
    %c13 = arith.constant 13 : index
    %c0_207 = arith.constant 0 : index
    %c0_208 = arith.constant 0 : index
    %342 = vector.load %arg6[%c13, %c0_207, %c0_208] : memref<24x32x8xf32, #tpu.memory_space<vmem>>, vector<1x32x8xf32>
    %343 = vector.shape_cast %342 : vector<1x32x8xf32> to vector<32x8xf32>
    %cst_209 = arith.constant dense<0.000000e+00> : vector<5x8xf32>
    %344 = tpu.matmul %302, %343, %cst_209 {dimension_numbers = #tpu.dot_dimension_numbers<[1], [0], [0], [1], [0, 0, 1, 1], [], []>} : vector<5x32xf32>, vector<32x8xf32>, vector<5x8xf32> -> vector<5x8xf32>
    %c13_210 = arith.constant 13 : index
    %c0_211 = arith.constant 0 : index
    %c0_212 = arith.constant 0 : index
    %345 = vector.load %arg7[%c13_210, %c0_211, %c0_212] : memref<24x1x8xf32, #tpu.memory_space<vmem>>, vector<1x1x8xf32>
    %346 = vector.shape_cast %345 : vector<1x1x8xf32> to vector<1x8xf32>
    %347 = vector.broadcast %346 : vector<1x8xf32> to vector<5x8xf32>
    %348 = arith.addf %344, %347 : vector<5x8xf32>
    %cst_213 = arith.constant 0.353553385 : f32
    %349 = vector.broadcast %cst_213 : f32 to vector<5x8xf32>
    %350 = arith.mulf %348, %349 : vector<5x8xf32>
    %c17 = arith.constant 17 : index
    %c0_214 = arith.constant 0 : index
    %c0_215 = arith.constant 0 : index
    %351 = vector.load %arg6[%c17, %c0_214, %c0_215] : memref<24x32x8xf32, #tpu.memory_space<vmem>>, vector<1x32x8xf32>
    %352 = vector.shape_cast %351 : vector<1x32x8xf32> to vector<32x8xf32>
    %cst_216 = arith.constant dense<0.000000e+00> : vector<5x8xf32>
    %353 = tpu.matmul %302, %352, %cst_216 {dimension_numbers = #tpu.dot_dimension_numbers<[1], [0], [0], [1], [0, 0, 1, 1], [], []>} : vector<5x32xf32>, vector<32x8xf32>, vector<5x8xf32> -> vector<5x8xf32>
    %c17_217 = arith.constant 17 : index
    %c0_218 = arith.constant 0 : index
    %c0_219 = arith.constant 0 : index
    %354 = vector.load %arg7[%c17_217, %c0_218, %c0_219] : memref<24x1x8xf32, #tpu.memory_space<vmem>>, vector<1x1x8xf32>
    %355 = vector.shape_cast %354 : vector<1x1x8xf32> to vector<1x8xf32>
    %356 = vector.broadcast %355 : vector<1x8xf32> to vector<5x8xf32>
    %357 = arith.addf %353, %356 : vector<5x8xf32>
    %c21 = arith.constant 21 : index
    %c0_220 = arith.constant 0 : index
    %c0_221 = arith.constant 0 : index
    %358 = vector.load %arg6[%c21, %c0_220, %c0_221] : memref<24x32x8xf32, #tpu.memory_space<vmem>>, vector<1x32x8xf32>
    %359 = vector.shape_cast %358 : vector<1x32x8xf32> to vector<32x8xf32>
    %cst_222 = arith.constant dense<0.000000e+00> : vector<5x8xf32>
    %360 = tpu.matmul %302, %359, %cst_222 {dimension_numbers = #tpu.dot_dimension_numbers<[1], [0], [0], [1], [0, 0, 1, 1], [], []>} : vector<5x32xf32>, vector<32x8xf32>, vector<5x8xf32> -> vector<5x8xf32>
    %c21_223 = arith.constant 21 : index
    %c0_224 = arith.constant 0 : index
    %c0_225 = arith.constant 0 : index
    %361 = vector.load %arg7[%c21_223, %c0_224, %c0_225] : memref<24x1x8xf32, #tpu.memory_space<vmem>>, vector<1x1x8xf32>
    %362 = vector.shape_cast %361 : vector<1x1x8xf32> to vector<1x8xf32>
    %363 = vector.broadcast %362 : vector<1x8xf32> to vector<5x8xf32>
    %364 = arith.addf %360, %363 : vector<5x8xf32>
    %365 = tpu.transpose %357, [1, 0] : vector<5x8xf32> -> vector<8x5xf32>
    %cst_226 = arith.constant dense<0.000000e+00> : vector<5x5xf32>
    %366 = tpu.matmul %350, %365, %cst_226 {dimension_numbers = #tpu.dot_dimension_numbers<[1], [0], [0], [1], [0, 0, 1, 1], [], []>} : vector<5x8xf32>, vector<8x5xf32>, vector<5x5xf32> -> vector<5x5xf32>
    %cst_227 = arith.constant dense<0xFF800000> : vector<5xf32>
    %367 = vector.multi_reduction <maximumf>, %366, %cst_227 [1] : vector<5x5xf32> to vector<5xf32>
    %368 = vector.shape_cast %367 : vector<5xf32> to vector<5x1xf32>
    %369 = vector.broadcast %368 : vector<5x1xf32> to vector<5x5xf32>
    %370 = arith.subf %366, %369 : vector<5x5xf32>
    %371 = math.exp %370 : vector<5x5xf32>
    %cst_228 = arith.constant dense<0.000000e+00> : vector<5xf32>
    %372 = vector.multi_reduction <add>, %371, %cst_228 [1] : vector<5x5xf32> to vector<5xf32>
    %373 = vector.shape_cast %372 : vector<5xf32> to vector<5x1xf32>
    %374 = tpu.reciprocal %373 {approx = true} : vector<5x1xf32> -> vector<5x1xf32>
    %375 = vector.broadcast %374 : vector<5x1xf32> to vector<5x5xf32>
    %376 = arith.mulf %371, %375 : vector<5x5xf32>
    %cst_229 = arith.constant dense<0.000000e+00> : vector<5x8xf32>
    %377 = tpu.matmul %376, %364, %cst_229 {dimension_numbers = #tpu.dot_dimension_numbers<[1], [0], [0], [1], [0, 0, 1, 1], [], []>} : vector<5x5xf32>, vector<5x8xf32>, vector<5x8xf32> -> vector<5x8xf32>
    %c5_230 = arith.constant 5 : index
    %c0_231 = arith.constant 0 : index
    %c0_232 = arith.constant 0 : index
    %378 = vector.load %arg8[%c5_230, %c0_231, %c0_232] : memref<8x8x32xf32, #tpu.memory_space<vmem>>, vector<1x8x32xf32>
    %379 = vector.shape_cast %378 : vector<1x8x32xf32> to vector<8x32xf32>
    %cst_233 = arith.constant dense<0.000000e+00> : vector<5x32xf32>
    %380 = tpu.matmul %377, %379, %cst_233 {dimension_numbers = #tpu.dot_dimension_numbers<[1], [0], [0], [1], [0, 0, 1, 1], [], []>} : vector<5x8xf32>, vector<8x32xf32>, vector<5x32xf32> -> vector<5x32xf32>
    %381 = arith.addf %341, %380 : vector<5x32xf32>
    %c14 = arith.constant 14 : index
    %c0_234 = arith.constant 0 : index
    %c0_235 = arith.constant 0 : index
    %382 = vector.load %arg6[%c14, %c0_234, %c0_235] : memref<24x32x8xf32, #tpu.memory_space<vmem>>, vector<1x32x8xf32>
    %383 = vector.shape_cast %382 : vector<1x32x8xf32> to vector<32x8xf32>
    %cst_236 = arith.constant dense<0.000000e+00> : vector<5x8xf32>
    %384 = tpu.matmul %302, %383, %cst_236 {dimension_numbers = #tpu.dot_dimension_numbers<[1], [0], [0], [1], [0, 0, 1, 1], [], []>} : vector<5x32xf32>, vector<32x8xf32>, vector<5x8xf32> -> vector<5x8xf32>
    %c14_237 = arith.constant 14 : index
    %c0_238 = arith.constant 0 : index
    %c0_239 = arith.constant 0 : index
    %385 = vector.load %arg7[%c14_237, %c0_238, %c0_239] : memref<24x1x8xf32, #tpu.memory_space<vmem>>, vector<1x1x8xf32>
    %386 = vector.shape_cast %385 : vector<1x1x8xf32> to vector<1x8xf32>
    %387 = vector.broadcast %386 : vector<1x8xf32> to vector<5x8xf32>
    %388 = arith.addf %384, %387 : vector<5x8xf32>
    %cst_240 = arith.constant 0.353553385 : f32
    %389 = vector.broadcast %cst_240 : f32 to vector<5x8xf32>
    %390 = arith.mulf %388, %389 : vector<5x8xf32>
    %c18 = arith.constant 18 : index
    %c0_241 = arith.constant 0 : index
    %c0_242 = arith.constant 0 : index
    %391 = vector.load %arg6[%c18, %c0_241, %c0_242] : memref<24x32x8xf32, #tpu.memory_space<vmem>>, vector<1x32x8xf32>
    %392 = vector.shape_cast %391 : vector<1x32x8xf32> to vector<32x8xf32>
    %cst_243 = arith.constant dense<0.000000e+00> : vector<5x8xf32>
    %393 = tpu.matmul %302, %392, %cst_243 {dimension_numbers = #tpu.dot_dimension_numbers<[1], [0], [0], [1], [0, 0, 1, 1], [], []>} : vector<5x32xf32>, vector<32x8xf32>, vector<5x8xf32> -> vector<5x8xf32>
    %c18_244 = arith.constant 18 : index
    %c0_245 = arith.constant 0 : index
    %c0_246 = arith.constant 0 : index
    %394 = vector.load %arg7[%c18_244, %c0_245, %c0_246] : memref<24x1x8xf32, #tpu.memory_space<vmem>>, vector<1x1x8xf32>
    %395 = vector.shape_cast %394 : vector<1x1x8xf32> to vector<1x8xf32>
    %396 = vector.broadcast %395 : vector<1x8xf32> to vector<5x8xf32>
    %397 = arith.addf %393, %396 : vector<5x8xf32>
    %c22 = arith.constant 22 : index
    %c0_247 = arith.constant 0 : index
    %c0_248 = arith.constant 0 : index
    %398 = vector.load %arg6[%c22, %c0_247, %c0_248] : memref<24x32x8xf32, #tpu.memory_space<vmem>>, vector<1x32x8xf32>
    %399 = vector.shape_cast %398 : vector<1x32x8xf32> to vector<32x8xf32>
    %cst_249 = arith.constant dense<0.000000e+00> : vector<5x8xf32>
    %400 = tpu.matmul %302, %399, %cst_249 {dimension_numbers = #tpu.dot_dimension_numbers<[1], [0], [0], [1], [0, 0, 1, 1], [], []>} : vector<5x32xf32>, vector<32x8xf32>, vector<5x8xf32> -> vector<5x8xf32>
    %c22_250 = arith.constant 22 : index
    %c0_251 = arith.constant 0 : index
    %c0_252 = arith.constant 0 : index
    %401 = vector.load %arg7[%c22_250, %c0_251, %c0_252] : memref<24x1x8xf32, #tpu.memory_space<vmem>>, vector<1x1x8xf32>
    %402 = vector.shape_cast %401 : vector<1x1x8xf32> to vector<1x8xf32>
    %403 = vector.broadcast %402 : vector<1x8xf32> to vector<5x8xf32>
    %404 = arith.addf %400, %403 : vector<5x8xf32>
    %405 = tpu.transpose %397, [1, 0] : vector<5x8xf32> -> vector<8x5xf32>
    %cst_253 = arith.constant dense<0.000000e+00> : vector<5x5xf32>
    %406 = tpu.matmul %390, %405, %cst_253 {dimension_numbers = #tpu.dot_dimension_numbers<[1], [0], [0], [1], [0, 0, 1, 1], [], []>} : vector<5x8xf32>, vector<8x5xf32>, vector<5x5xf32> -> vector<5x5xf32>
    %cst_254 = arith.constant dense<0xFF800000> : vector<5xf32>
    %407 = vector.multi_reduction <maximumf>, %406, %cst_254 [1] : vector<5x5xf32> to vector<5xf32>
    %408 = vector.shape_cast %407 : vector<5xf32> to vector<5x1xf32>
    %409 = vector.broadcast %408 : vector<5x1xf32> to vector<5x5xf32>
    %410 = arith.subf %406, %409 : vector<5x5xf32>
    %411 = math.exp %410 : vector<5x5xf32>
    %cst_255 = arith.constant dense<0.000000e+00> : vector<5xf32>
    %412 = vector.multi_reduction <add>, %411, %cst_255 [1] : vector<5x5xf32> to vector<5xf32>
    %413 = vector.shape_cast %412 : vector<5xf32> to vector<5x1xf32>
    %414 = tpu.reciprocal %413 {approx = true} : vector<5x1xf32> -> vector<5x1xf32>
    %415 = vector.broadcast %414 : vector<5x1xf32> to vector<5x5xf32>
    %416 = arith.mulf %411, %415 : vector<5x5xf32>
    %cst_256 = arith.constant dense<0.000000e+00> : vector<5x8xf32>
    %417 = tpu.matmul %416, %404, %cst_256 {dimension_numbers = #tpu.dot_dimension_numbers<[1], [0], [0], [1], [0, 0, 1, 1], [], []>} : vector<5x5xf32>, vector<5x8xf32>, vector<5x8xf32> -> vector<5x8xf32>
    %c6_257 = arith.constant 6 : index
    %c0_258 = arith.constant 0 : index
    %c0_259 = arith.constant 0 : index
    %418 = vector.load %arg8[%c6_257, %c0_258, %c0_259] : memref<8x8x32xf32, #tpu.memory_space<vmem>>, vector<1x8x32xf32>
    %419 = vector.shape_cast %418 : vector<1x8x32xf32> to vector<8x32xf32>
    %cst_260 = arith.constant dense<0.000000e+00> : vector<5x32xf32>
    %420 = tpu.matmul %417, %419, %cst_260 {dimension_numbers = #tpu.dot_dimension_numbers<[1], [0], [0], [1], [0, 0, 1, 1], [], []>} : vector<5x8xf32>, vector<8x32xf32>, vector<5x32xf32> -> vector<5x32xf32>
    %421 = arith.addf %381, %420 : vector<5x32xf32>
    %c15 = arith.constant 15 : index
    %c0_261 = arith.constant 0 : index
    %c0_262 = arith.constant 0 : index
    %422 = vector.load %arg6[%c15, %c0_261, %c0_262] : memref<24x32x8xf32, #tpu.memory_space<vmem>>, vector<1x32x8xf32>
    %423 = vector.shape_cast %422 : vector<1x32x8xf32> to vector<32x8xf32>
    %cst_263 = arith.constant dense<0.000000e+00> : vector<5x8xf32>
    %424 = tpu.matmul %302, %423, %cst_263 {dimension_numbers = #tpu.dot_dimension_numbers<[1], [0], [0], [1], [0, 0, 1, 1], [], []>} : vector<5x32xf32>, vector<32x8xf32>, vector<5x8xf32> -> vector<5x8xf32>
    %c15_264 = arith.constant 15 : index
    %c0_265 = arith.constant 0 : index
    %c0_266 = arith.constant 0 : index
    %425 = vector.load %arg7[%c15_264, %c0_265, %c0_266] : memref<24x1x8xf32, #tpu.memory_space<vmem>>, vector<1x1x8xf32>
    %426 = vector.shape_cast %425 : vector<1x1x8xf32> to vector<1x8xf32>
    %427 = vector.broadcast %426 : vector<1x8xf32> to vector<5x8xf32>
    %428 = arith.addf %424, %427 : vector<5x8xf32>
    %cst_267 = arith.constant 0.353553385 : f32
    %429 = vector.broadcast %cst_267 : f32 to vector<5x8xf32>
    %430 = arith.mulf %428, %429 : vector<5x8xf32>
    %c19 = arith.constant 19 : index
    %c0_268 = arith.constant 0 : index
    %c0_269 = arith.constant 0 : index
    %431 = vector.load %arg6[%c19, %c0_268, %c0_269] : memref<24x32x8xf32, #tpu.memory_space<vmem>>, vector<1x32x8xf32>
    %432 = vector.shape_cast %431 : vector<1x32x8xf32> to vector<32x8xf32>
    %cst_270 = arith.constant dense<0.000000e+00> : vector<5x8xf32>
    %433 = tpu.matmul %302, %432, %cst_270 {dimension_numbers = #tpu.dot_dimension_numbers<[1], [0], [0], [1], [0, 0, 1, 1], [], []>} : vector<5x32xf32>, vector<32x8xf32>, vector<5x8xf32> -> vector<5x8xf32>
    %c19_271 = arith.constant 19 : index
    %c0_272 = arith.constant 0 : index
    %c0_273 = arith.constant 0 : index
    %434 = vector.load %arg7[%c19_271, %c0_272, %c0_273] : memref<24x1x8xf32, #tpu.memory_space<vmem>>, vector<1x1x8xf32>
    %435 = vector.shape_cast %434 : vector<1x1x8xf32> to vector<1x8xf32>
    %436 = vector.broadcast %435 : vector<1x8xf32> to vector<5x8xf32>
    %437 = arith.addf %433, %436 : vector<5x8xf32>
    %c23 = arith.constant 23 : index
    %c0_274 = arith.constant 0 : index
    %c0_275 = arith.constant 0 : index
    %438 = vector.load %arg6[%c23, %c0_274, %c0_275] : memref<24x32x8xf32, #tpu.memory_space<vmem>>, vector<1x32x8xf32>
    %439 = vector.shape_cast %438 : vector<1x32x8xf32> to vector<32x8xf32>
    %cst_276 = arith.constant dense<0.000000e+00> : vector<5x8xf32>
    %440 = tpu.matmul %302, %439, %cst_276 {dimension_numbers = #tpu.dot_dimension_numbers<[1], [0], [0], [1], [0, 0, 1, 1], [], []>} : vector<5x32xf32>, vector<32x8xf32>, vector<5x8xf32> -> vector<5x8xf32>
    %c23_277 = arith.constant 23 : index
    %c0_278 = arith.constant 0 : index
    %c0_279 = arith.constant 0 : index
    %441 = vector.load %arg7[%c23_277, %c0_278, %c0_279] : memref<24x1x8xf32, #tpu.memory_space<vmem>>, vector<1x1x8xf32>
    %442 = vector.shape_cast %441 : vector<1x1x8xf32> to vector<1x8xf32>
    %443 = vector.broadcast %442 : vector<1x8xf32> to vector<5x8xf32>
    %444 = arith.addf %440, %443 : vector<5x8xf32>
    %445 = tpu.transpose %437, [1, 0] : vector<5x8xf32> -> vector<8x5xf32>
    %cst_280 = arith.constant dense<0.000000e+00> : vector<5x5xf32>
    %446 = tpu.matmul %430, %445, %cst_280 {dimension_numbers = #tpu.dot_dimension_numbers<[1], [0], [0], [1], [0, 0, 1, 1], [], []>} : vector<5x8xf32>, vector<8x5xf32>, vector<5x5xf32> -> vector<5x5xf32>
    %cst_281 = arith.constant dense<0xFF800000> : vector<5xf32>
    %447 = vector.multi_reduction <maximumf>, %446, %cst_281 [1] : vector<5x5xf32> to vector<5xf32>
    %448 = vector.shape_cast %447 : vector<5xf32> to vector<5x1xf32>
    %449 = vector.broadcast %448 : vector<5x1xf32> to vector<5x5xf32>
    %450 = arith.subf %446, %449 : vector<5x5xf32>
    %451 = math.exp %450 : vector<5x5xf32>
    %cst_282 = arith.constant dense<0.000000e+00> : vector<5xf32>
    %452 = vector.multi_reduction <add>, %451, %cst_282 [1] : vector<5x5xf32> to vector<5xf32>
    %453 = vector.shape_cast %452 : vector<5xf32> to vector<5x1xf32>
    %454 = tpu.reciprocal %453 {approx = true} : vector<5x1xf32> -> vector<5x1xf32>
    %455 = vector.broadcast %454 : vector<5x1xf32> to vector<5x5xf32>
    %456 = arith.mulf %451, %455 : vector<5x5xf32>
    %cst_283 = arith.constant dense<0.000000e+00> : vector<5x8xf32>
    %457 = tpu.matmul %456, %444, %cst_283 {dimension_numbers = #tpu.dot_dimension_numbers<[1], [0], [0], [1], [0, 0, 1, 1], [], []>} : vector<5x5xf32>, vector<5x8xf32>, vector<5x8xf32> -> vector<5x8xf32>
    %c7_284 = arith.constant 7 : index
    %c0_285 = arith.constant 0 : index
    %c0_286 = arith.constant 0 : index
    %458 = vector.load %arg8[%c7_284, %c0_285, %c0_286] : memref<8x8x32xf32, #tpu.memory_space<vmem>>, vector<1x8x32xf32>
    %459 = vector.shape_cast %458 : vector<1x8x32xf32> to vector<8x32xf32>
    %cst_287 = arith.constant dense<0.000000e+00> : vector<5x32xf32>
    %460 = tpu.matmul %457, %459, %cst_287 {dimension_numbers = #tpu.dot_dimension_numbers<[1], [0], [0], [1], [0, 0, 1, 1], [], []>} : vector<5x8xf32>, vector<8x32xf32>, vector<5x32xf32> -> vector<5x32xf32>
    %461 = arith.addf %421, %460 : vector<5x32xf32>
    %462 = arith.addf %276, %461 : vector<5x32xf32>
    %c1_288 = arith.constant 1 : index
    %c0_289 = arith.constant 0 : index
    %c0_290 = arith.constant 0 : index
    %463 = vector.load %arg9[%c1_288, %c0_289, %c0_290] : memref<2x1x32xf32, #tpu.memory_space<vmem>>, vector<1x1x32xf32>
    %464 = vector.shape_cast %463 : vector<1x1x32xf32> to vector<1x32xf32>
    %465 = vector.broadcast %464 : vector<1x32xf32> to vector<5x32xf32>
    %466 = arith.addf %462, %465 : vector<5x32xf32>
    %c1_291 = arith.constant 1 : index
    %c0_292 = arith.constant 0 : index
    %c0_293 = arith.constant 0 : index
    %467 = vector.load %arg10[%c1_291, %c0_292, %c0_293] : memref<2x1x32xf32, #tpu.memory_space<vmem>>, vector<1x1x32xf32>
    %468 = vector.shape_cast %467 : vector<1x1x32xf32> to vector<1x32xf32>
    %c1_294 = arith.constant 1 : index
    %c0_295 = arith.constant 0 : index
    %c0_296 = arith.constant 0 : index
    %469 = vector.load %arg11[%c1_294, %c0_295, %c0_296] : memref<2x1x32xf32, #tpu.memory_space<vmem>>, vector<1x1x32xf32>
    %470 = vector.shape_cast %469 : vector<1x1x32xf32> to vector<1x32xf32>
    %cst_297 = arith.constant dense<0.000000e+00> : vector<5xf32>
    %471 = vector.multi_reduction <add>, %466, %cst_297 [1] : vector<5x32xf32> to vector<5xf32>
    %472 = vector.shape_cast %471 : vector<5xf32> to vector<5x1xf32>
    %cst_298 = arith.constant 3.200000e+01 : f32
    %473 = vector.broadcast %cst_298 : f32 to vector<5x1xf32>
    %474 = arith.divf %472, %473 : vector<5x1xf32>
    %475 = vector.broadcast %474 : vector<5x1xf32> to vector<5x32xf32>
    %476 = arith.subf %466, %475 : vector<5x32xf32>
    %477 = arith.mulf %476, %476 : vector<5x32xf32>
    %cst_299 = arith.constant dense<0.000000e+00> : vector<5xf32>
    %478 = vector.multi_reduction <add>, %477, %cst_299 [1] : vector<5x32xf32> to vector<5xf32>
    %479 = vector.shape_cast %478 : vector<5xf32> to vector<5x1xf32>
    %cst_300 = arith.constant 3.200000e+01 : f32
    %480 = vector.broadcast %cst_300 : f32 to vector<5x1xf32>
    %481 = arith.divf %479, %480 : vector<5x1xf32>
    %482 = vector.broadcast %474 : vector<5x1xf32> to vector<5x32xf32>
    %483 = arith.subf %466, %482 : vector<5x32xf32>
    %cst_301 = arith.constant 9.99999997E-7 : f32
    %484 = vector.broadcast %cst_301 : f32 to vector<5x1xf32>
    %485 = arith.addf %481, %484 : vector<5x1xf32>
    %486 = math.rsqrt %485 : vector<5x1xf32>
    %487 = vector.broadcast %486 : vector<5x1xf32> to vector<5x32xf32>
    %488 = arith.mulf %483, %487 : vector<5x32xf32>
    %489 = vector.broadcast %468 : vector<1x32xf32> to vector<5x32xf32>
    %490 = arith.mulf %488, %489 : vector<5x32xf32>
    %491 = vector.broadcast %470 : vector<1x32xf32> to vector<5x32xf32>
    %492 = arith.addf %490, %491 : vector<5x32xf32>
    %c1_302 = arith.constant 1 : index
    %c0_303 = arith.constant 0 : index
    %c0_304 = arith.constant 0 : index
    %493 = vector.load %arg12[%c1_302, %c0_303, %c0_304] : memref<2x32x128xf32, #tpu.memory_space<vmem>>, vector<1x32x128xf32>
    %494 = vector.shape_cast %493 : vector<1x32x128xf32> to vector<32x128xf32>
    %cst_305 = arith.constant dense<0.000000e+00> : vector<5x128xf32>
    %495 = tpu.matmul %492, %494, %cst_305 {dimension_numbers = #tpu.dot_dimension_numbers<[1], [0], [0], [1], [0, 0, 1, 1], [], []>} : vector<5x32xf32>, vector<32x128xf32>, vector<5x128xf32> -> vector<5x128xf32>
    %c1_306 = arith.constant 1 : index
    %c0_307 = arith.constant 0 : index
    %c0_308 = arith.constant 0 : index
    %496 = vector.load %arg13[%c1_306, %c0_307, %c0_308] : memref<2x1x128xf32, #tpu.memory_space<vmem>>, vector<1x1x128xf32>
    %497 = vector.shape_cast %496 : vector<1x1x128xf32> to vector<1x128xf32>
    %498 = vector.broadcast %497 : vector<1x128xf32> to vector<5x128xf32>
    %499 = arith.addf %495, %498 : vector<5x128xf32>
    %cst_309 = arith.constant 5.000000e-01 : f32
    %500 = vector.broadcast %cst_309 : f32 to vector<5x128xf32>
    %501 = arith.mulf %500, %499 : vector<5x128xf32>
    %cst_310 = arith.constant 0.707106769 : f32
    %502 = vector.broadcast %cst_310 : f32 to vector<5x128xf32>
    %503 = arith.mulf %499, %502 : vector<5x128xf32>
    %504 = math.absf %503 : vector<5x128xf32>
    %cst_311 = arith.constant 0.327591091 : f32
    %505 = vector.broadcast %cst_311 : f32 to vector<5x128xf32>
    %506 = arith.mulf %505, %504 : vector<5x128xf32>
    %cst_312 = arith.constant 1.000000e+00 : f32
    %507 = vector.broadcast %cst_312 : f32 to vector<5x128xf32>
    %508 = arith.addf %507, %506 : vector<5x128xf32>
    %cst_313 = arith.constant 1.000000e+00 : f32
    %509 = vector.broadcast %cst_313 : f32 to vector<5x128xf32>
    %510 = arith.divf %509, %508 : vector<5x128xf32>
    %cst_314 = arith.constant 1.06140542 : f32
    %511 = vector.broadcast %cst_314 : f32 to vector<5x128xf32>
    %512 = arith.mulf %510, %511 : vector<5x128xf32>
    %cst_315 = arith.constant -1.45315206 : f32
    %513 = vector.broadcast %cst_315 : f32 to vector<5x128xf32>
    %514 = arith.addf %513, %512 : vector<5x128xf32>
    %515 = arith.mulf %510, %514 : vector<5x128xf32>
    %cst_316 = arith.constant 1.42141378 : f32
    %516 = vector.broadcast %cst_316 : f32 to vector<5x128xf32>
    %517 = arith.addf %516, %515 : vector<5x128xf32>
    %518 = arith.mulf %510, %517 : vector<5x128xf32>
    %cst_317 = arith.constant -0.284496725 : f32
    %519 = vector.broadcast %cst_317 : f32 to vector<5x128xf32>
    %520 = arith.addf %519, %518 : vector<5x128xf32>
    %521 = arith.mulf %510, %520 : vector<5x128xf32>
    %cst_318 = arith.constant 0.254829586 : f32
    %522 = vector.broadcast %cst_318 : f32 to vector<5x128xf32>
    %523 = arith.addf %522, %521 : vector<5x128xf32>
    %524 = arith.mulf %510, %523 : vector<5x128xf32>
    %525 = arith.mulf %504, %504 : vector<5x128xf32>
    %cst_319 = arith.constant 0.000000e+00 : f32
    %526 = vector.broadcast %cst_319 : f32 to vector<5x128xf32>
    %527 = arith.subf %526, %525 : vector<5x128xf32>
    %528 = math.exp %527 : vector<5x128xf32>
    %529 = arith.mulf %524, %528 : vector<5x128xf32>
    %cst_320 = arith.constant 1.000000e+00 : f32
    %530 = vector.broadcast %cst_320 : f32 to vector<5x128xf32>
    %531 = arith.subf %530, %529 : vector<5x128xf32>
    %cst_321 = arith.constant 0.000000e+00 : f32
    %532 = vector.broadcast %cst_321 : f32 to vector<5x128xf32>
    %533 = arith.cmpf oge, %503, %532 : vector<5x128xf32>
    %cst_322 = arith.constant 0.000000e+00 : f32
    %534 = vector.broadcast %cst_322 : f32 to vector<5x128xf32>
    %535 = arith.subf %534, %531 : vector<5x128xf32>
    %536 = arith.select %533, %531, %535 : vector<5x128xi1>, vector<5x128xf32>
    %cst_323 = arith.constant 1.000000e+00 : f32
    %537 = vector.broadcast %cst_323 : f32 to vector<5x128xf32>
    %538 = arith.addf %537, %536 : vector<5x128xf32>
    %539 = arith.mulf %501, %538 : vector<5x128xf32>
    %c1_324 = arith.constant 1 : index
    %c0_325 = arith.constant 0 : index
    %c0_326 = arith.constant 0 : index
    %540 = vector.load %arg14[%c1_324, %c0_325, %c0_326] : memref<2x128x32xf32, #tpu.memory_space<vmem>>, vector<1x128x32xf32>
    %541 = vector.shape_cast %540 : vector<1x128x32xf32> to vector<128x32xf32>
    %cst_327 = arith.constant dense<0.000000e+00> : vector<5x32xf32>
    %542 = tpu.matmul %539, %541, %cst_327 {dimension_numbers = #tpu.dot_dimension_numbers<[1], [0], [0], [1], [0, 0, 1, 1], [], []>} : vector<5x128xf32>, vector<128x32xf32>, vector<5x32xf32> -> vector<5x32xf32>
    %543 = arith.addf %466, %542 : vector<5x32xf32>
    %c1_328 = arith.constant 1 : index
    %c0_329 = arith.constant 0 : index
    %c0_330 = arith.constant 0 : index
    %544 = vector.load %arg15[%c1_328, %c0_329, %c0_330] : memref<2x1x32xf32, #tpu.memory_space<vmem>>, vector<1x1x32xf32>
    %545 = vector.shape_cast %544 : vector<1x1x32xf32> to vector<1x32xf32>
    %546 = vector.broadcast %545 : vector<1x32xf32> to vector<5x32xf32>
    %547 = arith.addf %543, %546 : vector<5x32xf32>
    %c0_331 = arith.constant 0 : index
    %c0_332 = arith.constant 0 : index
    %548 = vector.load %arg16[%c0_331, %c0_332] : memref<1x32xf32, #tpu.memory_space<vmem>>, vector<1x32xf32>
    %c0_333 = arith.constant 0 : index
    %c0_334 = arith.constant 0 : index
    %549 = vector.load %arg17[%c0_333, %c0_334] : memref<1x32xf32, #tpu.memory_space<vmem>>, vector<1x32xf32>
    %cst_335 = arith.constant dense<0.000000e+00> : vector<5xf32>
    %550 = vector.multi_reduction <add>, %547, %cst_335 [1] : vector<5x32xf32> to vector<5xf32>
    %551 = vector.shape_cast %550 : vector<5xf32> to vector<5x1xf32>
    %cst_336 = arith.constant 3.200000e+01 : f32
    %552 = vector.broadcast %cst_336 : f32 to vector<5x1xf32>
    %553 = arith.divf %551, %552 : vector<5x1xf32>
    %554 = vector.broadcast %553 : vector<5x1xf32> to vector<5x32xf32>
    %555 = arith.subf %547, %554 : vector<5x32xf32>
    %556 = arith.mulf %555, %555 : vector<5x32xf32>
    %cst_337 = arith.constant dense<0.000000e+00> : vector<5xf32>
    %557 = vector.multi_reduction <add>, %556, %cst_337 [1] : vector<5x32xf32> to vector<5xf32>
    %558 = vector.shape_cast %557 : vector<5xf32> to vector<5x1xf32>
    %cst_338 = arith.constant 3.200000e+01 : f32
    %559 = vector.broadcast %cst_338 : f32 to vector<5x1xf32>
    %560 = arith.divf %558, %559 : vector<5x1xf32>
    %561 = vector.broadcast %553 : vector<5x1xf32> to vector<5x32xf32>
    %562 = arith.subf %547, %561 : vector<5x32xf32>
    %cst_339 = arith.constant 9.99999997E-7 : f32
    %563 = vector.broadcast %cst_339 : f32 to vector<5x1xf32>
    %564 = arith.addf %560, %563 : vector<5x1xf32>
    %565 = math.rsqrt %564 : vector<5x1xf32>
    %566 = vector.broadcast %565 : vector<5x1xf32> to vector<5x32xf32>
    %567 = arith.mulf %562, %566 : vector<5x32xf32>
    %568 = vector.broadcast %548 : vector<1x32xf32> to vector<5x32xf32>
    %569 = arith.mulf %567, %568 : vector<5x32xf32>
    %570 = vector.broadcast %549 : vector<1x32xf32> to vector<5x32xf32>
    %571 = arith.addf %569, %570 : vector<5x32xf32>
    %572 = vector.extract_strided_slice %571 {offsets = [0, 0], sizes = [1, 32], strides = [1, 1]} : vector<5x32xf32> to vector<1x32xf32>
    %c0_340 = arith.constant 0 : index
    %c0_341 = arith.constant 0 : index
    %573 = vector.load %arg18[%c0_340, %c0_341] : memref<1x32xf32, #tpu.memory_space<vmem>>, vector<1x32xf32>
    %574 = arith.mulf %572, %573 : vector<1x32xf32>
    %cst_342 = arith.constant dense<0.000000e+00> : vector<1xf32>
    %575 = vector.multi_reduction <add>, %574, %cst_342 [1] : vector<1x32xf32> to vector<1xf32>
    %576 = vector.shape_cast %575 : vector<1xf32> to vector<1x1xf32>
    %c0_343 = arith.constant 0 : index
    %c0_344 = arith.constant 0 : index
    %577 = vector.load %arg19[%c0_343, %c0_344] : memref<1x1xf32, #tpu.memory_space<vmem>>, vector<1x1xf32>
    %578 = arith.addf %576, %577 : vector<1x1xf32>
    %cst_345 = arith.constant dense<0.000000e+00> : vector<1xf32>
    %579 = vector.multi_reduction <add>, %572, %cst_345 [1] : vector<1x32xf32> to vector<1xf32>
    %580 = vector.shape_cast %579 : vector<1xf32> to vector<1x1xf32>
    %581 = arith.addf %580, %578 : vector<1x1xf32>
    %cst_346 = arith.constant 3.300000e+01 : f32
    %582 = vector.broadcast %cst_346 : f32 to vector<1x1xf32>
    %583 = arith.divf %581, %582 : vector<1x1xf32>
    %584 = vector.broadcast %583 : vector<1x1xf32> to vector<1x32xf32>
    %585 = arith.subf %572, %584 : vector<1x32xf32>
    %586 = arith.subf %578, %583 : vector<1x1xf32>
    %587 = arith.mulf %585, %585 : vector<1x32xf32>
    %cst_347 = arith.constant dense<0.000000e+00> : vector<1xf32>
    %588 = vector.multi_reduction <add>, %587, %cst_347 [1] : vector<1x32xf32> to vector<1xf32>
    %589 = vector.shape_cast %588 : vector<1xf32> to vector<1x1xf32>
    %590 = arith.mulf %586, %586 : vector<1x1xf32>
    %591 = arith.addf %589, %590 : vector<1x1xf32>
    %cst_348 = arith.constant 3.300000e+01 : f32
    %592 = vector.broadcast %cst_348 : f32 to vector<1x1xf32>
    %593 = arith.divf %591, %592 : vector<1x1xf32>
    %cst_349 = arith.constant 9.99999974E-6 : f32
    %594 = vector.broadcast %cst_349 : f32 to vector<1x1xf32>
    %595 = arith.addf %593, %594 : vector<1x1xf32>
    %596 = math.rsqrt %595 : vector<1x1xf32>
    %597 = vector.broadcast %596 : vector<1x1xf32> to vector<1x32xf32>
    %598 = arith.mulf %585, %597 : vector<1x32xf32>
    %c0_350 = arith.constant 0 : index
    %c0_351 = arith.constant 0 : index
    %599 = vector.load %arg20[%c0_350, %c0_351] : memref<1x32xf32, #tpu.memory_space<vmem>>, vector<1x32xf32>
    %600 = arith.mulf %598, %599 : vector<1x32xf32>
    %c0_352 = arith.constant 0 : index
    %c0_353 = arith.constant 0 : index
    %601 = vector.load %arg22[%c0_352, %c0_353] : memref<1x32xf32, #tpu.memory_space<vmem>>, vector<1x32xf32>
    %602 = arith.addf %600, %601 : vector<1x32xf32>
    %603 = arith.mulf %586, %596 : vector<1x1xf32>
    %c0_354 = arith.constant 0 : index
    %c0_355 = arith.constant 0 : index
    %604 = vector.load %arg21[%c0_354, %c0_355] : memref<1x1xf32, #tpu.memory_space<vmem>>, vector<1x1xf32>
    %605 = arith.mulf %603, %604 : vector<1x1xf32>
    %c0_356 = arith.constant 0 : index
    %c0_357 = arith.constant 0 : index
    %606 = vector.load %arg23[%c0_356, %c0_357] : memref<1x1xf32, #tpu.memory_space<vmem>>, vector<1x1xf32>
    %607 = arith.addf %605, %606 : vector<1x1xf32>
    %c0_358 = arith.constant 0 : index
    %c0_359 = arith.constant 0 : index
    %608 = vector.load %arg24[%c0_358, %c0_359] : memref<32x3xf32, #tpu.memory_space<vmem>>, vector<32x3xf32>
    %cst_360 = arith.constant dense<0.000000e+00> : vector<1x3xf32>
    %609 = tpu.matmul %602, %608, %cst_360 {dimension_numbers = #tpu.dot_dimension_numbers<[1], [0], [0], [1], [0, 0, 1, 1], [], []>} : vector<1x32xf32>, vector<32x3xf32>, vector<1x3xf32> -> vector<1x3xf32>
    %c0_361 = arith.constant 0 : index
    %c0_362 = arith.constant 0 : index
    %610 = vector.load %arg25[%c0_361, %c0_362] : memref<1x3xf32, #tpu.memory_space<vmem>>, vector<1x3xf32>
    %611 = vector.broadcast %607 : vector<1x1xf32> to vector<1x3xf32>
    %612 = arith.mulf %611, %610 : vector<1x3xf32>
    %613 = arith.addf %609, %612 : vector<1x3xf32>
    %c0_363 = arith.constant 0 : index
    %c0_364 = arith.constant 0 : index
    %614 = vector.load %arg26[%c0_363, %c0_364] : memref<1x3xf32, #tpu.memory_space<vmem>>, vector<1x3xf32>
    %615 = arith.addf %613, %614 : vector<1x3xf32>
    %c0_365 = arith.constant 0 : index
    %c0_366 = arith.constant 0 : index
    %c0_367 = arith.constant 0 : index
    %616 = vector.load %arg27[%c0_365, %c0_366, %c0_367] : memref<1x1x3xf32, #tpu.memory_space<vmem>>, vector<1x1x3xf32>
    %617 = vector.shape_cast %616 : vector<1x1x3xf32> to vector<1x3xf32>
    %618 = vector.shape_cast %615 : vector<1x3xf32> to vector<1x1x3xf32>
    tpu.vector_store %arg27[%c0_365, %c0_366, %c0_367], %618 {strides = array<i32>} : memref<1x1x3xf32, #tpu.memory_space<vmem>>, vector<1x1x3xf32>,
    %c0_368 = arith.constant 0 : index
    %c0_369 = arith.constant 0 : index
    %c0_370 = arith.constant 0 : index
    %619 = vector.load %arg28[%c0_368, %c0_369, %c0_370] : memref<1x1x1xf32, #tpu.memory_space<vmem>>, vector<1x1x1xf32>
    %620 = vector.shape_cast %619 : vector<1x1x1xf32> to vector<1x1xf32>
    %621 = vector.shape_cast %578 : vector<1x1xf32> to vector<1x1x1xf32>
    tpu.vector_store %arg28[%c0_368, %c0_369, %c0_370], %621 {strides = array<i32>} : memref<1x1x1xf32, #tpu.memory_space<vmem>>, vector<1x1x1xf32>,
    return
  }
  func.func @transform_0(%arg0: i32) -> (i32, i32, i32) {
    %c0_i32 = arith.constant 0 : i32
    %c0_i32_0 = arith.constant 0 : i32
    %c0_i32_1 = arith.constant 0 : i32
    return %arg0, %c0_i32, %c0_i32_0 : i32, i32, i32
  }
  func.func @transform_1(%arg0: i32) -> (i32, i32) {
    %c0_i32 = arith.constant 0 : i32
    %c0_i32_0 = arith.constant 0 : i32
    %c0_i32_1 = arith.constant 0 : i32
    return %c0_i32, %c0_i32_0 : i32, i32
  }
  func.func @transform_2(%arg0: i32) -> (i32, i32) {
    %c0_i32 = arith.constant 0 : i32
    %c0_i32_0 = arith.constant 0 : i32
    %c0_i32_1 = arith.constant 0 : i32
    return %c0_i32, %c0_i32_0 : i32, i32
  }
  func.func @transform_3(%arg0: i32) -> (i32, i32, i32) {
    %c0_i32 = arith.constant 0 : i32
    %c0_i32_0 = arith.constant 0 : i32
    %c0_i32_1 = arith.constant 0 : i32
    %c0_i32_2 = arith.constant 0 : i32
    return %c0_i32, %c0_i32_0, %c0_i32_1 : i32, i32, i32
  }
  func.func @transform_4(%arg0: i32) -> (i32, i32, i32) {
    %c0_i32 = arith.constant 0 : i32
    %c0_i32_0 = arith.constant 0 : i32
    %c0_i32_1 = arith.constant 0 : i32
    %c0_i32_2 = arith.constant 0 : i32
    return %c0_i32, %c0_i32_0, %c0_i32_1 : i32, i32, i32
  }
  func.func @transform_5(%arg0: i32) -> (i32, i32, i32) {
    %c0_i32 = arith.constant 0 : i32
    %c0_i32_0 = arith.constant 0 : i32
    %c0_i32_1 = arith.constant 0 : i32
    %c0_i32_2 = arith.constant 0 : i32
    return %c0_i32, %c0_i32_0, %c0_i32_1 : i32, i32, i32
  }
  func.func @transform_6(%arg0: i32) -> (i32, i32, i32) {
    %c0_i32 = arith.constant 0 : i32
    %c0_i32_0 = arith.constant 0 : i32
    %c0_i32_1 = arith.constant 0 : i32
    %c0_i32_2 = arith.constant 0 : i32
    return %c0_i32, %c0_i32_0, %c0_i32_1 : i32, i32, i32
  }
  func.func @transform_7(%arg0: i32) -> (i32, i32, i32) {
    %c0_i32 = arith.constant 0 : i32
    %c0_i32_0 = arith.constant 0 : i32
    %c0_i32_1 = arith.constant 0 : i32
    %c0_i32_2 = arith.constant 0 : i32
    return %c0_i32, %c0_i32_0, %c0_i32_1 : i32, i32, i32
  }
  func.func @transform_8(%arg0: i32) -> (i32, i32, i32) {
    %c0_i32 = arith.constant 0 : i32
    %c0_i32_0 = arith.constant 0 : i32
    %c0_i32_1 = arith.constant 0 : i32
    %c0_i32_2 = arith.constant 0 : i32
    return %c0_i32, %c0_i32_0, %c0_i32_1 : i32, i32, i32
  }
  func.func @transform_9(%arg0: i32) -> (i32, i32, i32) {
    %c0_i32 = arith.constant 0 : i32
    %c0_i32_0 = arith.constant 0 : i32
    %c0_i32_1 = arith.constant 0 : i32
    %c0_i32_2 = arith.constant 0 : i32
    return %c0_i32, %c0_i32_0, %c0_i32_1 : i32, i32, i32
  }
  func.func @transform_10(%arg0: i32) -> (i32, i32, i32) {
    %c0_i32 = arith.constant 0 : i32
    %c0_i32_0 = arith.constant 0 : i32
    %c0_i32_1 = arith.constant 0 : i32
    %c0_i32_2 = arith.constant 0 : i32
    return %c0_i32, %c0_i32_0, %c0_i32_1 : i32, i32, i32
  }
  func.func @transform_11(%arg0: i32) -> (i32, i32, i32) {
    %c0_i32 = arith.constant 0 : i32
    %c0_i32_0 = arith.constant 0 : i32
    %c0_i32_1 = arith.constant 0 : i32
    %c0_i32_2 = arith.constant 0 : i32
    return %c0_i32, %c0_i32_0, %c0_i32_1 : i32, i32, i32
  }
  func.func @transform_12(%arg0: i32) -> (i32, i32, i32) {
    %c0_i32 = arith.constant 0 : i32
    %c0_i32_0 = arith.constant 0 : i32
    %c0_i32_1 = arith.constant 0 : i32
    %c0_i32_2 = arith.constant 0 : i32
    return %c0_i32, %c0_i32_0, %c0_i32_1 : i32, i32, i32
  }
  func.func @transform_13(%arg0: i32) -> (i32, i32, i32) {
    %c0_i32 = arith.constant 0 : i32
    %c0_i32_0 = arith.constant 0 : i32
    %c0_i32_1 = arith.constant 0 : i32
    %c0_i32_2 = arith.constant 0 : i32
    return %c0_i32, %c0_i32_0, %c0_i32_1 : i32, i32, i32
  }
  func.func @transform_14(%arg0: i32) -> (i32, i32, i32) {
    %c0_i32 = arith.constant 0 : i32
    %c0_i32_0 = arith.constant 0 : i32
    %c0_i32_1 = arith.constant 0 : i32
    %c0_i32_2 = arith.constant 0 : i32
    return %c0_i32, %c0_i32_0, %c0_i32_1 : i32, i32, i32
  }
  func.func @transform_15(%arg0: i32) -> (i32, i32) {
    %c0_i32 = arith.constant 0 : i32
    %c0_i32_0 = arith.constant 0 : i32
    %c0_i32_1 = arith.constant 0 : i32
    return %c0_i32, %c0_i32_0 : i32, i32
  }
  func.func @transform_16(%arg0: i32) -> (i32, i32) {
    %c0_i32 = arith.constant 0 : i32
    %c0_i32_0 = arith.constant 0 : i32
    %c0_i32_1 = arith.constant 0 : i32
    return %c0_i32, %c0_i32_0 : i32, i32
  }
  func.func @transform_17(%arg0: i32) -> (i32, i32) {
    %c0_i32 = arith.constant 0 : i32
    %c0_i32_0 = arith.constant 0 : i32
    %c0_i32_1 = arith.constant 0 : i32
    return %c0_i32, %c0_i32_0 : i32, i32
  }
  func.func @transform_18(%arg0: i32) -> (i32, i32) {
    %c0_i32 = arith.constant 0 : i32
    %c0_i32_0 = arith.constant 0 : i32
    %c0_i32_1 = arith.constant 0 : i32
    return %c0_i32, %c0_i32_0 : i32, i32
  }
  func.func @transform_19(%arg0: i32) -> (i32, i32) {
    %c0_i32 = arith.constant 0 : i32
    %c0_i32_0 = arith.constant 0 : i32
    %c0_i32_1 = arith.constant 0 : i32
    return %c0_i32, %c0_i32_0 : i32, i32
  }
  func.func @transform_20(%arg0: i32) -> (i32, i32) {
    %c0_i32 = arith.constant 0 : i32
    %c0_i32_0 = arith.constant 0 : i32
    %c0_i32_1 = arith.constant 0 : i32
    return %c0_i32, %c0_i32_0 : i32, i32
  }
  func.func @transform_21(%arg0: i32) -> (i32, i32) {
    %c0_i32 = arith.constant 0 : i32
    %c0_i32_0 = arith.constant 0 : i32
    %c0_i32_1 = arith.constant 0 : i32
    return %c0_i32, %c0_i32_0 : i32, i32
  }
  func.func @transform_22(%arg0: i32) -> (i32, i32) {
    %c0_i32 = arith.constant 0 : i32
    %c0_i32_0 = arith.constant 0 : i32
    %c0_i32_1 = arith.constant 0 : i32
    return %c0_i32, %c0_i32_0 : i32, i32
  }
  func.func @transform_23(%arg0: i32) -> (i32, i32) {
    %c0_i32 = arith.constant 0 : i32
    %c0_i32_0 = arith.constant 0 : i32
    %c0_i32_1 = arith.constant 0 : i32
    return %c0_i32, %c0_i32_0 : i32, i32
  }
  func.func @transform_24(%arg0: i32) -> (i32, i32) {
    %c0_i32 = arith.constant 0 : i32
    %c0_i32_0 = arith.constant 0 : i32
    %c0_i32_1 = arith.constant 0 : i32
    return %c0_i32, %c0_i32_0 : i32, i32
  }
  func.func @transform_25(%arg0: i32) -> (i32, i32) {
    %c0_i32 = arith.constant 0 : i32
    %c0_i32_0 = arith.constant 0 : i32
    %c0_i32_1 = arith.constant 0 : i32
    return %c0_i32, %c0_i32_0 : i32, i32
  }
  func.func @transform_26(%arg0: i32) -> (i32, i32, i32) {
    %c0_i32 = arith.constant 0 : i32
    %c0_i32_0 = arith.constant 0 : i32
    %c0_i32_1 = arith.constant 0 : i32
    return %arg0, %c0_i32, %c0_i32_0 : i32, i32, i32
  }
  func.func @transform_27(%arg0: i32) -> (i32, i32, i32) {
    %c0_i32 = arith.constant 0 : i32
    %c0_i32_0 = arith.constant 0 : i32
    %c0_i32_1 = arith.constant 0 : i32
    return %arg0, %c0_i32, %c0_i32_0 : i32, i32, i32
  }
}

</mosaic_0001>

<bundles_post_ra>
// kernel: _lambda_.1
= control target key start
LH: loop header
LB: loop body
LE: loop exit
PB: predicated region body
PF: predicated region fallthrough
CT: control target
= control target key end

     0   :  { %s4899_s0 = inlined_call_operand.vmem [shape: f32[2,5,768], index: 0, kind: input, shape index: {}]   ;;  %s4900_s1 = inlined_call_operand.vmem [shape: f32[768,32], index: 1, kind: input, shape index: {}]   ;;  %s4901_s2 = inlined_call_operand.vmem [shape: f32[5,32], index: 2, kind: input, shape index: {}]   ;;  %s4902_s3 = inlined_call_operand.vmem [shape: f32[2,1,32], index: 3, kind: input, shape index: {}, may-alias: {3,9}]   ;;  %s4903_s4 = inlined_call_operand.vmem [shape: f32[2,1,32], index: 4, kind: input, shape index: {}, may-alias: {4,8,10,14}]   ;;  %s4904_s5 = inlined_call_operand.vmem [shape: f32[24,32,8], index: 5, kind: input, shape index: {}]   ;;  %s4905_s6 = inlined_call_operand.vmem [shape: f32[24,1,8], index: 6, kind: input, shape index: {}]   ;;  %s4906_s7 = inlined_call_operand.vmem [shape: f32[8,8,32], index: 7, kind: input, shape index: {}]   ;;  %s4907_s8 = inlined_call_operand.vmem [shape: f32[2,1,32], index: 8, kind: input, shape index: {}, may-alias: {4,8,10,14}]   ;;  %s4908_s9 = inlined_call_operand.vmem [shape: f32[2,1,32], index: 9, kind: input, shape index: {}, may-alias: {3,9}]   ;;  %s4909_s10 = inlined_call_operand.vmem [shape: f32[2,1,32], index: 10, kind: input, shape index: {}, may-alias: {4,8,10,14}]   ;;  %s4910_s11 = inlined_call_operand.vmem [shape: f32[2,32,128], index: 11, kind: input, shape index: {}]   ;;  %s4911_s12 = inlined_call_operand.vmem [shape: f32[2,1,128], index: 12, kind: input, shape index: {}]   ;;  %s4912_s13 = inlined_call_operand.vmem [shape: f32[2,128,32], index: 13, kind: input, shape index: {}]   ;;  %s4913_s14 = inlined_call_operand.vmem [shape: f32[2,1,32], index: 14, kind: input, shape index: {}, may-alias: {4,8,10,14}]   ;;  %s4914_s15 = inlined_call_operand.vmem [shape: f32[1,32], index: 15, kind: input, shape index: {}, may-alias: {15,19}]   ;;  %s4915_s16 = inlined_call_operand.vmem [shape: f32[1,32], index: 16, kind: input, shape index: {}, may-alias: {16,21}]   ;;  %s4916_s17 = inlined_call_operand.hbm [shape: f32[1,32], index: 17, kind: input, shape index: {}]   ;;  %s4917_s18 = inlined_call_operand.<no memory space> [shape: f32[1,1], index: 18, kind: input, shape index: {}, may-alias: {18,22}]   ;;  %s4918_s19 = inlined_call_operand.vmem [shape: f32[1,32], index: 19, kind: input, shape index: {}, may-alias: {15,19}]   ;;  %s4919_s21 = inlined_call_operand.vmem [shape: f32[1,32], index: 21, kind: input, shape index: {}, may-alias: {16,21}]   ;;  %s4920_s23 = inlined_call_operand.vmem [shape: f32[32,3], index: 23, kind: input, shape index: {}]   ;;  %s4921_s24 = inlined_call_operand.vmem [shape: f32[1,3], index: 24, kind: input, shape index: {}]   ;;  %s4922_s25 = inlined_call_operand.vmem [shape: f32[1,3], index: 25, kind: input, shape index: {}]   ;;  %s4923_s26 = inlined_call_operand.hbm [shape: f32[2,1,3], index: 26, kind: output, shape index: {0}]   ;;  %s4924_s27 = inlined_call_operand.vmem [shape: f32[2,1,1], index: 27, kind: output, shape index: {1}]   ;;  %s4925_s20 = inlined_call_operand.<no memory space> [shape: f32[1,1], index: 20, kind: input, shape index: {}]   ;;  %s4926_s22 = inlined_call_operand.<no memory space> [shape: f32[1,1], index: 22, kind: input, shape index: {}, may-alias: {18,22}]  }
   0x1   :  { %4951 = sst [smem:[#allocation18_spill]] %s4899_s0  ;;  %v33_v0 = vstv %s4917_s18  ;;  %v35_v1 = vstv %s4925_s20  ;;  %v37_v2 = vstv %s4926_s22 }
   0x2   :  { %4952 = sst [smem:[#allocation19_spill]] %s4900_s1  ;;  %34 = vst [vmem:[#allocation2] sm:$0x1] %v33_v0 }
   0x3   :  { %4953 = sst [smem:[#allocation20_spill]] %s4901_s2  ;;  %36 = vst [vmem:[#allocation3] sm:$0x1] %v35_v1 }
   0x4   :  { %4954 = sst [smem:[#allocation21_spill]] %s4902_s3  ;;  %38 = vst [vmem:[#allocation4] sm:$0x1] %v37_v2 }
   0x5   :  { %4955 = sst [smem:[#allocation22_spill]] %s4903_s4 }
   0x6   :  { %4956 = sst [smem:[#allocation23_spill]] %s4904_s5 }
   0x7   :  { %4957 = sst [smem:[#allocation24_spill]] %s4905_s6 }
   0x8   :  { %4958 = sst [smem:[#allocation25_spill]] %s4906_s7 }
   0x9   :  { %4959 = sst [smem:[#allocation26_spill]] %s4907_s8 }
   0xa   :  { %4960 = sst [smem:[#allocation27_spill]] %s4908_s9 }
   0xb   :  { %4961 = sst [smem:[#allocation28_spill]] %s4909_s10 }
   0xc   :  { %4962 = sst [smem:[#allocation29_spill]] %s4910_s11 }
   0xd   :  { %4963 = sst [smem:[#allocation30_spill]] %s4916_s17 }
   0xe   :  { %4964 = sst [smem:[#allocation31_spill]] %s4921_s24 }
   0xf   :  { %4965 = sst [smem:[#allocation32_spill]] %s4922_s25 }
  0x10   :  { %4966 = sst [smem:[#allocation33_spill]] %s4923_s26 }
  0x11   :  { %39 = vsyncpa [#allocation6], 0 }
  0x12   :  { %40 = vsyncpa [#allocation7], 0 }
  0x13   :  { %42 = vsyncpa [#allocation7 + $0x1], 0  ;;  %s3762_s28 = smov 0   ;;  %s3764_s0 = smov 0  }
  0x14   :  { %s3766_s10 = smov 0   ;;  %s3768_s18 = smov 0  }
  0x15 LB: > { %4967 = sst [smem:[#allocation11_spill]] %s3595_s28  ;;  %s3783_s20 = sadd.s32 4294967295, %s3607_s18   ;;  %s3607_s18 = sphi %s3768_s18, %s4997_s18   ;;  %s3603_s10 = sphi %s3766_s10, %s4999_s10   ;;  %s3599_s0 = sphi %s3764_s0, %s5001_s0   ;;  %s3595_s28 = sphi %s3762_s28, %s5000_s28  }
  0x16   : > { %4968 = sst [smem:[#allocation12_spill]] %s3603_s10  ;;  %s3133_s22 = sadd.s32 4294967294, %s3607_s18  }
  0x17   : > { %4969 = sst [smem:[#allocation13_spill]] %s3607_s18  ;;  %s3787_s29 = sadd.s32 1, %s3607_s18  }
  0x18   : > { %4970 = sst [smem:[#allocation14_spill]] %s3787_s29  ;;  %s606_s1 = sadd.s32 1, %s3603_s10 }
  0x19   : > { %s603_s6 = ssub.s32 %s3607_s18, %s3787_s29  ;;  %p616_p0 = scmp.ne.s32.totalorder %s3603_s10, %s3599_s0 }
  0x1a   : > { %p604_p1 = scmp.eq.s32.totalorder %s603_s6, 0  ;;  %p617_p2 = scmp.eq.s32.totalorder %s3783_s20, 1 }
  0x1b   : > { %p622_p3 = scmp.ne.s32.totalorder %s3599_s0, %s3595_s28  ;;  %p623_p4 = scmp.eq.s32.totalorder %s3133_s22, 1 }
  0x1c   : > { %s3798_s11 = scalar_select %p604_p1, %s3603_s10, %s606_s1  }
  0x1d   : > { %p3800_p5 = por %p617_p2, %p616_p0  ;;  %p3804_p6 = por %p623_p4, %p622_p3 }
  0x1e   : > { %4971 = sst [smem:[#allocation15_spill]] %s3798_s11  ;;  %p3134_p7 = scmp.ge.s32.totalorder %s3607_s18, 1 }
  0x1f   : > { %s4972_s2 = scalar_select %p3800_p5, 1, 0 }
  0x20   : > { %s4974_s3 = scalar_select %p3804_p6, 1, 0 }
  0x21   : > { %4973 = sst [smem:[#allocation16_spill]] %s4972_s2  ;;  %p656_p8 = scmp.lt.s32.totalorder %s3607_s18, 3 }
  0x22   : > { %4975 = sst [smem:[#allocation17_spill]] %s4974_s3  ;;  %p3373_p9 = scmp.eq.s32.totalorder %s3783_s20, 0 }
  0x23   : > { %p657_p10 = pnand %p3134_p7, %p656_p8  ;;  %s4976_s17 = sld [smem:[#allocation30_spill]] }
  0x24   : > { %s3609_s30 = smov [#allocation5]  }
  0x25   : > { %p3365_p11 = pneg %p657_p10  ;;  %s718_s9 = sshll.u32 %s3609_s30, 4  ;;  %s719_s9 = int_to_ptr.vmem [resolvable:$true] %s718_s9 }
  0x26   : > { %763 = sbr.rel (%p657_p10) target bundleno = 7191 (0x1c17), region = 124 }
  0x27   : > { %p3366_p12 = pnand %p3373_p9, %p3365_p11 }
  0x29   : > { %s716_s8 = sshll.u32 %s4976_s17, 4  ;;  %s717_s8 = int_to_ptr.hbm [resolvable:$true] %s716_s8 }
  0x2a   : > { %3368 = dma.hbm_to_vmem [thread:$0]  (!%p3366_p12), %s717_s8, 16, %s719_s9, [#allocation6]  }
  0x2b   : > { %3586 = dma.done.wait (%p3373_p9), [#allocation6], 16  }
  0x2c   : > { %3588 = vsyncadd (%p3373_p9), [#allocation6], 4294967280  ;;  %s4977_s1 = sld [smem:[#allocation19_spill]]  ;;  %p838_p13 = scmp.lt.s32.totalorder %s3783_s20, 1  ;;  %vm1071_vm0 = vcmask 258048   ;;  %vm1117_vm5 = vcmask 261120  }
  0x2d   : > { %s4978_s3 = sld [smem:[#allocation18_spill]]  ;;  %vm1245_vm6 = vcmask 1044480   ;;  %vm1202_vm7 = vcmask 64512   ;;  %vm1229_vm8 = vcmask 36864   ;;  %vm1241_vm9 = vcmask 39936   ;;  %s831_s29 = sand.u32 1, %s3599_s0  }
  0x2e   : > { %s3965_s8 = scalar_select %p838_p13, %s3783_s20, 1 }
  0x2f   : > { %s4980_s22 = sld [smem:[#allocation23_spill]]  ;;  %s3029_s24 = scalar_lea.sflag [#allocation7], %s831_s29 }
  0x30   : > { %s3358_s4 = smul.u32 48, %s3965_s8  ;;  %s4981_s10 = sld [smem:[#allocation21_spill]] }
  0x31   : > { %s4983_s7 = sld [smem:[#allocation22_spill]] }
  0x32   : > { %v867_v3 = vld [vmem:[%s4977_s1 + $0x78] sm:$0xff]  ;;  %v866_v4 = vld [vmem:[%s4977_s1 + $0x70] sm:$0xff]  ;;  %v865_v7 = vld [vmem:[%s4977_s1 + $0x68] sm:$0xff]  ;;  %s4984_s9 = sld [smem:[#allocation24_spill]] }
  0x33   : > { %v883_v5 = vld [vmem:[%s4977_s1 + $0xf8] sm:$0xff]  ;;  %949 = vmatpush.msra.mxu0 %v867_v3  ;;  %v882_v6 = vld [vmem:[%s4977_s1 + $0xf0] sm:$0xff]  ;;  %v881_v8 = vld [vmem:[%s4977_s1 + $0xe8] sm:$0xff]  ;;  %s4031_s28 = scalar_lea.vmem %s4978_s3, %s3358_s4  ;;  %s4979_s4 = sld [smem:[#allocation20_spill]] }
  0x34   : > { %969 = vmatpush.msra.mxu1 %v883_v5  ;;  %v864_v9 = vld [vmem:[%s4977_s1 + $0x60] sm:$0xff]  ;;  %v863_v11 = vld [vmem:[%s4977_s1 + $0x58] sm:$0xff]  ;;  %v862_v13 = vld [vmem:[%s4977_s1 + $0x50] sm:$0xff]  ;;  %s4985_s6 = sld [smem:[#allocation25_spill]] }
  0x35   : > { %950 = vmatpush.msra.mxu0 %v866_v4  ;;  %v880_v10 = vld [vmem:[%s4977_s1 + $0xe0] sm:$0xff]  ;;  %v879_v12 = vld [vmem:[%s4977_s1 + $0xd8] sm:$0xff]  ;;  %v878_v15 = vld [vmem:[%s4977_s1 + $0xd0] sm:$0xff]  ;;  %s4986_s5 = sld [smem:[#allocation26_spill]] }
  0x36   : > { %970 = vmatpush.msra.mxu1 %v882_v6  ;;  %v899_v14 = vld [vmem:[%s4977_s1 + $0x178] sm:$0xff]  ;;  %v898_v16 = vld [vmem:[%s4977_s1 + $0x170] sm:$0xff]  ;;  %v897_v18 = vld [vmem:[%s4977_s1 + $0x168] sm:$0xff]  ;;  %s4982_s11 = smov %s4981_s10  ;;  %s4987_s17 = sld [smem:[#allocation29_spill]] }
  0x37   : > { %951 = vmatpush.msra.mxu0 %v865_v7  ;;  %989 = vmatpush.msra.mxu2 %v899_v14  ;;  %v915_v17 = vld [vmem:[%s4977_s1 + $0x1f8] sm:$0xff]  ;;  %v914_v19 = vld [vmem:[%s4977_s1 + $0x1f0] sm:$0xff]  ;;  %v861_v20 = vld [vmem:[%s4977_s1 + $0x48] sm:$0xff]  ;;  %s4988_s30 = sld [smem:[#allocation27_spill]] }
  0x38   : > { %971 = vmatpush.msra.mxu1 %v881_v8  ;;  %v877_v21 = vld [vmem:[%s4977_s1 + $0xc8] sm:$0xff]  ;;  %1009 = vmatpush.msra.mxu3 %v915_v17  ;;  %v896_v22 = vld [vmem:[%s4977_s1 + $0x160] sm:$0xff]  ;;  %v895_v26 = vld [vmem:[%s4977_s1 + $0x158] sm:$0xff]  ;;  %s4989_s3 = sld [smem:[#allocation28_spill]] }
  0x39   : > { %952 = vmatpush.msra.mxu0 %v864_v9  ;;  %990 = vmatpush.msra.mxu2 %v898_v16  ;;  %v913_v23 = vld [vmem:[%s4977_s1 + $0x1e8] sm:$0xff]  ;;  %v860_v24 = vld [vmem:[%s4977_s1 + $0x40] sm:$0xff]  ;;  %v859_v28 = vld [vmem:[%s4977_s1 + $0x38] sm:$0xff]  ;;  %s4990_s18 = sld [smem:[#allocation31_spill]] }
  0x3a   : > { %972 = vmatpush.msra.mxu1 %v880_v10  ;;  %v876_v25 = vld [vmem:[%s4977_s1 + $0xc0] sm:$0xff]  ;;  %1010 = vmatpush.msra.mxu3 %v914_v19  ;;  %v875_v29 = vld [vmem:[%s4977_s1 + $0xb8] sm:$0xff]  ;;  %v894_v30 = vld [vmem:[%s4977_s1 + $0x150] sm:$0xff]  ;;  %s4991_s2 = sld [smem:[#allocation33_spill]] }
  0x3b   : > { %953 = vmatpush.msra.mxu0 %v863_v11  ;;  %991 = vmatpush.msra.mxu2 %v897_v18  ;;  %v912_v27 = vld [vmem:[%s4977_s1 + $0x1e0] sm:$0xff]  ;;  %v911_v31 = vld [vmem:[%s4977_s1 + $0x1d8] sm:$0xff]  ;;  %v858_v32 = vld [vmem:[%s4977_s1 + $0x30] sm:$0xff] }
  0x3c   : > { %973 = vmatpush.msra.mxu1 %v879_v12  ;;  %1011 = vmatpush.msra.mxu3 %v913_v23  ;;  %v874_v33 = vld [vmem:[%s4977_s1 + $0xb0] sm:$0xff]  ;;  %v893_v34 = vld [vmem:[%s4977_s1 + $0x148] sm:$0xff]  ;;  %v892_v38 = vld [vmem:[%s4977_s1 + $0x140] sm:$0xff] }
  0x3d   : > { %954 = vmatpush.msra.mxu0 %v862_v13  ;;  %992 = vmatpush.msra.mxu2 %v896_v22  ;;  %v910_v35 = vld [vmem:[%s4977_s1 + $0x1d0] sm:$0xff]  ;;  %v857_v36 = vld [vmem:[%s4977_s1 + $0x28] sm:$0xff]  ;;  %v856_v40 = vld [vmem:[%s4977_s1 + $0x20] sm:$0xff] }
  0x3e   : > { %974 = vmatpush.msra.mxu1 %v878_v15  ;;  %1012 = vmatpush.msra.mxu3 %v912_v27  ;;  %v873_v37 = vld [vmem:[%s4977_s1 + $0xa8] sm:$0xff]  ;;  %v872_v41 = vld [vmem:[%s4977_s1 + $0xa0] sm:$0xff]  ;;  %v891_v42 = vld [vmem:[%s4977_s1 + $0x138] sm:$0xff] }
  0x3f   : > { %955 = vmatpush.msra.mxu0 %v861_v20  ;;  %993 = vmatpush.msra.mxu2 %v895_v26  ;;  %v909_v39 = vld [vmem:[%s4977_s1 + $0x1c8] sm:$0xff]  ;;  %v908_v43 = vld [vmem:[%s4977_s1 + $0x1c0] sm:$0xff]  ;;  %v855_v44 = vld [vmem:[%s4977_s1 + $0x18] sm:$0xff] }
  0x40   : > { %975 = vmatpush.msra.mxu1 %v877_v21  ;;  %1013 = vmatpush.msra.mxu3 %v911_v31  ;;  %v871_v45 = vld [vmem:[%s4977_s1 + $0x98] sm:$0xff]  ;;  %v890_v46 = vld [vmem:[%s4977_s1 + $0x130] sm:$0xff]  ;;  %v889_v50 = vld [vmem:[%s4977_s1 + $0x128] sm:$0xff] }
  0x41   : > { %956 = vmatpush.msra.mxu0 %v860_v24  ;;  %994 = vmatpush.msra.mxu2 %v894_v30  ;;  %v907_v47 = vld [vmem:[%s4977_s1 + $0x1b8] sm:$0xff]  ;;  %v854_v48 = vld [vmem:[%s4977_s1 + $0x10] sm:$0xff]  ;;  %v853_v52 = vld [vmem:[%s4977_s1 + $0x8] sm:$0xff] }
  0x42   : > { %976 = vmatpush.msra.mxu1 %v876_v25  ;;  %1014 = vmatpush.msra.mxu3 %v910_v35  ;;  %v870_v49 = vld [vmem:[%s4977_s1 + $0x90] sm:$0xff]  ;;  %v869_v53 = vld [vmem:[%s4977_s1 + $0x88] sm:$0xff]  ;;  %v888_v54 = vld [vmem:[%s4977_s1 + $0x120] sm:$0xff] }
  0x43   : > { %957 = vmatpush.msra.mxu0 %v859_v28  ;;  %995 = vmatpush.msra.mxu2 %v893_v34  ;;  %v906_v51 = vld [vmem:[%s4977_s1 + $0x1b0] sm:$0xff]  ;;  %v905_v55 = vld [vmem:[%s4977_s1 + $0x1a8] sm:$0xff]  ;;  %v852_v56 = vld [vmem:[%s4977_s1] sm:$0xff] }
  0x44   : > { %977 = vmatpush.msra.mxu1 %v875_v29  ;;  %1015 = vmatpush.msra.mxu3 %v909_v39  ;;  %v868_v57 = vld [vmem:[%s4977_s1 + $0x80] sm:$0xff]  ;;  %v931_v58 = vld [vmem:[%s4977_s1 + $0x278] sm:$0xff]  ;;  %v930_v62 = vld [vmem:[%s4977_s1 + $0x270] sm:$0xff] }
  0x45   : > { %958 = vmatpush.msra.mxu0 %v858_v32  ;;  %996 = vmatpush.msra.mxu2 %v892_v38  ;;  %v947_v59 = vld [vmem:[%s4977_s1 + $0x2f8] sm:$0xff]  ;;  %v904_v61 = vld [vmem:[%s4977_s1 + $0x1a0] sm:$0xff]  ;;  %v929_v63 = vld [vmem:[%s4977_s1 + $0x268] sm:$0xff] }
  0x46   : > { %978 = vmatpush.msra.mxu1 %v874_v33  ;;  %1016 = vmatpush.msra.mxu3 %v908_v43  ;;  %v887_v60 = vld [vmem:[%s4977_s1 + $0x118] sm:$0xff]  ;;  %v946_v0 = vld [vmem:[%s4977_s1 + $0x2f0] sm:$0xff]  ;;  %v945_v1 = vld [vmem:[%s4977_s1 + $0x2e8] sm:$0xff] }
  0x47   : > { %959 = vmatpush.msra.mxu0 %v857_v36  ;;  %997 = vmatpush.msra.mxu2 %v891_v42  ;;  %v886_v2 = vld [vmem:[%s4977_s1 + $0x110] sm:$0xff]  ;;  %v903_v3 = vld [vmem:[%s4977_s1 + $0x198] sm:$0xff]  ;;  %v928_v4 = vld [vmem:[%s4977_s1 + $0x260] sm:$0xff] }
  0x48   : > { %979 = vmatpush.msra.mxu1 %v873_v37  ;;  %1017 = vmatpush.msra.mxu3 %v907_v47  ;;  %v944_v5 = vld [vmem:[%s4977_s1 + $0x2e0] sm:$0xff]  ;;  %v885_v6 = vld [vmem:[%s4977_s1 + $0x108] sm:$0xff]  ;;  %v902_v7 = vld [vmem:[%s4977_s1 + $0x190] sm:$0xff] }
  0x49   : > { %960 = vmatpush.msra.mxu0 %v856_v40  ;;  %998 = vmatpush.msra.mxu2 %v890_v46  ;;  %v884_v8 = vld [vmem:[%s4977_s1 + $0x100] sm:$0xff]  ;;  %v901_v9 = vld [vmem:[%s4977_s1 + $0x188] sm:$0xff]  ;;  %v927_v10 = vld [vmem:[%s4977_s1 + $0x258] sm:$0xff] }
  0x4a   : > { %980 = vmatpush.msra.mxu1 %v872_v41  ;;  %1018 = vmatpush.msra.mxu3 %v906_v51  ;;  %v943_v11 = vld [vmem:[%s4977_s1 + $0x2d8] sm:$0xff]  ;;  %v848_v12 = vld [vmem:[%s4031_s28 + $0x10] sm:$0x1f]  ;;  %v900_v13 = vld [vmem:[%s4977_s1 + $0x180] sm:$0xff] }
  0x4b   : > { %961 = vmatpush.msra.mxu0 %v855_v44  ;;  %999 = vmatpush.msra.mxu2 %v889_v50  ;;  %v926_v14 = vld [vmem:[%s4977_s1 + $0x250] sm:$0xff]  ;;  %v846_v16 = vld [vmem:[%s4031_s28] sm:$0x1f]  ;;  %v849_v17 = vld [vmem:[%s4031_s28 + $0x18] sm:$0x1f] }
  0x4c   : > { %981 = vmatpush.msra.mxu1 %v871_v45  ;;  %1019 = vmatpush.msra.mxu3 %v905_v55  ;;  %v942_v15 = vld [vmem:[%s4977_s1 + $0x2d0] sm:$0xff]  ;;  %v925_v18 = vld [vmem:[%s4977_s1 + $0x248] sm:$0xff]  ;;  %v924_v21 = vld [vmem:[%s4977_s1 + $0x240] sm:$0xff]  ;;  %v3610_v55 = vmov 32.0  }
  0x4d   : > { %962 = vmatpush.msra.mxu0 %v854_v48  ;;  %1000 = vmatpush.msra.mxu2 %v888_v54  ;;  %v941_v19 = vld [vmem:[%s4977_s1 + $0x2c8] sm:$0xff]  ;;  %v940_v22 = vld [vmem:[%s4977_s1 + $0x2c0] sm:$0xff]  ;;  %v923_v23 = vld [vmem:[%s4977_s1 + $0x238] sm:$0xff]  ;;  %3455 = vrcp.f32 %v3610_v55 }
  0x4e   : > { %982 = vmatpush.msra.mxu1 %v870_v49  ;;  %1020 = vmatpush.msra.mxu3 %v904_v61  ;;  %v847_v20 = vld [vmem:[%s4031_s28 + $0x8] sm:$0x1f]  ;;  %v939_v24 = vld [vmem:[%s4977_s1 + $0x2b8] sm:$0xff]  ;;  %v922_v25 = vld [vmem:[%s4977_s1 + $0x230] sm:$0xff] }
  0x4f   : > { %963 = vmatpush.msra.mxu0 %v853_v52  ;;  %1001 = vmatpush.msra.mxu2 %v887_v60  ;;  %v938_v26 = vld [vmem:[%s4977_s1 + $0x2b0] sm:$0xff]  ;;  %v921_v27 = vld [vmem:[%s4977_s1 + $0x228] sm:$0xff]  ;;  %v920_v29 = vld [vmem:[%s4977_s1 + $0x220] sm:$0xff] }
  0x50   : > { %983 = vmatpush.msra.mxu1 %v869_v53  ;;  %1021 = vmatpush.msra.mxu3 %v903_v3  ;;  %v937_v28 = vld [vmem:[%s4977_s1 + $0x2a8] sm:$0xff]  ;;  %v936_v30 = vld [vmem:[%s4977_s1 + $0x2a0] sm:$0xff]  ;;  %v919_v31 = vld [vmem:[%s4977_s1 + $0x218] sm:$0xff] }
  0x51   : > { %964 = vmatpush.msra.mxu0 %v852_v56  ;;  %1002 = vmatpush.msra.mxu2 %v886_v2  ;;  %v935_v32 = vld [vmem:[%s4977_s1 + $0x298] sm:$0xff]  ;;  %v918_v33 = vld [vmem:[%s4977_s1 + $0x210] sm:$0xff]  ;;  %v917_v35 = vld [vmem:[%s4977_s1 + $0x208] sm:$0xff] }
  0x52   : > { %984 = vmatpush.msra.mxu1 %v868_v57  ;;  %1022 = vmatpush.msra.mxu3 %v902_v7  ;;  %v934_v34 = vld [vmem:[%s4977_s1 + $0x290] sm:$0xff]  ;;  %v933_v36 = vld [vmem:[%s4977_s1 + $0x288] sm:$0xff]  ;;  %v916_v37 = vld [vmem:[%s4977_s1 + $0x200] sm:$0xff] }
  0x53   : > { %1029 = vmatpush.msrb.mxu0 %v931_v58  ;;  %1003 = vmatpush.msra.mxu2 %v885_v6  ;;  %v932_v38 = vld [vmem:[%s4977_s1 + $0x280] sm:$0xff]  ;;  %v851_v40 = vld [vmem:[%s4031_s28 + $0x28] sm:$0x1f]  ;;  %v3456_v56 = vpop.eup %3455  ;;  %v1112_v3 = vld [vmem:[%s4980_s22 + $0x18] sm:$0xff]  ;;  %s3561_s1 = scalar_lea.hbm %s4991_s2, 2 }
  0x54   : > { %1049 = vmatpush.msrb.mxu1 %v947_v59  ;;  %1023 = vmatpush.msra.mxu3 %v901_v9  ;;  %v850_v39 = vld [vmem:[%s4031_s28 + $0x20] sm:$0x1f]  ;;  %v1076_v57 = vmul.f32 32.0, %v3456_v56  ;;  %vm1080_vm1 = vweird.f32 %v3456_v56  ;;  %v1111_v6 = vld [vmem:[%s4980_s22 + $0x10] sm:$0xff]  ;;  %v1110_v9 = vld [vmem:[%s4980_s22 + $0x8] sm:$0xff] }
  0x55   : > { %1030 = vmatpush.msrb.mxu0 %v930_v62  ;;  %1004 = vmatpush.msra.mxu2 %v884_v8  ;;  %v948_v41 = vld [vmem:[%s4979_s4] sm:$0x1f]  ;;  %v3143_v7 = vld [vmem:[%s4980_s22 + $0x90] sm:$0xff]  ;;  %s3040_s4 = scalar_lea.hbm %s4991_s2, %s3783_s20 }
  0x56   : > { %1050 = vmatpush.msrb.mxu1 %v946_v0  ;;  %1005 = vmatmul.f32.vlgmr.msra.gmra.mxu2 %v848_v12  ;;  %v1077_v58 = vsub.f32 1.0, %v1076_v57  ;;  %v3149_v8 = vld [vmem:[%s4980_s22 + $0x110] sm:$0xff]  ;;  %v1109_v12 = vld [vmem:[%s4980_s22] sm:$0xff] }
  0x57   : > { %1031 = vmatpush.msrb.mxu0 %v929_v63  ;;  %1024 = vmatpush.msra.mxu3 %v900_v13  ;;  %v3141_v13 = vld [vmem:[%s4980_s22 + $0x80] sm:$0xff] }
  0x58   : > { %1051 = vmatpush.msrb.mxu1 %v945_v1  ;;  %965 = vmatmul.f32.vlgmr.msra.gmra.mxu0 %v846_v16  ;;  %v1078_v59 = vmul.f32 %v3456_v56, %v1077_v58 }
  0x59   : > { %1032 = vmatpush.msrb.mxu0 %v928_v4  ;;  %1025 = vmatmul.f32.vlgmr.msra.gmra.mxu3 %v849_v17  ;;  %v3144_v4 = vld [vmem:[%s4980_s22 + $0x98] sm:$0xff] }
  0x5a   : > { %1052 = vmatpush.msrb.mxu1 %v944_v5  ;;  %v1079_v60 = vadd.f32 %v3456_v56, %v1078_v59  ;;  %v3150_v5 = vld [vmem:[%s4980_s22 + $0x118] sm:$0xff]  ;;  %1164 = vmatpush.msrb.mxu3 %v3144_v4  ;;  %v1269_v4 = vld [vmem:[%s4985_s6] sm:$0xff] }
  0x5b   : > { %1033 = vmatpush.msrb.mxu0 %v927_v10  ;;  %985 = vmatmul.f32.vlgmr.msra.gmra.mxu1 %v847_v20  ;;  %v3142_v10 = vld [vmem:[%s4980_s22 + $0x88] sm:$0xff] }
  0x5c   : > { %1053 = vmatpush.msrb.mxu1 %v943_v11  ;;  %v4127_v61 = vsel %vm1080_vm1, %v3456_v56, %v1079_v60  ;;  %1165 = vmatpush.msrb.mxu3 %v3143_v7  ;;  %v3148_v11 = vld [vmem:[%s4980_s22 + $0x108] sm:$0xff]  ;;  %v3166_v60 = vld [vmem:[%s4980_s22 + $0xb8] sm:$0xff]  ;;  %v3422_v7 = vld [vmem:[%s4984_s9 + $0x5] ss:$0 sm:$0xff] }
  0x5d   : > { %1034 = vmatpush.msrb.mxu0 %v926_v14  ;;  %v3147_v14 = vld [vmem:[%s4980_s22 + $0x100] sm:$0xff] }
  0x5e   : > { %1054 = vmatpush.msrb.mxu1 %v942_v15  ;;  %1166 = vmatpush.msrb.mxu3 %v3142_v10 }
  0x5f   : > { %1035 = vmatpush.msrb.mxu0 %v925_v18 }
  0x60   : > { %1055 = vmatpush.msrb.mxu1 %v941_v19  ;;  %1167 = vmatpush.msrb.mxu3 %v3141_v13  ;;  %v3184_v13 = vld [vmem:[%s4980_s22 + $0x50] sm:$0xff] }
  0x61   : > { %1036 = vmatpush.msrb.mxu0 %v924_v21 }
  0x62   : > { %1056 = vmatpush.msrb.mxu1 %v940_v22 }
  0x63   : > { %1037 = vmatpush.msrb.mxu0 %v923_v23 }
  0x64   : > { %1057 = vmatpush.msrb.mxu1 %v939_v24  ;;  %v3415_v24 = vld [vmem:[%s4981_s10] ss:$0 sm:$0xff]  ;;  %s845_s10 = scalar_lea.vmem %s4924_s27, %s3965_s8 }
  0x65   : > { %1038 = vmatpush.msrb.mxu0 %v922_v25 }
  0x66   : > { %1058 = vmatpush.msrb.mxu1 %v938_v26  ;;  %v3416_v26 = vld [vmem:[%s4983_s7] ss:$0 sm:$0xff] }
  0x67   : > { %1039 = vmatpush.msrb.mxu0 %v921_v27 }
  0x68   : > { %1059 = vmatpush.msrb.mxu1 %v937_v28 }
  0x69   : > { %1040 = vmatpush.msrb.mxu0 %v920_v29 }
  0x6a   : > { %1060 = vmatpush.msrb.mxu1 %v936_v30  ;;  %v3418_v30 = vld [vmem:[%s4984_s9 + $0x8] ss:$0 sm:$0xff] }
  0x6b   : > { %1041 = vmatpush.msrb.mxu0 %v919_v31 }
  0x6c   : > { %1061 = vmatpush.msrb.mxu1 %v935_v32  ;;  %v3417_v32 = vld [vmem:[%s4984_s9] ss:$0 sm:$0xff] }
  0x6d   : > { %1042 = vmatpush.msrb.mxu0 %v918_v33 }
  0x6e   : > { %1062 = vmatpush.msrb.mxu1 %v934_v34 }
  0x6f   : > { %1043 = vmatpush.msrb.mxu0 %v917_v35  ;;  %v3419_v35 = vld [vmem:[%s4984_s9 + $0x4] ss:$0 sm:$0xff] }
  0x70   : > { %1063 = vmatpush.msrb.mxu1 %v933_v36 }
  0x71   : > { %1044 = vmatpush.msrb.mxu0 %v916_v37 }
  0x72   : > { %1064 = vmatpush.msrb.mxu1 %v932_v38  ;;  %1045 = vmatmul.f32.vlgmr.msrb.gmra.mxu0 %v850_v39  ;;  %v3160_v39 = vld [vmem:[%s4980_s22 + $0x38] sm:$0xff] }
  0x73   : > { %1065 = vmatmul.f32.vlgmr.msrb.gmra.mxu1 %v851_v40  ;;  %1133 = vmatpush.msra.mxu0 %v1112_v3 }
  0x74   : > { %1194 = vmatpush.msra.mxu1 %v3150_v5 }
  0x75   : > { %1134 = vmatpush.msra.mxu0 %v1111_v6  ;;  %v3420_v6 = vld [vmem:[%s4984_s9 + $0x1] ss:$0 sm:$0xff] }
  0x76   : > { %1195 = vmatpush.msra.mxu1 %v3149_v8 }
  0x77   : > { %1135 = vmatpush.msra.mxu0 %v1110_v9 }
  0x78   : > { %1196 = vmatpush.msra.mxu1 %v3148_v11  ;;  %v3185_v11 = vld [vmem:[%s4980_s22 + $0x58] sm:$0xff] }
  0x79   : > { %1136 = vmatpush.msra.mxu0 %v1109_v12 }
  0x7a   : > { %1197 = vmatpush.msra.mxu1 %v3147_v14  ;;  %v3183_v14 = vld [vmem:[%s4980_s22 + $0x48] sm:$0xff] }
  0xd5   : > { %v966_v42 = vpop.f32.mrf.mxu0 }
  0xd6   : > { %v967_v43 = vadd.f32 %v966_v42, %v948_v41  ;;  %v3159_v41 = vld [vmem:[%s4980_s22 + $0x30] sm:$0xff]  ;;  %v3158_v42 = vld [vmem:[%s4980_s22 + $0x28] sm:$0xff] }
  0xd8   : > { %v986_v44 = vpop.f32.mrf.mxu1 }
  0xd9   : > { %v987_v45 = vadd.f32 %v986_v44, %v967_v43  ;;  %v1006_v46 = vpop.f32.mrf.mxu2  ;;  %v3157_v43 = vld [vmem:[%s4980_s22 + $0x20] sm:$0xff]  ;;  %v3172_v44 = vld [vmem:[%s4980_s22 + $0x138] sm:$0xff] }
  0xdb   : > { %v1007_v47 = vadd.f32 %v1006_v46, %v987_v45  ;;  %v3171_v45 = vld [vmem:[%s4980_s22 + $0x130] sm:$0xff]  ;;  %v3170_v46 = vld [vmem:[%s4980_s22 + $0x128] sm:$0xff] }
  0xdc   : > { %v1026_v48 = vpop.f32.mrf.mxu3 }
  0xdd   : > { %v1027_v49 = vadd.f32 %v1026_v48, %v1007_v47  ;;  %v3169_v47 = vld [vmem:[%s4980_s22 + $0x120] sm:$0xff] }
  0xef   : > { %v1046_v50 = vpop.f32.mrf.mxu0 }
  0xf0   : > { %v1066_v51 = vpop.f32.mrf.mxu1  ;;  %v1047_v52 = vadd.f32 %v1046_v50, %v1027_v49 }
  0xf2   : > { %v4123_v53 = vadd.f32 %v1066_v51, %v1047_v52  ;;  %v3421_v51 = vld [vmem:[%s4984_s9 + $0x9] ss:$0 sm:$0xff] }
  0xf4   : > { %v1072_v54 = vsel %vm1071_vm0, %v4123_v53, 0.0 }
  0xf5   : > { %1073 = vadd.xlane.f32.xlu0 %v1072_v54 }
 0x168   : > { %v1074_v62 = vpop.xlane.xlu0 %1073 }
 0x169   : > { %v1082_v63 = vmul.f32 %v4127_v61, %v1074_v62  ;;  %v3165_v62 = vld [vmem:[%s4980_s22 + $0xb0] sm:$0xff] }
 0x16b   : > { %v1083_v0 = vsub.f32 %v4123_v53, %v1082_v63  ;;  %v3164_v63 = vld [vmem:[%s4980_s22 + $0xa8] sm:$0xff] }
 0x16d   : > { %v1084_v1 = vmul.f32 %v1083_v0, %v1083_v0 }
 0x16f   : > { %v1085_v2 = vsel %vm1071_vm0, %v1084_v1, 0.0 }
 0x170   : > { %1086 = vadd.xlane.f32.xlu0 %v1085_v2 }
 0x1e3   : > { %v1087_v15 = vpop.xlane.xlu0 %1086 }
 0x1e4   : > { %v1088_v16 = vmul.f32 %v1087_v15, %v4127_v61  ;;  %v3182_v15 = vld [vmem:[%s4980_s22 + $0x40] sm:$0xff] }
 0x1e6   : > { %v1089_v17 = vadd.f32 1e-06, %v1088_v16 }
 0x1e8   : > { %3457 = vrsqrt.f32 %v1089_v17  ;;  %vm1096_vm3 = vweird.f32 %v1089_v17 }
 0x1ee   : > { %v3458_v18 = vpop.eup %3457 }
 0x1ef   : > { %v1091_v19 = vmul.f32 %v3458_v18, %v1089_v17  ;;  %vm1097_vm2 = vweird.f32 %v3458_v18 }
 0x1f0   : > { %vm1098_vm4 = vmor %vm1096_vm3, %vm1097_vm2 }
 0x1f1   : > { %v1092_v20 = vmul.f32 %v3458_v18, %v1091_v19 }
 0x1f3   : > { %v1093_v21 = vmul.f32 0.5, %v1092_v20 }
 0x1f5   : > { %v1094_v22 = vsub.f32 1.5, %v1093_v21 }
 0x1f7   : > { %v1095_v23 = vmul.f32 %v3458_v18, %v1094_v22 }
 0x1f9   : > { %v1099_v25 = vsel %vm1098_vm4, %v3458_v18, %v1095_v23  ;;  %v3191_v23 = vld [vmem:[%s4980_s22 + $0xd8] sm:$0xff] }
 0x1fa   : > { %v1100_v27 = vmul.f32 %v1099_v25, %v1083_v0  ;;  %v3163_v0 = vld [vmem:[%s4980_s22 + $0xa0] sm:$0xff]  ;;  %v3189_v25 = vld [vmem:[%s4980_s22 + $0xc8] sm:$0xff] }
 0x1fc   : > { %v1104_v28 = vmul.f32 %v3415_v24, %v1100_v27  ;;  %v3190_v24 = vld [vmem:[%s4980_s22 + $0xd0] sm:$0xff] }
 0x1fe   : > { %v4175_v29 = vadd.f32 %v3416_v26, %v1104_v28  ;;  %v3188_v26 = vld [vmem:[%s4980_s22 + $0xc0] sm:$0xff] }
 0x200   : > { %3140 = vmatmul.msk.f32.vlgmr.msra.gmra.mxu0 %vm1117_vm5, %v4175_v29  ;;  %3146 = vmatmul.msk.f32.vlgmr.msrb.gmra.mxu3 %vm1117_vm5, %v4175_v29 }
 0x201   : > { %3152 = vmatmul.msk.f32.vlgmr.msra.gmra.mxu1 %vm1117_vm5, %v4175_v29 }
 0x27d   : > { %v1138_v34 = vpop.f32.mrf.mxu0 }
 0x27e   : > { %v1199_v31 = vpop.f32.mrf.mxu1  ;;  %v1139_v36 = vadd.f32 %v3417_v32, %v1138_v34  ;;  %v3197_v32 = vld [vmem:[%s4980_s22 + $0x158] sm:$0xff]  ;;  %v3195_v34 = vld [vmem:[%s4980_s22 + $0x148] sm:$0xff] }
 0x27f   : > { %v1200_v33 = vadd.f32 %v3418_v30, %v1199_v31  ;;  %v3179_v31 = vld [vmem:[%s4985_s6 + $0x8] sm:$0xff] }
 0x280   : > { %v1141_v40 = vmul.f32 0.35355338, %v1139_v36  ;;  %v3209_v36 = vld [vmem:[%s4980_s22 + $0x78] sm:$0xff] }
 0x281   : > { %3155 = vmatpush.msk.msrb.mxu2 %vm1245_vm6, %v1200_v33  ;;  %v3196_v33 = vld [vmem:[%s4980_s22 + $0x150] sm:$0xff] }
 0x283   : > { %v1169_v37 = vpop.f32.mrf.mxu3  ;;  %1323 = vmatpush.msra.mxu2 %v3166_v60 }
 0x284   : > { %v1170_v38 = vadd.f32 %v3419_v35, %v1169_v37  ;;  %v3194_v35 = vld [vmem:[%s4980_s22 + $0x140] sm:$0xff] }
 0x285   : > { %1324 = vmatpush.msra.mxu2 %v3165_v62 }
 0x286   : > { %3153 = vmatpush.xpose.msk.msra.mxu3 %vm1202_vm7, %v1170_v38  ;;  %v3208_v38 = vld [vmem:[%s4980_s22 + $0x70] sm:$0xff] }
 0x287   : > { %1325 = vmatpush.msra.mxu2 %v3164_v63  ;;  %v3427_v63 = vld [vmem:[%s4984_s9 + $0x7] ss:$0 sm:$0xff] }
 0x289   : > { %3154 = vmatmul.msk.f32.vlgmr.msra.gmra.mxu3 %vm1202_vm7, %v1141_v40  ;;  %1326 = vmatpush.msra.mxu2 %v3163_v0  ;;  %v3423_v40 = vld [vmem:[%s4984_s9 + $0x2] ss:$0 sm:$0xff] }
 0x28a   : > { %1292 = vmatpush.msrb.mxu3 %v3160_v39  ;;  %v3207_v39 = vld [vmem:[%s4980_s22 + $0x68] sm:$0xff] }
 0x28c   : > { %1293 = vmatpush.msrb.mxu3 %v3159_v41 }
 0x28e   : > { %1294 = vmatpush.msrb.mxu3 %v3158_v42  ;;  %v3424_v42 = vld [vmem:[%s4984_s9 + $0x6] ss:$0 sm:$0xff] }
 0x290   : > { %1295 = vmatpush.msrb.mxu3 %v3157_v43  ;;  %v3206_v43 = vld [vmem:[%s4980_s22 + $0x60] sm:$0xff] }
 0x291   : > { %3162 = vmatmul.msk.f32.vlgmr.msrb.gmra.mxu3 %vm1117_vm5, %v4175_v29 }
 0x292   : > { %1353 = vmatpush.msra.mxu3 %v3172_v44 }
 0x294   : > { %1354 = vmatpush.msra.mxu3 %v3171_v45 }
 0x296   : > { %1355 = vmatpush.msra.mxu3 %v3170_v46 }
 0x298   : > { %1356 = vmatpush.msra.mxu3 %v3169_v47  ;;  %v3215_v47 = vld [vmem:[%s4980_s22 + $0xf8] sm:$0xff] }
 0x299   : > { %3174 = vmatmul.msk.f32.vlgmr.msra.gmra.mxu3 %vm1117_vm5, %v4175_v29 }
 0x29a   : > { %1467 = vmatpush.msrb.mxu3 %v1269_v4 }
 0x30c   : > { %v1226_v48 = vpop.f32.mrf.mxu3 }
 0x30d   : > { %v1230_v49 = vsel %vm1229_vm8, %v1226_v48, -inf }
 0x30e   : > { %1231 = vmax.xlane.f32.xlu1 %v1230_v49  ;;  %v3214_v49 = vld [vmem:[%s4980_s22 + $0xf0] sm:$0xff] }
 0x314   : > { %v1297_v50 = vpop.f32.mrf.mxu3 }
 0x315   : > { %v1298_v8 = vadd.f32 %v3420_v6, %v1297_v50  ;;  %v3213_v50 = vld [vmem:[%s4980_s22 + $0xe8] sm:$0xff] }
 0x317   : > { %v1300_v12 = vmul.f32 0.35355338, %v1298_v8  ;;  %v3220_v8 = vld [vmem:[%s4980_s22 + $0x170] sm:$0xff] }
 0x31c   : > { %v1358_v52 = vpop.f32.mrf.mxu3 }
 0x31d   : > { %v1359_v54 = vadd.f32 %v3421_v51, %v1358_v52  ;;  %v3212_v51 = vld [vmem:[%s4980_s22 + $0xe0] sm:$0xff]  ;;  %v3204_v52 = vld [vmem:[%s4985_s6 + $0x10] sm:$0xff] }
 0x31f   : > { %3177 = vmatpush.msk.msrb.mxu1 %vm1245_vm6, %v1359_v54 }
 0x321   : > { %1525 = vmatpush.msra.mxu1 %v3191_v23 }
 0x323   : > { %1526 = vmatpush.msra.mxu1 %v3190_v24 }
 0x325   : > { %1527 = vmatpush.msra.mxu1 %v3189_v25 }
 0x327   : > { %1528 = vmatpush.msra.mxu1 %v3188_v26 }
 0x381   : > { %v1232_v55 = vpop.xlane.xlu1 %1231 }
 0x382   : > { %v1233_v56 = vsub.f32 %v1226_v48, %v1232_v55 }
 0x384   : > { %v1234_v57 = vmul.f32 1.442695, %v1233_v56 }
 0x386   : > { %3459 = vpow2.f32 %v1234_v57  ;;  %v3425_v57 = vld [vmem:[%s4984_s9 + $0xa] ss:$0 sm:$0xff] }
 0x38c   : > { %v3460_v58 = vpop.eup %3459 }
 0x38d   : > { %v1236_v59 = vsel %vm1229_vm8, %v3460_v58, 0.0 }
 0x38e   : > { %1237 = vadd.xlane.f32.xlu1 %v1236_v59 }
 0x401   : > { %v1238_v1 = vpop.xlane.xlu1 %1237 }
 0x402   : > { %3461 = vrcp.f32 %v1238_v1 }
 0x408   : > { %v3462_v2 = vpop.eup %3461 }
 0x409   : > { %v1240_v3 = vmul.f32 %v3462_v2, %v3460_v58 }
 0x40b   : > { %3156 = vmatmul.msk.f32.vlgmr.msrb.gmra.mxu2 %vm1241_vm9, %v1240_v3 }
 0x40c   : > { %1444 = vmatpush.msrb.mxu2 %v3179_v31 }
 0x413   : > { %3168 = vmatmul.msk.f32.vlgmr.msra.gmra.mxu2 %vm1117_vm5, %v4175_v29 }
 0x414   : > { %1555 = vmatpush.msra.mxu2 %v3197_v32 }
 0x416   : > { %1556 = vmatpush.msra.mxu2 %v3196_v33 }
 0x418   : > { %1557 = vmatpush.msra.mxu2 %v3195_v34  ;;  %v3228_v34 = vld [vmem:[%s4985_s6 + $0x18] sm:$0xff] }
 0x41a   : > { %1558 = vmatpush.msra.mxu2 %v3194_v35 }
 0x48e   : > { %v1266_v5 = vpop.f32.mrf.mxu2 }
 0x48f   : > { %3181 = vmatmul.msk.f32.vlgmr.msrb.gmra.mxu3 %vm1202_vm7, %v1266_v5 }
 0x496   : > { %v1328_v9 = vpop.f32.mrf.mxu2 }
 0x497   : > { %v1329_v10 = vadd.f32 %v3422_v7, %v1328_v9  ;;  %v3221_v7 = vld [vmem:[%s4980_s22 + $0x178] sm:$0xff]  ;;  %v3219_v9 = vld [vmem:[%s4980_s22 + $0x168] sm:$0xff] }
 0x499   : > { %3175 = vmatpush.xpose.msk.msrb.mxu0 %vm1202_vm7, %v1329_v10  ;;  %v3218_v10 = vld [vmem:[%s4980_s22 + $0x160] sm:$0xff] }
 0x49c   : > { %3176 = vmatmul.msk.f32.vlgmr.msrb.gmra.mxu0 %vm1202_vm7, %v1300_v12 }
 0x49d   : > { %1494 = vmatpush.msra.mxu0 %v3185_v11 }
 0x49f   : > { %1495 = vmatpush.msra.mxu0 %v3184_v13 }
 0x4a1   : > { %1496 = vmatpush.msra.mxu0 %v3183_v14  ;;  %v3426_v14 = vld [vmem:[%s4984_s9 + $0x3] ss:$0 sm:$0xff] }
 0x4a3   : > { %1497 = vmatpush.msra.mxu0 %v3182_v15 }
 0x4a4   : > { %3187 = vmatmul.msk.f32.vlgmr.msra.gmra.mxu0 %vm1117_vm5, %v4175_v29 }
 0x512   : > { %v1469_v54 = vpop.f32.mrf.mxu3 }
 0x519   : > { %v1384_v16 = vpop.f32.mrf.mxu0 }
 0x51a   : > { %v1387_v17 = vsel %vm1229_vm8, %v1384_v16, -inf }
 0x51b   : > { %1388 = vmax.xlane.f32.xlu2 %v1387_v17 }
 0x521   : > { %v1499_v41 = vpop.f32.mrf.mxu0 }
 0x522   : > { %v1500_v44 = vadd.f32 %v3423_v40, %v1499_v41 }
 0x524   : > { %v1502_v48 = vmul.f32 0.35355338, %v1500_v44 }
 0x58e   : > { %v1389_v18 = vpop.xlane.xlu2 %1388 }
 0x58f   : > { %v1390_v19 = vsub.f32 %v1384_v16, %v1389_v18  ;;  %v3428_v18 = vld [vmem:[%s4984_s9 + $0xb] ss:$0 sm:$0xff] }
 0x591   : > { %v1391_v20 = vmul.f32 1.442695, %v1390_v19 }
 0x593   : > { %3463 = vpow2.f32 %v1391_v20 }
 0x599   : > { %v3464_v21 = vpop.eup %3463 }
 0x59a   : > { %v1393_v22 = vsel %vm1229_vm8, %v3464_v21, 0.0 }
 0x59b   : > { %1394 = vadd.xlane.f32.xlu2 %v1393_v22 }
 0x60e   : > { %v1395_v27 = vpop.xlane.xlu2 %1394 }
 0x60f   : > { %3465 = vrcp.f32 %v1395_v27 }
 0x615   : > { %v3466_v28 = vpop.eup %3465 }
 0x616   : > { %v1397_v30 = vmul.f32 %v3466_v28, %v3464_v21 }
 0x618   : > { %3178 = vmatmul.msk.f32.vlgmr.msrb.gmra.mxu1 %vm1241_vm9, %v1397_v30 }
 0x619   : > { %1646 = vmatpush.msrb.mxu1 %v3204_v52 }
 0x620   : > { %3193 = vmatmul.msk.f32.vlgmr.msra.gmra.mxu1 %vm1117_vm5, %v4175_v29 }
 0x695   : > { %v1421_v37 = vpop.f32.mrf.mxu1 }
 0x696   : > { %3180 = vmatmul.msk.f32.vlgmr.msrb.gmra.mxu2 %vm1202_vm7, %v1421_v37 }
 0x697   : > { %1674 = vmatpush.msrb.mxu2 %v3209_v36 }
 0x699   : > { %1675 = vmatpush.msrb.mxu2 %v3208_v38  ;;  %v3429_v38 = vld [vmem:[%s4986_s5] ss:$0 sm:$0xff] }
 0x69b   : > { %1676 = vmatpush.msrb.mxu2 %v3207_v39 }
 0x69d   : > { %v1530_v45 = vpop.f32.mrf.mxu1  ;;  %1677 = vmatpush.msrb.mxu2 %v3206_v43 }
 0x69e   : > { %v1531_v46 = vadd.f32 %v3424_v42, %v1530_v45  ;;  %3199 = vmatmul.msk.f32.vlgmr.msra.gmra.mxu2 %vm1117_vm5, %v4175_v29 }
 0x6a0   : > { %3200 = vmatpush.xpose.msk.msra.mxu3 %vm1202_vm7, %v1531_v46 }
 0x6a3   : > { %3201 = vmatmul.msk.f32.vlgmr.msra.gmra.mxu3 %vm1202_vm7, %v1502_v48  ;;  %v1871_v48 = vld [vmem:[%s4987_s17 + $0x8] sm:$0xff] }
 0x6a4   : > { %1705 = vmatpush.msrb.mxu3 %v3215_v47  ;;  %v1873_v47 = vld [vmem:[%s4987_s17 + $0x18] sm:$0xff] }
 0x6a6   : > { %1706 = vmatpush.msrb.mxu3 %v3214_v49  ;;  %3211 = vmatmul.msk.f32.vlgmr.msrb.gmra.mxu2 %vm1117_vm5, %v4175_v29  ;;  %v1870_v49 = vld [vmem:[%s4987_s17] sm:$0xff] }
 0x6a8   : > { %1707 = vmatpush.msrb.mxu3 %v3213_v50 }
 0x6aa   : > { %1708 = vmatpush.msrb.mxu3 %v3212_v51 }
 0x6ab   : > { %3217 = vmatmul.msk.f32.vlgmr.msrb.gmra.mxu3 %vm1117_vm5, %v4175_v29 }
 0x6ac   : > { %1826 = vmatpush.msra.mxu3 %v3228_v34 }
 0x719   : > { %v1446_v55 = vpop.f32.mrf.mxu2 }
 0x71a   : > { %v1470_v56 = vadd.f32 %v1469_v54, %v1446_v55 }
 0x721   : > { %v1560_v58 = vpop.f32.mrf.mxu2 }
 0x722   : > { %v1561_v59 = vadd.f32 %v3425_v57, %v1560_v58 }
 0x724   : > { %3202 = vmatpush.msk.msrb.mxu0 %vm1245_vm6, %v1561_v59 }
 0x726   : > { %v1586_v60 = vpop.f32.mrf.mxu3  ;;  %1735 = vmatpush.msra.mxu0 %v3221_v7 }
 0x727   : > { %v1589_v62 = vsel %vm1229_vm8, %v1586_v60, -inf }
 0x728   : > { %1590 = vmax.xlane.f32.xlu0 %v1589_v62  ;;  %1736 = vmatpush.msra.mxu0 %v3220_v8  ;;  %v1953_v8 = vld [vmem:[%s4912_s13 + $0x60] sm:$0xff] }
 0x729   : > { %v1679_v15 = vpop.f32.mrf.mxu2 }
 0x72a   : > { %1737 = vmatpush.msra.mxu0 %v3219_v9  ;;  %v1680_v17 = vadd.f32 %v3426_v14, %v1679_v15  ;;  %v1950_v14 = vld [vmem:[%s4912_s13 + $0x48] sm:$0xff] }
 0x72c   : > { %1738 = vmatpush.msra.mxu0 %v3218_v10  ;;  %v1682_v19 = vmul.f32 0.35355338, %v1680_v17  ;;  %v1952_v10 = vld [vmem:[%s4912_s13 + $0x58] sm:$0xff] }
 0x72e   : > { %v1710_v0 = vpop.f32.mrf.mxu3 }
 0x72f   : > { %v1711_v1 = vadd.f32 %v3427_v63, %v1710_v0  ;;  %v3431_v0 = vld [vmem:[%s4989_s3] ss:$0 sm:$0xff] }
 0x731   : > { %3224 = vmatpush.xpose.msk.msra.mxu1 %vm1202_vm7, %v1711_v1 }
 0x79b   : > { %v1591_v2 = vpop.xlane.xlu0 %1590 }
 0x79c   : > { %v1592_v3 = vsub.f32 %v1586_v60, %v1591_v2  ;;  %v3430_v60 = vld [vmem:[%s4988_s30] ss:$0 sm:$0xff] }
 0x79e   : > { %v1593_v4 = vmul.f32 1.442695, %v1592_v3  ;;  %v1956_v3 = vld [vmem:[%s4912_s13 + $0x78] sm:$0xff] }
 0x7a0   : > { %3467 = vpow2.f32 %v1593_v4  ;;  %v1955_v4 = vld [vmem:[%s4912_s13 + $0x70] sm:$0xff] }
 0x7a6   : > { %v3468_v5 = vpop.eup %3467 }
 0x7a7   : > { %v1595_v6 = vsel %vm1229_vm8, %v3468_v5, 0.0 }
 0x7a8   : > { %1596 = vadd.xlane.f32.xlu1 %v1595_v6  ;;  %v1954_v6 = vld [vmem:[%s4912_s13 + $0x68] sm:$0xff] }
 0x81b   : > { %v1597_v11 = vpop.xlane.xlu1 %1596 }
 0x81c   : > { %3469 = vrcp.f32 %v1597_v11 }
 0x822   : > { %v3470_v12 = vpop.eup %3469 }
 0x823   : > { %v1599_v13 = vmul.f32 %v3470_v12, %v3468_v5  ;;  %v3432_v5 = vld [vmem:[%s4911_s12] ss:$0 sm:$0xff]  ;;  %v1951_v12 = vld [vmem:[%s4912_s13 + $0x50] sm:$0xff] }
 0x825   : > { %3203 = vmatmul.msk.f32.vlgmr.msrb.gmra.mxu0 %vm1241_vm9, %v1599_v13 }
 0x826   : > { %1893 = vmatpush.msrb.mxu0 %v1873_v47 }
 0x82d   : > { %3223 = vmatmul.msk.f32.vlgmr.msra.gmra.mxu0 %vm1117_vm5, %v4175_v29 }
 0x8a2   : > { %v1623_v16 = vpop.f32.mrf.mxu0 }
 0x8a3   : > { %3205 = vmatmul.msk.f32.vlgmr.msrb.gmra.mxu1 %vm1202_vm7, %v1623_v16  ;;  %v1949_v16 = vld [vmem:[%s4912_s13 + $0x40] sm:$0xff] }
 0x8a4   : > { %1957 = vmatpush.msrb.mxu1 %v1956_v3 }
 0x8a6   : > { %1958 = vmatpush.msrb.mxu1 %v1955_v4  ;;  %v3236_v4 = vld [vmem:[%s4980_s22 + $0x198] sm:$0xff] }
 0x8a8   : > { %1959 = vmatpush.msrb.mxu1 %v1954_v6  ;;  %v3284_v6 = vld [vmem:[%s4980_s22 + $0x1d8] sm:$0xff] }
 0x8aa   : > { %v1740_v20 = vpop.f32.mrf.mxu0  ;;  %1960 = vmatpush.msrb.mxu1 %v1953_v8  ;;  %v3241_v8 = vld [vmem:[%s4980_s22 + $0x210] sm:$0xff] }
 0x8ab   : > { %v1741_v21 = vadd.f32 %v3428_v18, %v1740_v20  ;;  %3225 = vmatmul.msk.f32.vlgmr.msra.gmra.mxu1 %vm1202_vm7, %v1682_v19  ;;  %v1948_v18 = vld [vmem:[%s4912_s13 + $0x38] sm:$0xff]  ;;  %v1947_v19 = vld [vmem:[%s4912_s13 + $0x30] sm:$0xff]  ;;  %v1946_v20 = vld [vmem:[%s4912_s13 + $0x28] sm:$0xff] }
 0x8ac   : > { %1961 = vmatpush.msrb.mxu1 %v1952_v10  ;;  %v3283_v10 = vld [vmem:[%s4980_s22 + $0x1d0] sm:$0xff] }
 0x8ad   : > { %3226 = vmatpush.msk.msra.mxu2 %vm1245_vm6, %v1741_v21  ;;  %v1945_v21 = vld [vmem:[%s4912_s13 + $0x20] sm:$0xff] }
 0x8ae   : > { %1962 = vmatpush.msrb.mxu1 %v1951_v12  ;;  %v3240_v12 = vld [vmem:[%s4980_s22 + $0x208] sm:$0xff] }
 0x8af   : > { %2042 = vmatpush.msrb.mxu2 %v3236_v4 }
 0x8b0   : > { %1963 = vmatpush.msrb.mxu1 %v1950_v14  ;;  %v3282_v14 = vld [vmem:[%s4980_s22 + $0x1c8] sm:$0xff] }
 0x8b2   : > { %1964 = vmatpush.msrb.mxu1 %v1949_v16  ;;  %v3239_v16 = vld [vmem:[%s4980_s22 + $0x200] sm:$0xff] }
 0x8b4   : > { %1965 = vmatpush.msrb.mxu1 %v1948_v18  ;;  %v3281_v18 = vld [vmem:[%s4980_s22 + $0x1c0] sm:$0xff] }
 0x8b6   : > { %1966 = vmatpush.msrb.mxu1 %v1947_v19  ;;  %v3259_v19 = vld [vmem:[%s4980_s22 + $0x1b8] sm:$0xff] }
 0x8b8   : > { %1967 = vmatpush.msrb.mxu1 %v1946_v20  ;;  %v3258_v20 = vld [vmem:[%s4980_s22 + $0x1b0] sm:$0xff] }
 0x8ba   : > { %1968 = vmatpush.msrb.mxu1 %v1945_v21 }
 0x920   : > { %v1648_v29 = vpop.f32.mrf.mxu1 }
 0x921   : > { %v1651_v22 = vadd.f32 %v1648_v29, %v1470_v56 }
 0x928   : > { %v1766_v23 = vpop.f32.mrf.mxu1 }
 0x929   : > { %v1769_v24 = vsel %vm1229_vm8, %v1766_v23, -inf }
 0x92a   : > { %1770 = vmax.xlane.f32.xlu2 %v1769_v24 }
 0x99d   : > { %v1771_v25 = vpop.xlane.xlu2 %1770 }
 0x99e   : > { %v1772_v26 = vsub.f32 %v1766_v23, %v1771_v25  ;;  %v1944_v23 = vld [vmem:[%s4912_s13 + $0x18] sm:$0xff]  ;;  %v1943_v25 = vld [vmem:[%s4912_s13 + $0x10] sm:$0xff] }
 0x99f   : > { %1969 = vmatpush.msrb.mxu1 %v1944_v23  ;;  %v3256_v23 = vld [vmem:[%s4980_s22 + $0x1a0] sm:$0xff] }
 0x9a0   : > { %v1773_v27 = vmul.f32 1.442695, %v1772_v26 }
 0x9a1   : > { %1970 = vmatpush.msrb.mxu1 %v1943_v25 }
 0x9a2   : > { %3471 = vpow2.f32 %v1773_v27 }
 0x9a8   : > { %v3472_v28 = vpop.eup %3471 }
 0x9a9   : > { %v1775_v30 = vsel %vm1229_vm8, %v3472_v28, 0.0 }
 0x9aa   : > { %1776 = vadd.xlane.f32.xlu0 %v1775_v30  ;;  %v1942_v30 = vld [vmem:[%s4912_s13 + $0x8] sm:$0xff] }
 0x9ab   : > { %1971 = vmatpush.msrb.mxu1 %v1942_v30 }
 0xa1d   : > { %v1777_v31 = vpop.xlane.xlu0 %1776 }
 0xa1e   : > { %3473 = vrcp.f32 %v1777_v31  ;;  %v1941_v31 = vld [vmem:[%s4912_s13] sm:$0xff] }
 0xa1f   : > { %1972 = vmatpush.msrb.mxu1 %v1941_v31 }
 0xa21   : > { %2400 = vmatpush.msra.mxu1 %v3284_v6  ;;  %v3271_v6 = vld [vmem:[%s4980_s22 + $0x2b8] sm:$0xff] }
 0xa23   : > { %2401 = vmatpush.msra.mxu1 %v3283_v10 }
 0xa24   : > { %v3474_v32 = vpop.eup %3473 }
 0xa25   : > { %v1779_v33 = vmul.f32 %v3474_v32, %v3472_v28  ;;  %2402 = vmatpush.msra.mxu1 %v3282_v14 }
 0xa27   : > { %3227 = vmatmul.msk.f32.vlgmr.msra.gmra.mxu2 %vm1241_vm9, %v1779_v33  ;;  %2403 = vmatpush.msra.mxu1 %v3281_v18  ;;  %v3255_v18 = vld [vmem:[%s4985_s6 + $0x20] sm:$0xff] }
 0xaaa   : > { %v1803_v35 = vpop.f32.mrf.mxu2 }
 0xaab   : > { %3229 = vmatmul.msk.f32.vlgmr.msra.gmra.mxu3 %vm1202_vm7, %v1803_v35 }
 0xb2e   : > { %v1828_v36 = vpop.f32.mrf.mxu3 }
 0xb2f   : > { %v1831_v37 = vadd.f32 %v1828_v36, %v1651_v22 }
 0xb31   : > { %v1832_v39 = vadd.f32 %v1831_v37, %v4123_v53  ;;  %v1872_v53 = vld [vmem:[%s4987_s17 + $0x10] sm:$0xff] }
 0xb32   : > { %1894 = vmatpush.msrb.mxu0 %v1872_v53 }
 0xb33   : > { %v4389_v40 = vadd.f32 %v3429_v38, %v1832_v39 }
 0xb34   : > { %1895 = vmatpush.msrb.mxu0 %v1871_v48 }
 0xb35   : > { %v1840_v41 = vsel %vm1071_vm0, %v4389_v40, 0.0 }
 0xb36   : > { %1841 = vadd.xlane.f32.xlu1 %v1840_v41  ;;  %1896 = vmatpush.msrb.mxu0 %v1870_v49 }
 0xba9   : > { %v1842_v42 = vpop.xlane.xlu1 %1841 }
 0xbaa   : > { %v1843_v43 = vmul.f32 %v1842_v42, %v4127_v61 }
 0xbac   : > { %v1844_v44 = vsub.f32 %v4389_v40, %v1843_v43 }
 0xbae   : > { %v1845_v45 = vmul.f32 %v1844_v44, %v1844_v44 }
 0xbb0   : > { %v1846_v46 = vsel %vm1071_vm0, %v1845_v45, 0.0 }
 0xbb1   : > { %1847 = vadd.xlane.f32.xlu2 %v1846_v46 }
 0xc24   : > { %v1848_v50 = vpop.xlane.xlu2 %1847 }
 0xc25   : > { %v1849_v51 = vmul.f32 %v1848_v50, %v4127_v61 }
 0xc27   : > { %v1850_v52 = vadd.f32 1e-06, %v1849_v51 }
 0xc29   : > { %3475 = vrsqrt.f32 %v1850_v52  ;;  %vm1857_vm11 = vweird.f32 %v1850_v52 }
 0xc2f   : > { %v3476_v54 = vpop.eup %3475 }
 0xc30   : > { %v1852_v55 = vmul.f32 %v3476_v54, %v1850_v52  ;;  %vm1858_vm10 = vweird.f32 %v3476_v54 }
 0xc31   : > { %vm1859_vm12 = vmor %vm1857_vm11, %vm1858_vm10 }
 0xc32   : > { %v1853_v56 = vmul.f32 %v3476_v54, %v1852_v55 }
 0xc34   : > { %v1854_v57 = vmul.f32 0.5, %v1853_v56 }
 0xc36   : > { %v1855_v58 = vsub.f32 1.5, %v1854_v57  ;;  %v3433_v57 = vld [vmem:[%s4913_s14] ss:$0 sm:$0xff] }
 0xc38   : > { %v1856_v59 = vmul.f32 %v3476_v54, %v1855_v58 }
 0xc3a   : > { %v1860_v62 = vsel %vm1859_vm12, %v3476_v54, %v1856_v59 }
 0xc3b   : > { %v1861_v63 = vmul.f32 %v1860_v62, %v1844_v44 }
 0xc3d   : > { %v1865_v1 = vmul.f32 %v3430_v60, %v1861_v63 }
 0xc3f   : > { %v1869_v2 = vadd.f32 %v3431_v0, %v1865_v1 }
 0xc41   : > { %3230 = vmatmul.msk.f32.vlgmr.msrb.gmra.mxu0 %vm1117_vm5, %v1869_v2 }
 0xcbe   : > { %v1898_v7 = vpop.f32.mrf.mxu0 }
 0xcbf   : > { %v4431_v9 = vadd.f32 %v3432_v5, %v1898_v7  ;;  %v3248_v5 = vld [vmem:[%s4980_s22 + $0x298] sm:$0xff]  ;;  %v3235_v7 = vld [vmem:[%s4980_s22 + $0x190] sm:$0xff] }
 0xcc0   : > { %2103 = vmatpush.msra.mxu0 %v3248_v5  ;;  %2043 = vmatpush.msrb.mxu2 %v3235_v7  ;;  %v3270_v7 = vld [vmem:[%s4980_s22 + $0x2b0] sm:$0xff] }
 0xcc1   : > { %v1902_v11 = vmul.f32 0.70710677, %v4431_v9  ;;  %v1901_v54 = vmul.f32 0.5, %v4431_v9  ;;  %v3247_v9 = vld [vmem:[%s4980_s22 + $0x290] sm:$0xff] }
 0xcc2   : > { %2104 = vmatpush.msra.mxu0 %v3247_v9  ;;  %v3268_v9 = vld [vmem:[%s4980_s22 + $0x2a0] sm:$0xff] }
 0xcc3   : > { %v1903_v13 = vand.u32 2147483647, %v1902_v11  ;;  %vm1936_vm2 = vcmp.ge.f32.partialorder %v1902_v11, 0.0  ;;  %v3234_v11 = vld [vmem:[%s4980_s22 + $0x188] sm:$0xff] }
 0xcc4   : > { %2044 = vmatpush.msrb.mxu2 %v3234_v11 }
 0xcc5   : > { %v1904_v15 = vmul.f32 0.3275911, %v1903_v13  ;;  %v1930_v36 = vmul.f32 %v1903_v13, %v1903_v13  ;;  %v3246_v13 = vld [vmem:[%s4980_s22 + $0x288] sm:$0xff] }
 0xcc6   : > { %2105 = vmatpush.msra.mxu0 %v3246_v13 }
 0xcc7   : > { %v1905_v17 = vadd.f32 1.0, %v1904_v15  ;;  %v1931_v39 = vsub.f32 0.0, %v1930_v36  ;;  %v3233_v15 = vld [vmem:[%s4980_s22 + $0x180] sm:$0xff] }
 0xcc8   : > { %2045 = vmatpush.msrb.mxu2 %v3233_v15 }
 0xcc9   : > { %3477 = vrcp.f32 %v1905_v17  ;;  %v1917_v26 = vand.u32 2147483648, %v1905_v17  ;;  %v1915_v28 = vand.u32 2147483647, %v1905_v17  ;;  %vm1911_vm14 = vweird.f32 %v1905_v17 }
 0xcca   : > { %v1932_v43 = vmul.f32 1.442695, %v1931_v39 }
 0xccb   : > { %v1918_v33 = vor.u32 1.1754944e-38, %v1917_v26  ;;  %vm1916_vm1 = vcmp.eq.f32.partialorder %v1915_v28, 8.507059e+37 }
 0xccc   : > { %3479 = vpow2.f32 %v1932_v43  ;;  %v3439_v43 = vld [vmem:[%s4984_s9 + $0x10] ss:$0 sm:$0xff] }
 0xccf   : > { %v3478_v29 = vpop.eup %3477 }
 0xcd0   : > { %v1907_v22 = vmul.f32 %v3478_v29, %v1905_v17  ;;  %vm1912_vm13 = vweird.f32 %v3478_v29  ;;  %v3245_v17 = vld [vmem:[%s4980_s22 + $0x280] sm:$0xff] }
 0xcd1   : > { %vm1913_vm15 = vmor %vm1911_vm14, %vm1912_vm13  ;;  %2106 = vmatpush.msra.mxu0 %v3245_v17 }
 0xcd2   : > { %v1908_v24 = vsub.f32 1.0, %v1907_v22  ;;  %v3480_v48 = vpop.eup %3479 }
 0xcd3   : > { %2198 = vmatpush.msrb.mxu0 %v3259_v19 }
 0xcd4   : > { %v1909_v27 = vmul.f32 %v3478_v29, %v1908_v24 }
 0xcd5   : > { %2199 = vmatpush.msrb.mxu0 %v3258_v20 }
 0xcd6   : > { %v1910_v32 = vadd.f32 %v3478_v29, %v1909_v27 }
 0xcd8   : > { %v1914_v34 = vsel %vm1913_vm15, %v3478_v29, %v1910_v32  ;;  %v3257_v29 = vld [vmem:[%s4980_s22 + $0x1a8] sm:$0xff]  ;;  %v3434_v32 = vld [vmem:[%s4982_s11 + $0x1] ss:$0 sm:$0xff] }
 0xcd9   : > { %v1919_v35 = vsel %vm1916_vm1, %v1918_v33, %v1914_v34  ;;  %2200 = vmatpush.msrb.mxu0 %v3257_v29  ;;  %v3435_v34 = vld [vmem:[%s4983_s7 + $0x1] ss:$0 sm:$0xff]  ;;  %s3044_s7 = sshll.u32 %s3040_s4, 4  ;;  %s3045_s7 = int_to_ptr.hbm [resolvable:$true] %s3044_s7 }
 0xcda   : > { %v1921_v37 = vmul.f32 1.0614054, %v1919_v35  ;;  %s3555_s26 = sshra.s32 %s3045_s7, 4  ;;  %s3556_s26 = int_to_ptr.hbm [resolvable:$true] %s3555_s26 }
 0xcdb   : > { %2201 = vmatpush.msrb.mxu0 %v3256_v23  ;;  %s3557_s20 = scalar_lea.hbm %s3556_s26, 1  ;;  %p3562_p3 = scmp.lt.s32.totalorder %s3556_s26, %s4991_s2 }
 0xcdc   : > { %v1922_v38 = vadd.f32 -1.4531521, %v1921_v37  ;;  %p3558_p0 = scmp.ne.s32.totalorder %s3556_s26, %s3557_s20  ;;  %p3563_p4 = scmp.lt.s32.totalorder %s3561_s1, %s3557_s20 }
 0xcde   : > { %v1923_v41 = vmul.f32 %v1922_v38, %v1919_v35  ;;  %v3436_v38 = vld [vmem:[%s4984_s9 + $0x14] ss:$0 sm:$0xff]  ;;  %p3559_p1 = pnand %p3558_p0, %p3800_p5  ;;  %p3564_p7 = por %p3563_p4, %p3562_p3 }
 0xce0   : > { %v1924_v42 = vadd.f32 1.4214138, %v1923_v41  ;;  %p3560_p2 = pneg %p3559_p1 }
 0xce2   : > { %v1925_v44 = vmul.f32 %v1924_v42, %v1919_v35  ;;  %v3438_v42 = vld [vmem:[%s4984_s9 + $0xc] ss:$0 sm:$0xff]  ;;  %p3565_p8 = pnand %p3564_p7, %p3560_p2 }
 0xce4   : > { %v1926_v45 = vadd.f32 -0.28449672, %v1925_v44 }
 0xce6   : > { %v1927_v46 = vmul.f32 %v1926_v45, %v1919_v35 }
 0xce8   : > { %v1928_v47 = vadd.f32 0.2548296, %v1927_v46 }
 0xcea   : > { %v1929_v53 = vmul.f32 %v1928_v47, %v1919_v35 }
 0xcec   : > { %v1934_v49 = vmul.f32 %v3480_v48, %v1929_v53  ;;  %v3265_v53 = vld [vmem:[%s4980_s22 + $0x238] sm:$0xff] }
 0xcee   : > { %v1935_v50 = vsub.f32 1.0, %v1934_v49  ;;  %v3264_v49 = vld [vmem:[%s4980_s22 + $0x230] sm:$0xff] }
 0xcf0   : > { %v1937_v51 = vsub.f32 0.0, %v1935_v50 }
 0xcf2   : > { %v1938_v52 = vsel %vm1936_vm2, %v1935_v50, %v1937_v51  ;;  %v3263_v50 = vld [vmem:[%s4980_s22 + $0x228] sm:$0xff]  ;;  %v3262_v51 = vld [vmem:[%s4980_s22 + $0x220] sm:$0xff] }
 0xcf3   : > { %v1939_v55 = vadd.f32 1.0, %v1938_v52 }
 0xcf5   : > { %v1940_v56 = vmul.f32 %v1939_v55, %v1901_v54  ;;  %v3440_v55 = vld [vmem:[%s4984_s9 + $0xd] ss:$0 sm:$0xff] }
 0xcf7   : > { %1973 = vmatmul.f32.vlgmr.msrb.gmra.mxu1 %v1940_v56 }
 0xd74   : > { %v1974_v58 = vpop.f32.mrf.mxu1 }
 0xd75   : > { %v1977_v59 = vadd.f32 %v1974_v58, %v4389_v40  ;;  %v3242_v40 = vld [vmem:[%s4980_s22 + $0x218] sm:$0xff] }
 0xd76   : > { %2073 = vmatpush.msrb.mxu3 %v3242_v40 }
 0xd77   : > { %v4475_v60 = vadd.f32 %v3433_v57, %v1977_v59  ;;  %v3441_v57 = vld [vmem:[%s4984_s9 + $0x11] ss:$0 sm:$0xff] }
 0xd78   : > { %2074 = vmatpush.msrb.mxu3 %v3241_v8  ;;  %v3269_v8 = vld [vmem:[%s4980_s22 + $0x2a8] sm:$0xff] }
 0xd79   : > { %v1987_v62 = vsel %vm1071_vm0, %v4475_v60, 0.0 }
 0xd7a   : > { %1988 = vadd.xlane.f32.xlu0 %v1987_v62  ;;  %2075 = vmatpush.msrb.mxu3 %v3240_v12 }
 0xd7c   : > { %2076 = vmatpush.msrb.mxu3 %v3239_v16 }
 0xded   : > { %v1989_v63 = vpop.xlane.xlu0 %1988 }
 0xdee   : > { %v1990_v0 = vmul.f32 %v1989_v63, %v4127_v61 }
 0xdf0   : > { %v1991_v1 = vsub.f32 %v4475_v60, %v1990_v0 }
 0xdf2   : > { %v1992_v2 = vmul.f32 %v1991_v1, %v1991_v1 }
 0xdf4   : > { %v1993_v3 = vsel %vm1071_vm0, %v1992_v2, 0.0 }
 0xdf5   : > { %1994 = vadd.xlane.f32.xlu1 %v1993_v3 }
 0xe68   : > { %v1995_v21 = vpop.xlane.xlu1 %1994 }
 0xe69   : > { %v1996_v22 = vmul.f32 %v1995_v21, %v4127_v61  ;;  %v3442_v21 = vld [vmem:[%s4984_s9 + $0x15] ss:$0 sm:$0xff] }
 0xe6b   : > { %v1997_v24 = vadd.f32 1e-06, %v1996_v22 }
 0xe6d   : > { %3481 = vrsqrt.f32 %v1997_v24  ;;  %vm2004_vm4 = vweird.f32 %v1997_v24 }
 0xe73   : > { %v3482_v25 = vpop.eup %3481 }
 0xe74   : > { %v1999_v26 = vmul.f32 %v3482_v25, %v1997_v24  ;;  %vm2005_vm3 = vweird.f32 %v3482_v25 }
 0xe75   : > { %vm2006_vm10 = vmor %vm2004_vm4, %vm2005_vm3  ;;  %vm3026_vm4 = vcmask 0  }
 0xe76   : > { %v2000_v27 = vmul.f32 %v3482_v25, %v1999_v26  ;;  %v3289_v26 = vld [vmem:[%s4980_s22 + $0x250] sm:$0xff] }
 0xe78   : > { %v2001_v28 = vmul.f32 0.5, %v2000_v27  ;;  %v3288_v27 = vld [vmem:[%s4980_s22 + $0x248] sm:$0xff] }
 0xe7a   : > { %v2002_v30 = vsub.f32 1.5, %v2001_v28  ;;  %v3287_v28 = vld [vmem:[%s4980_s22 + $0x240] sm:$0xff] }
 0xe7c   : > { %v2003_v31 = vmul.f32 %v3482_v25, %v2002_v30  ;;  %v3278_v30 = vld [vmem:[%s4985_s6 + $0x28] sm:$0xff] }
 0xe7e   : > { %v2007_v33 = vsel %vm2006_vm10, %v3482_v25, %v2003_v31  ;;  %v3290_v25 = vld [vmem:[%s4980_s22 + $0x258] sm:$0xff] }
 0xe7f   : > { %v2008_v35 = vmul.f32 %v2007_v33, %v1991_v1  ;;  %v3296_v31 = vld [vmem:[%s4980_s22 + $0x2d8] sm:$0xff]  ;;  %v3294_v33 = vld [vmem:[%s4980_s22 + $0x2c8] sm:$0xff] }
 0xe81   : > { %v2012_v36 = vmul.f32 %v3434_v32, %v2008_v35  ;;  %v3295_v32 = vld [vmem:[%s4980_s22 + $0x2d0] sm:$0xff]  ;;  %v3308_v35 = vld [vmem:[%s4980_s22 + $0x1f8] sm:$0xff] }
 0xe83   : > { %v4549_v37 = vadd.f32 %v3435_v34, %v2012_v36  ;;  %v3293_v34 = vld [vmem:[%s4980_s22 + $0x2c0] sm:$0xff] }
 0xe85   : > { %3238 = vmatmul.msk.f32.vlgmr.msrb.gmra.mxu2 %vm1117_vm5, %v4549_v37  ;;  %3244 = vmatmul.msk.f32.vlgmr.msrb.gmra.mxu3 %vm1117_vm5, %v4549_v37 }
 0xe86   : > { %3250 = vmatmul.msk.f32.vlgmr.msra.gmra.mxu0 %vm1117_vm5, %v4549_v37  ;;  %3286 = vmatmul.msk.f32.vlgmr.msra.gmra.mxu1 %vm1117_vm5, %v4549_v37 }
 0xe8e   : > { %3261 = vmatmul.msk.f32.vlgmr.msrb.gmra.mxu0 %vm1117_vm5, %v4549_v37 }
 0xf03   : > { %v2108_v39 = vpop.f32.mrf.mxu0 }
 0xf04   : > { %v2109_v41 = vadd.f32 %v3436_v38, %v2108_v39  ;;  %v3307_v38 = vld [vmem:[%s4980_s22 + $0x1f0] sm:$0xff]  ;;  %v3306_v39 = vld [vmem:[%s4980_s22 + $0x1e8] sm:$0xff] }
 0xf06   : > { %3253 = vmatpush.msk.msra.mxu3 %vm1245_vm6, %v2109_v41  ;;  %v3437_v41 = vld [vmem:[%s4984_s9 + $0xe] ss:$0 sm:$0xff] }
 0xf08   : > { %v2047_v44 = vpop.f32.mrf.mxu2  ;;  %v2078_v45 = vpop.f32.mrf.mxu3  ;;  %2259 = vmatpush.msrb.mxu3 %v3271_v6 }
 0xf09   : > { %v2048_v46 = vadd.f32 %v3438_v42, %v2047_v44  ;;  %v2079_v47 = vadd.f32 %v3439_v43, %v2078_v45  ;;  %v2405_v42 = vpop.f32.mrf.mxu1  ;;  %v3443_v43 = vld [vmem:[%s4984_s9 + $0x12] ss:$0 sm:$0xff]  ;;  %v3305_v44 = vld [vmem:[%s4980_s22 + $0x1e0] sm:$0xff] }
 0xf0a   : > { %2260 = vmatpush.msrb.mxu3 %v3270_v7  ;;  %v2406_v45 = vadd.f32 %v3437_v41, %v2405_v42  ;;  %v3320_v7 = vld [vmem:[%s4980_s22 + $0x2f8] sm:$0xff] }
 0xf0b   : > { %v2050_v48 = vmul.f32 0.35355338, %v2048_v46  ;;  %3251 = vmatpush.xpose.msk.msra.mxu2 %vm1202_vm7, %v2079_v47  ;;  %v2203_v56 = vpop.f32.mrf.mxu0 }
 0xf0c   : > { %v2204_v58 = vadd.f32 %v3440_v55, %v2203_v56  ;;  %2261 = vmatpush.msrb.mxu3 %v3269_v8  ;;  %v3319_v8 = vld [vmem:[%s4980_s22 + $0x2f0] sm:$0xff] }
 0xf0e   : > { %3252 = vmatmul.msk.f32.vlgmr.msra.gmra.mxu2 %vm1202_vm7, %v2050_v48  ;;  %v2206_v63 = vmul.f32 0.35355338, %v2204_v58  ;;  %2262 = vmatpush.msrb.mxu3 %v3268_v9  ;;  %v2408_v48 = vmul.f32 0.35355338, %v2406_v45  ;;  %v3318_v9 = vld [vmem:[%s4980_s22 + $0x2e8] sm:$0xff] }
 0xf0f   : > { %2229 = vmatpush.msrb.mxu2 %v3265_v53  ;;  %v3314_v53 = vld [vmem:[%s4980_s22 + $0x278] sm:$0xff] }
 0xf11   : > { %2230 = vmatpush.msrb.mxu2 %v3264_v49  ;;  %v3313_v49 = vld [vmem:[%s4980_s22 + $0x270] sm:$0xff] }
 0xf13   : > { %2231 = vmatpush.msrb.mxu2 %v3263_v50  ;;  %v3312_v50 = vld [vmem:[%s4980_s22 + $0x268] sm:$0xff] }
 0xf15   : > { %2232 = vmatpush.msrb.mxu2 %v3262_v51  ;;  %v3311_v51 = vld [vmem:[%s4980_s22 + $0x260] sm:$0xff] }
 0xf16   : > { %3267 = vmatmul.msk.f32.vlgmr.msrb.gmra.mxu2 %vm1117_vm5, %v4549_v37 }
 0xf91   : > { %v2134_v52 = vpop.f32.mrf.mxu2 }
 0xf92   : > { %v2137_v54 = vsel %vm1229_vm8, %v2134_v52, -inf }
 0xf93   : > { %2138 = vmax.xlane.f32.xlu2 %v2137_v54 }
 0xf99   : > { %v2234_v59 = vpop.f32.mrf.mxu2 }
 0xf9a   : > { %v2235_v62 = vadd.f32 %v3441_v57, %v2234_v59  ;;  %v3444_v57 = vld [vmem:[%s4984_s9 + $0x16] ss:$0 sm:$0xff] }
 0xf9c   : > { %3274 = vmatpush.xpose.msk.msra.mxu0 %vm1202_vm7, %v2235_v62 }
 0xf9f   : > { %3275 = vmatmul.msk.f32.vlgmr.msra.gmra.mxu0 %vm1202_vm7, %v2206_v63 }
 0xfa0   : > { %2373 = vmatpush.msrb.mxu0 %v3255_v18  ;;  %v3447_v18 = vld [vmem:[%s4984_s9 + $0x17] ss:$0 sm:$0xff] }
0x1006   : > { %v2139_v0 = vpop.xlane.xlu2 %2138 }
0x1007   : > { %v2140_v1 = vsub.f32 %v2134_v52, %v2139_v0  ;;  %v3303_v52 = vld [vmem:[%s4985_s6 + $0x30] sm:$0xff] }
0x1008   : > { %v3445_v0 = vld [vmem:[%s4984_s9 + $0x13] ss:$0 sm:$0xff] }
0x1009   : > { %v2141_v2 = vmul.f32 1.442695, %v2140_v1 }
0x100b   : > { %3483 = vpow2.f32 %v2141_v2 }
0x1011   : > { %v3484_v3 = vpop.eup %3483 }
0x1012   : > { %v2143_v4 = vsel %vm1229_vm8, %v3484_v3, 0.0 }
0x1013   : > { %2144 = vadd.xlane.f32.xlu0 %v2143_v4 }
0x101c   : > { %v2290_v40 = vpop.f32.mrf.mxu0 }
0x101d   : > { %v2293_v5 = vsel %vm1229_vm8, %v2290_v40, -inf }
0x101e   : > { %2294 = vmax.xlane.f32.xlu1 %v2293_v5 }
0x1086   : > { %v2145_v10 = vpop.xlane.xlu0 %2144 }
0x1087   : > { %3485 = vrcp.f32 %v2145_v10  ;;  %v3317_v10 = vld [vmem:[%s4980_s22 + $0x2e0] sm:$0xff] }
0x108d   : > { %v3486_v11 = vpop.eup %3485 }
0x108e   : > { %v2147_v12 = vmul.f32 %v3486_v11, %v3484_v3 }
0x1090   : > { %3254 = vmatmul.msk.f32.vlgmr.msra.gmra.mxu3 %vm1241_vm9, %v2147_v12 }
0x1091   : > { %v2295_v13 = vpop.xlane.xlu1 %2294  ;;  %2350 = vmatpush.msra.mxu3 %v3278_v30 }
0x1092   : > { %v2296_v14 = vsub.f32 %v2290_v40, %v2295_v13 }
0x1094   : > { %v2297_v15 = vmul.f32 1.442695, %v2296_v14  ;;  %v3446_v14 = vld [vmem:[%s4984_s9 + $0xf] ss:$0 sm:$0xff] }
0x1096   : > { %3487 = vpow2.f32 %v2297_v15 }
0x1098   : > { %3273 = vmatmul.msk.f32.vlgmr.msrb.gmra.mxu3 %vm1117_vm5, %v4549_v37 }
0x1099   : > { %2461 = vmatpush.msrb.mxu3 %v3296_v31 }
0x109b   : > { %2462 = vmatpush.msrb.mxu3 %v3295_v32 }
0x109c   : > { %v3488_v16 = vpop.eup %3487 }
0x109d   : > { %v2299_v17 = vsel %vm1229_vm8, %v3488_v16, 0.0  ;;  %2463 = vmatpush.msrb.mxu3 %v3294_v33  ;;  %v3327_v33 = vld [vmem:[%s4985_s6 + $0x38] sm:$0xff] }
0x109e   : > { %2300 = vadd.xlane.f32.xlu2 %v2299_v17 }
0x109f   : > { %2464 = vmatpush.msrb.mxu3 %v3293_v34 }
0x1111   : > { %v2301_v19 = vpop.xlane.xlu2 %2300 }
0x1112   : > { %3489 = vrcp.f32 %v2301_v19 }
0x1113   : > { %v2171_v20 = vpop.f32.mrf.mxu3 }
0x1114   : > { %3280 = vmatmul.msk.f32.vlgmr.msrb.gmra.mxu0 %vm1202_vm7, %v2171_v20 }
0x1118   : > { %v3490_v29 = vpop.eup %3489 }
0x1119   : > { %v2303_v24 = vmul.f32 %v3490_v29, %v3488_v16 }
0x111b   : > { %v2264_v22 = vpop.f32.mrf.mxu3 }
0x111c   : > { %v2265_v23 = vadd.f32 %v3442_v21, %v2264_v22 }
0x111e   : > { %3276 = vmatpush.msk.msra.mxu2 %vm1245_vm6, %v2265_v23 }
0x111f   : > { %3277 = vmatmul.msk.f32.vlgmr.msra.gmra.mxu2 %vm1241_vm9, %v2303_v24 }
0x1120   : > { %2431 = vmatpush.msrb.mxu2 %v3290_v25 }
0x1122   : > { %2432 = vmatpush.msrb.mxu2 %v3289_v26 }
0x1124   : > { %2433 = vmatpush.msrb.mxu2 %v3288_v27 }
0x1126   : > { %2434 = vmatpush.msrb.mxu2 %v3287_v28 }
0x1127   : > { %3292 = vmatmul.msk.f32.vlgmr.msrb.gmra.mxu2 %vm1117_vm5, %v4549_v37 }
0x1128   : > { %2552 = vmatpush.msra.mxu2 %v3303_v52 }
0x1191   : > { %v2375_v54 = vpop.f32.mrf.mxu0 }
0x11a2   : > { %v2327_v36 = vpop.f32.mrf.mxu2 }
0x11a3   : > { %3279 = vmatmul.msk.f32.vlgmr.msra.gmra.mxu3 %vm1202_vm7, %v2327_v36 }
0x11a4   : > { %2580 = vmatpush.msra.mxu3 %v3308_v35 }
0x11a6   : > { %2581 = vmatpush.msra.mxu3 %v3307_v38  ;;  %v3448_v38 = vld [vmem:[%s4986_s5 + $0x1] ss:$0 sm:$0xff]  ;;  %s832_s5 = scalar_lea.vmem [#allocation8], %s831_s29 }
0x11a7   : > { %s3042_s6 = sshll.u32 %s832_s5, 4  ;;  %s3043_s6 = int_to_ptr.vmem [resolvable:$true] %s3042_s6 }
0x11a8   : > { %2582 = vmatpush.msra.mxu3 %v3306_v39 }
0x11aa   : > { %v2436_v46 = vpop.f32.mrf.mxu2  ;;  %2583 = vmatpush.msra.mxu3 %v3305_v44 }
0x11ab   : > { %v2437_v47 = vadd.f32 %v3443_v43, %v2436_v46  ;;  %3298 = vmatmul.msk.f32.vlgmr.msrb.gmra.mxu3 %vm1117_vm5, %v4549_v37 }
0x11ad   : > { %3299 = vmatpush.xpose.msk.msra.mxu0 %vm1202_vm7, %v2437_v47 }
0x11b0   : > { %3300 = vmatmul.msk.f32.vlgmr.msra.gmra.mxu0 %vm1202_vm7, %v2408_v48  ;;  %v3333_v48 = vld [vmem:[%s4987_s17 + $0x28] sm:$0xff] }
0x11b1   : > { %2611 = vmatpush.msrb.mxu0 %v3314_v53  ;;  %v3335_v53 = vld [vmem:[%s4987_s17 + $0x38] sm:$0xff] }
0x11b3   : > { %2612 = vmatpush.msrb.mxu0 %v3313_v49  ;;  %3310 = vmatmul.msk.f32.vlgmr.msra.gmra.mxu3 %vm1117_vm5, %v4549_v37  ;;  %v3332_v49 = vld [vmem:[%s4987_s17 + $0x20] sm:$0xff] }
0x11b5   : > { %2613 = vmatpush.msrb.mxu0 %v3312_v50 }
0x11b7   : > { %2614 = vmatpush.msrb.mxu0 %v3311_v51 }
0x11b8   : > { %3316 = vmatmul.msk.f32.vlgmr.msrb.gmra.mxu0 %vm1117_vm5, %v4549_v37 }
0x11b9   : > { %2732 = vmatpush.msra.mxu0 %v3327_v33 }
0x1226   : > { %v2352_v55 = vpop.f32.mrf.mxu3 }
0x1227   : > { %v2376_v56 = vadd.f32 %v2375_v54, %v2352_v55 }
0x122d   : > { %v2492_v58 = vpop.f32.mrf.mxu0 }
0x122e   : > { %v2466_v59 = vpop.f32.mrf.mxu3  ;;  %v2495_v62 = vsel %vm1229_vm8, %v2492_v58, -inf }
0x122f   : > { %v2467_v63 = vadd.f32 %v3444_v57, %v2466_v59  ;;  %2496 = vmax.xlane.f32.xlu0 %v2495_v62  ;;  %v3449_v62 = vld [vmem:[%s4988_s30 + $0x1] ss:$0 sm:$0xff] }
0x1231   : > { %3301 = vmatpush.msk.msrb.mxu1 %vm1245_vm6, %v2467_v63 }
0x1233   : > { %2641 = vmatpush.msra.mxu1 %v3320_v7 }
0x1235   : > { %v2616_v1 = vpop.f32.mrf.mxu0  ;;  %2642 = vmatpush.msra.mxu1 %v3319_v8  ;;  %v3350_v8 = vld [vmem:[%s4912_s13 + $0xe0] sm:$0xff] }
0x1236   : > { %v2617_v2 = vadd.f32 %v3445_v0, %v2616_v1  ;;  %v2585_v15 = vpop.f32.mrf.mxu3  ;;  %v3450_v1 = vld [vmem:[%s4989_s3 + $0x1] ss:$0 sm:$0xff] }
0x1237   : > { %2643 = vmatpush.msra.mxu1 %v3318_v9  ;;  %v2586_v17 = vadd.f32 %v3446_v14, %v2585_v15  ;;  %v3347_v14 = vld [vmem:[%s4912_s13 + $0xc8] sm:$0xff] }
0x1238   : > { %3323 = vmatpush.xpose.msk.msrb.mxu2 %vm1202_vm7, %v2617_v2 }
0x1239   : > { %2644 = vmatpush.msra.mxu1 %v3317_v10  ;;  %v2588_v19 = vmul.f32 0.35355338, %v2586_v17  ;;  %v3349_v10 = vld [vmem:[%s4912_s13 + $0xd8] sm:$0xff] }
0x12a2   : > { %v2497_v3 = vpop.xlane.xlu0 %2496 }
0x12a3   : > { %v2498_v4 = vsub.f32 %v2492_v58, %v2497_v3 }
0x12a5   : > { %v2499_v40 = vmul.f32 1.442695, %v2498_v4  ;;  %v3353_v4 = vld [vmem:[%s4912_s13 + $0xf8] sm:$0xff] }
0x12a7   : > { %3491 = vpow2.f32 %v2499_v40  ;;  %v3352_v40 = vld [vmem:[%s4912_s13 + $0xf0] sm:$0xff] }
0x12ad   : > { %v3492_v5 = vpop.eup %3491 }
0x12ae   : > { %v2501_v6 = vsel %vm1229_vm8, %v3492_v5, 0.0 }
0x12af   : > { %2502 = vadd.xlane.f32.xlu1 %v2501_v6  ;;  %v3351_v6 = vld [vmem:[%s4912_s13 + $0xe8] sm:$0xff] }
0x1322   : > { %v2503_v11 = vpop.xlane.xlu1 %2502 }
0x1323   : > { %3493 = vrcp.f32 %v2503_v11 }
0x1329   : > { %v3494_v12 = vpop.eup %3493 }
0x132a   : > { %v2505_v13 = vmul.f32 %v3494_v12, %v3492_v5  ;;  %v3451_v5 = vld [vmem:[%s4911_s12 + $0x1] ss:$0 sm:$0xff]  ;;  %v3348_v12 = vld [vmem:[%s4912_s13 + $0xd0] sm:$0xff] }
0x132c   : > { %3302 = vmatmul.msk.f32.vlgmr.msrb.gmra.mxu1 %vm1241_vm9, %v2505_v13 }
0x132d   : > { %2804 = vmatpush.msrb.mxu1 %v3335_v53 }
0x1334   : > { %3322 = vmatmul.msk.f32.vlgmr.msra.gmra.mxu1 %vm1117_vm5, %v4549_v37 }
0x13a9   : > { %v2529_v16 = vpop.f32.mrf.mxu1 }
0x13aa   : > { %3304 = vmatmul.msk.f32.vlgmr.msra.gmra.mxu2 %vm1202_vm7, %v2529_v16  ;;  %v3346_v16 = vld [vmem:[%s4912_s13 + $0xc0] sm:$0xff] }
0x13ab   : > { %2869 = vmatpush.msra.mxu2 %v3353_v4 }
0x13ad   : > { %2870 = vmatpush.msra.mxu2 %v3352_v40 }
0x13af   : > { %2871 = vmatpush.msra.mxu2 %v3351_v6 }
0x13b1   : > { %v2646_v20 = vpop.f32.mrf.mxu1  ;;  %2872 = vmatpush.msra.mxu2 %v3350_v8 }
0x13b2   : > { %v2647_v21 = vadd.f32 %v3447_v18, %v2646_v20  ;;  %3324 = vmatmul.msk.f32.vlgmr.msrb.gmra.mxu2 %vm1202_vm7, %v2588_v19  ;;  %v3345_v18 = vld [vmem:[%s4912_s13 + $0xb8] sm:$0xff]  ;;  %v3344_v19 = vld [vmem:[%s4912_s13 + $0xb0] sm:$0xff]  ;;  %v3343_v20 = vld [vmem:[%s4912_s13 + $0xa8] sm:$0xff] }
0x13b3   : > { %2873 = vmatpush.msra.mxu2 %v3349_v10 }
0x13b4   : > { %3325 = vmatpush.msk.msrb.mxu3 %vm1245_vm6, %v2647_v21  ;;  %v3342_v21 = vld [vmem:[%s4912_s13 + $0xa0] sm:$0xff] }
0x13b5   : > { %2874 = vmatpush.msra.mxu2 %v3348_v12  ;;  %v3453_v12 = vld [vmem:[%s4914_s15] ss:$0 sm:$0xff] }
0x13b7   : > { %2875 = vmatpush.msra.mxu2 %v3347_v14 }
0x13b9   : > { %2876 = vmatpush.msra.mxu2 %v3346_v16  ;;  %v2928_v16 = vld [vmem:[#allocation5] sm:$0x1] }
0x13bb   : > { %2877 = vmatpush.msra.mxu2 %v3345_v18 }
0x13bd   : > { %2878 = vmatpush.msra.mxu2 %v3344_v19 }
0x13bf   : > { %2879 = vmatpush.msra.mxu2 %v3343_v20 }
0x13c1   : > { %2880 = vmatpush.msra.mxu2 %v3342_v21  ;;  %v3611_v21 = vmov 0  }
0x13c2   : > { %3412 = vset.pattern.permute.xlu1 %v3611_v21  ;;  %3413 = vset.pattern.permute.xlu0 %v3611_v21 }
0x13c3   : > { %3414 = vset.pattern.permute.xlu2 %v3611_v21 }
0x142d   : > { %v2554_v37 = vpop.f32.mrf.mxu2 }
0x142e   : > { %v2557_v29 = vadd.f32 %v2554_v37, %v2376_v56 }
0x1435   : > { %v2672_v22 = vpop.f32.mrf.mxu2 }
0x1436   : > { %v2675_v23 = vsel %vm1229_vm8, %v2672_v22, -inf }
0x1437   : > { %2676 = vmax.xlane.f32.xlu2 %v2675_v23 }
0x14aa   : > { %v2677_v24 = vpop.xlane.xlu2 %2676 }
0x14ab   : > { %v2678_v25 = vsub.f32 %v2672_v22, %v2677_v24  ;;  %v3341_v22 = vld [vmem:[%s4912_s13 + $0x98] sm:$0xff]  ;;  %v3340_v24 = vld [vmem:[%s4912_s13 + $0x90] sm:$0xff] }
0x14ac   : > { %2881 = vmatpush.msra.mxu2 %v3341_v22 }
0x14ad   : > { %v2679_v26 = vmul.f32 1.442695, %v2678_v25 }
0x14ae   : > { %2882 = vmatpush.msra.mxu2 %v3340_v24 }
0x14af   : > { %3495 = vpow2.f32 %v2679_v26 }
0x14b5   : > { %v3496_v27 = vpop.eup %3495 }
0x14b6   : > { %v2681_v28 = vsel %vm1229_vm8, %v3496_v27, 0.0 }
0x14b7   : > { %2682 = vadd.xlane.f32.xlu0 %v2681_v28  ;;  %v3339_v28 = vld [vmem:[%s4912_s13 + $0x88] sm:$0xff] }
0x14b8   : > { %2883 = vmatpush.msra.mxu2 %v3339_v28 }
0x152a   : > { %v2683_v30 = vpop.xlane.xlu0 %2682 }
0x152b   : > { %3497 = vrcp.f32 %v2683_v30  ;;  %v3338_v30 = vld [vmem:[%s4912_s13 + $0x80] sm:$0xff] }
0x152c   : > { %2884 = vmatpush.msra.mxu2 %v3338_v30 }
0x1531   : > { %v3498_v31 = vpop.eup %3497 }
0x1532   : > { %v2685_v32 = vmul.f32 %v3498_v31, %v3496_v27 }
0x1534   : > { %3326 = vmatmul.msk.f32.vlgmr.msrb.gmra.mxu3 %vm1241_vm9, %v2685_v32 }
0x15b7   : > { %v2709_v34 = vpop.f32.mrf.mxu3 }
0x15b8   : > { %3328 = vmatmul.msk.f32.vlgmr.msra.gmra.mxu0 %vm1202_vm7, %v2709_v34 }
0x1635   : > { %v2734_v35 = vpop.f32.mrf.mxu0 }
0x1636   : > { %v2737_v36 = vadd.f32 %v2734_v35, %v2557_v29 }
0x1638   : > { %v2738_v39 = vadd.f32 %v2737_v36, %v4475_v60  ;;  %v3334_v60 = vld [vmem:[%s4987_s17 + $0x30] sm:$0xff] }
0x1639   : > { %2805 = vmatpush.msrb.mxu1 %v3334_v60 }
0x163a   : > { %v4739_v41 = vadd.f32 %v3448_v38, %v2738_v39 }
0x163b   : > { %2806 = vmatpush.msrb.mxu1 %v3333_v48 }
0x163c   : > { %v2749_v42 = vsel %vm1071_vm0, %v4739_v41, 0.0 }
0x163d   : > { %2750 = vadd.xlane.f32.xlu1 %v2749_v42  ;;  %2807 = vmatpush.msrb.mxu1 %v3332_v49 }
0x16b0   : > { %v2751_v43 = vpop.xlane.xlu1 %2750 }
0x16b1   : > { %v2752_v44 = vmul.f32 %v2751_v43, %v4127_v61 }
0x16b3   : > { %v2753_v45 = vsub.f32 %v4739_v41, %v2752_v44 }
0x16b5   : > { %v2754_v46 = vmul.f32 %v2753_v45, %v2753_v45 }
0x16b7   : > { %v2755_v47 = vsel %vm1071_vm0, %v2754_v46, 0.0 }
0x16b8   : > { %2756 = vadd.xlane.f32.xlu2 %v2755_v47 }
0x172b   : > { %v2757_v50 = vpop.xlane.xlu2 %2756 }
0x172c   : > { %v2758_v51 = vmul.f32 %v2757_v50, %v4127_v61 }
0x172e   : > { %v2759_v52 = vadd.f32 1e-06, %v2758_v51 }
0x1730   : > { %3499 = vrsqrt.f32 %v2759_v52  ;;  %vm2766_vm7 = vweird.f32 %v2759_v52 }
0x1736   : > { %v3500_v54 = vpop.eup %3499 }
0x1737   : > { %v2761_v55 = vmul.f32 %v3500_v54, %v2759_v52  ;;  %vm2767_vm6 = vweird.f32 %v3500_v54 }
0x1738   : > { %vm2768_vm8 = vmor %vm2766_vm7, %vm2767_vm6 }
0x1739   : > { %v2762_v56 = vmul.f32 %v3500_v54, %v2761_v55 }
0x173b   : > { %v2763_v57 = vmul.f32 0.5, %v2762_v56 }
0x173d   : > { %v2764_v58 = vsub.f32 1.5, %v2763_v57  ;;  %v3452_v57 = vld [vmem:[%s4913_s14 + $0x1] ss:$0 sm:$0xff] }
0x173f   : > { %v2765_v59 = vmul.f32 %v3500_v54, %v2764_v58 }
0x1741   : > { %v2769_v63 = vsel %vm2768_vm8, %v3500_v54, %v2765_v59 }
0x1742   : > { %v2770_v0 = vmul.f32 %v2769_v63, %v2753_v45 }
0x1744   : > { %v2774_v2 = vmul.f32 %v3449_v62, %v2770_v0 }
0x1746   : > { %v2778_v3 = vadd.f32 %v3450_v1, %v2774_v2 }
0x1748   : > { %3337 = vmatmul.msk.f32.vlgmr.msrb.gmra.mxu1 %vm1117_vm5, %v2778_v3 }
0x17c5   : > { %v2809_v7 = vpop.f32.mrf.mxu1 }
0x17c6   : > { %v4781_v9 = vadd.f32 %v3451_v5, %v2809_v7 }
0x17c8   : > { %v2813_v11 = vmul.f32 0.70710677, %v4781_v9  ;;  %v2812_v54 = vmul.f32 0.5, %v4781_v9 }
0x17ca   : > { %v2814_v13 = vand.u32 2147483647, %v2813_v11  ;;  %vm2847_vm14 = vcmp.ge.f32.partialorder %v2813_v11, 0.0 }
0x17cc   : > { %v2815_v15 = vmul.f32 0.3275911, %v2814_v13  ;;  %v2841_v35 = vmul.f32 %v2814_v13, %v2814_v13 }
0x17ce   : > { %v2816_v17 = vadd.f32 1.0, %v2815_v15  ;;  %v2842_v39 = vsub.f32 0.0, %v2841_v35 }
0x17d0   : > { %3501 = vrcp.f32 %v2816_v17  ;;  %v2828_v25 = vand.u32 2147483648, %v2816_v17  ;;  %v2826_v27 = vand.u32 2147483647, %v2816_v17  ;;  %vm2822_vm11 = vweird.f32 %v2816_v17 }
0x17d1   : > { %v2843_v44 = vmul.f32 1.442695, %v2842_v39 }
0x17d2   : > { %v2829_v32 = vor.u32 1.1754944e-38, %v2828_v25  ;;  %vm2827_vm13 = vcmp.eq.f32.partialorder %v2826_v27, 8.507059e+37  ;;  %v2934_v25 = vld [vmem:[#allocation2] sm:$0x1] }
0x17d3   : > { %3503 = vpow2.f32 %v2843_v44 }
0x17d6   : > { %v3502_v37 = vpop.eup %3501 }
0x17d7   : > { %v2818_v29 = vmul.f32 %v3502_v37, %v2816_v17  ;;  %vm2823_vm9 = vweird.f32 %v3502_v37 }
0x17d8   : > { %vm2824_vm12 = vmor %vm2822_vm11, %vm2823_vm9 }
0x17d9   : > { %v2819_v23 = vsub.f32 1.0, %v2818_v29  ;;  %v3504_v48 = vpop.eup %3503 }
0x17db   : > { %v2820_v26 = vmul.f32 %v3502_v37, %v2819_v23 }
0x17dd   : > { %v2821_v31 = vadd.f32 %v3502_v37, %v2820_v26 }
0x17df   : > { %v2825_v33 = vsel %vm2824_vm12, %v3502_v37, %v2821_v31  ;;  %v3612_v37 = vmov 33.0  }
0x17e0   : > { %v2830_v34 = vsel %vm2827_vm13, %v2829_v32, %v2825_v33 }
0x17e1   : > { %v2832_v36 = vmul.f32 1.0614054, %v2830_v34 }
0x17e3   : > { %v2833_v38 = vadd.f32 -1.4531521, %v2832_v36 }
0x17e5   : > { %v2834_v42 = vmul.f32 %v2833_v38, %v2830_v34 }
0x17e7   : > { %v2835_v43 = vadd.f32 1.4214138, %v2834_v42 }
0x17e9   : > { %v2836_v45 = vmul.f32 %v2835_v43, %v2830_v34 }
0x17eb   : > { %v2837_v46 = vadd.f32 -0.28449672, %v2836_v45 }
0x17ed   : > { %v2838_v47 = vmul.f32 %v2837_v46, %v2830_v34 }
0x17ef   : > { %v2839_v53 = vadd.f32 0.2548296, %v2838_v47 }
0x17f1   : > { %v2840_v60 = vmul.f32 %v2839_v53, %v2830_v34 }
0x17f3   : > { %v2845_v49 = vmul.f32 %v3504_v48, %v2840_v60 }
0x17f5   : > { %v2846_v50 = vsub.f32 1.0, %v2845_v49 }
0x17f7   : > { %v2848_v51 = vsub.f32 0.0, %v2846_v50 }
0x17f9   : > { %v2849_v52 = vsel %vm2847_vm14, %v2846_v50, %v2848_v51 }
0x17fa   : > { %v2850_v55 = vadd.f32 1.0, %v2849_v52  ;;  %v2984_v52 = vld [vmem:[#allocation3] sm:$0x1] }
0x17fc   : > { %v2851_v56 = vmul.f32 %v2850_v55, %v2812_v54  ;;  %v2986_v55 = vld [vmem:[#allocation4] sm:$0x1] }
0x17fe   : > { %2885 = vmatmul.f32.vlgmr.msra.gmra.mxu2 %v2851_v56 }
0x1881   : > { %v2886_v58 = vpop.f32.mrf.mxu2 }
0x1882   : > { %v2889_v59 = vadd.f32 %v2886_v58, %v4739_v41  ;;  %v2991_v58 = vld [vmem:[%s4920_s23 + $0x18] sm:$0xff] }
0x1883   : > { %3014 = vmatpush.msra.mxu3 %v2991_v58 }
0x1884   : > { %v2895_v62 = vadd.f32 %v3452_v57, %v2889_v59  ;;  %v2990_v59 = vld [vmem:[%s4920_s23 + $0x10] sm:$0xff] }
0x1885   : > { %3015 = vmatpush.msra.mxu3 %v2990_v59 }
0x1886   : > { %v2898_v63 = vsel %vm1071_vm0, %v2895_v62, 0.0 }
0x1887   : > { %2899 = vadd.xlane.f32.xlu0 %v2898_v63  ;;  %v2988_v63 = vld [vmem:[%s4920_s23] sm:$0xff] }
0x18fa   : > { %v2900_v0 = vpop.xlane.xlu0 %2899 }
0x18fb   : > { %v2901_v1 = vmul.f32 %v2900_v0, %v4127_v61  ;;  %v2979_v0 = vld [vmem:[%s4918_s19] sm:$0x1] }
0x18fd   : > { %v2902_v2 = vsub.f32 %v2895_v62, %v2901_v1  ;;  %v2989_v62 = vld [vmem:[%s4920_s23 + $0x8] sm:$0xff] }
0x18fe   : > { %3016 = vmatpush.msra.mxu3 %v2989_v62 }
0x18ff   : > { %v2903_v3 = vmul.f32 %v2902_v2, %v2902_v2 }
0x1900   : > { %3017 = vmatpush.msra.mxu3 %v2988_v63 }
0x1901   : > { %v2904_v4 = vsel %vm1071_vm0, %v2903_v3, 0.0  ;;  %vm2930_vm0 = vcmask 253952   ;;  %v2981_v3 = vld [vmem:[%s4919_s21] sm:$0x1] }
0x1902   : > { %2905 = vadd.xlane.f32.xlu1 %v2904_v4 }
0x1975   : > { %v2906_v40 = vpop.xlane.xlu1 %2905 }
0x1976   : > { %v2907_v5 = vmul.f32 %v2906_v40, %v4127_v61  ;;  %v3454_v61 = vld [vmem:[%s4915_s16] ss:$0 sm:$0xff] }
0x1978   : > { %v2908_v6 = vadd.f32 1e-06, %v2907_v5  ;;  %v2992_v5 = vld [vmem:[%s4990_s18] sm:$0x1] }
0x197a   : > { %3505 = vrsqrt.f32 %v2908_v6  ;;  %vm2915_vm1 = vweird.f32 %v2908_v6 }
0x197b   : > { %3507 = vrcp.f32 %v3612_v37 }
0x1980   : > { %v3506_v7 = vpop.eup %3505 }
0x1981   : > { %v2910_v8 = vmul.f32 %v3506_v7, %v2908_v6  ;;  %vm2916_vm15 = vweird.f32 %v3506_v7  ;;  %v3508_v29 = vpop.eup %3507 }
0x1982   : > { %vm2917_vm2 = vmor %vm2915_vm1, %vm2916_vm15  ;;  %v2941_v22 = vmul.f32 33.0, %v3508_v29  ;;  %vm2945_vm3 = vweird.f32 %v3508_v29 }
0x1983   : > { %v2911_v41 = vmul.f32 %v3506_v7, %v2910_v8 }
0x1984   : > { %v2942_v23 = vsub.f32 1.0, %v2941_v22 }
0x1985   : > { %v2912_v9 = vmul.f32 0.5, %v2911_v41 }
0x1986   : > { %v2943_v24 = vmul.f32 %v3508_v29, %v2942_v23 }
0x1987   : > { %v2913_v10 = vsub.f32 1.5, %v2912_v9 }
0x1988   : > { %v2944_v26 = vadd.f32 %v3508_v29, %v2943_v24 }
0x1989   : > { %v2914_v11 = vmul.f32 %v3506_v7, %v2913_v10 }
0x198a   : > { %v2946_v31 = vsel %vm2945_vm3, %v3508_v29, %v2944_v26 }
0x198b   : > { %v2918_v13 = vsel %vm2917_vm2, %v3506_v7, %v2914_v11 }
0x198c   : > { %v2919_v14 = vmul.f32 %v2918_v13, %v2902_v2 }
0x198e   : > { %v2923_v15 = vmul.f32 %v3453_v12, %v2919_v14 }
0x1990   : > { %v2927_v17 = vadd.f32 %v3454_v61, %v2923_v15 }
0x1992   : > { %v2936_v18 = vsel %vm2930_vm0, %v2927_v17, 0.0  ;;  %v2929_v19 = vmul.f32 %v2928_v16, %v2927_v17 }
0x1993   : > { %2937 = vadd.xlane.f32.xlu0 %v2936_v18 }
0x1994   : > { %v2931_v20 = vsel %vm2930_vm0, %v2929_v19, 0.0 }
0x1995   : > { %2932 = vadd.xlane.f32.xlu2 %v2931_v20 }
0x1a06   : > { %v2938_v30 = vpop.xlane.xlu0 %2937 }
0x1a08   : > { %v2933_v27 = vpop.xlane.xlu2 %2932 }
0x1a09   : > { %v2935_v28 = vadd.f32 %v2934_v25, %v2933_v27 }
0x1a0b   : > { %v2939_v32 = vadd.f32 %v2938_v30, %v2935_v28  ;;  %3027 = vst.msk [vmem:[%s845_s10] sm:$0x1] %vm3026_vm4, %v2935_v28  ;;  %s4992_s10 = sld [smem:[#allocation32_spill]] }
0x1a0d   : > { %v2947_v33 = vmul.f32 %v2946_v31, %v2939_v32 }
0x1a0f   : > { %2950 = vperm.xlu1 %3412, %v2947_v33   ;;  %v2954_v34 = vsub.f32 %v2935_v28, %v2947_v33 }
0x1a11   : > { %v2959_v42 = vmul.f32 %v2954_v34, %v2954_v34  ;;  %v3022_v41 = vld [vmem:[%s4992_s10] sm:$0x1] }
0x1a81   : > { %v2951_v35 = vpop.permute.xlu1 %2950 }
0x1a82   : > { %v2953_v36 = vsub.f32 %v2927_v17, %v2951_v35 }
0x1a84   : > { %v2955_v38 = vmul.f32 %v2953_v36, %v2953_v36 }
0x1a86   : > { %v2956_v39 = vsel %vm2930_vm0, %v2955_v38, 0.0 }
0x1a87   : > { %2957 = vadd.xlane.f32.xlu2 %v2956_v39 }
0x1afa   : > { %v2958_v43 = vpop.xlane.xlu2 %2957 }
0x1afb   : > { %v2960_v44 = vadd.f32 %v2959_v42, %v2958_v43 }
0x1afd   : > { %v2961_v45 = vmul.f32 %v2960_v44, %v2946_v31 }
0x1aff   : > { %v2962_v46 = vadd.f32 1e-05, %v2961_v45 }
0x1b01   : > { %3509 = vrsqrt.f32 %v2962_v46  ;;  %vm2969_vm6 = vweird.f32 %v2962_v46 }
0x1b07   : > { %v3510_v47 = vpop.eup %3509 }
0x1b08   : > { %v2964_v53 = vmul.f32 %v3510_v47, %v2962_v46  ;;  %vm2970_vm10 = vweird.f32 %v3510_v47 }
0x1b09   : > { %vm2971_vm7 = vmor %vm2969_vm6, %vm2970_vm10 }
0x1b0a   : > { %v2965_v60 = vmul.f32 %v3510_v47, %v2964_v53 }
0x1b0c   : > { %v2966_v48 = vmul.f32 0.5, %v2965_v60 }
0x1b0e   : > { %v2967_v49 = vsub.f32 1.5, %v2966_v48 }
0x1b10   : > { %v2968_v50 = vmul.f32 %v3510_v47, %v2967_v49 }
0x1b12   : > { %v2972_v51 = vsel %vm2971_vm7, %v3510_v47, %v2968_v50 }
0x1b13   : > { %2975 = vperm.xlu0 %3413, %v2972_v51   ;;  %v2983_v54 = vmul.f32 %v2972_v51, %v2954_v34 }
0x1b15   : > { %v2985_v56 = vmul.f32 %v2984_v52, %v2983_v54 }
0x1b17   : > { %v2987_v57 = vadd.f32 %v2986_v55, %v2985_v56 }
0x1b19   : > { %2995 = vperm.xlu2 %3414, %v2987_v57  }
0x1b73   : > { %v2996_v6 = vpop.permute.xlu2 %2995 }
0x1b74   : > { %v2998_v7 = vmul.f32 %v2996_v6, %v2992_v5 }
0x1b85   : > { %v2976_v1 = vpop.permute.xlu0 %2975 }
0x1b86   : > { %v2978_v2 = vmul.f32 %v2976_v1, %v2953_v36 }
0x1b88   : > { %v2980_v4 = vmul.f32 %v2979_v0, %v2978_v2 }
0x1b8a   : > { %v2982_v40 = vadd.f32 %v2981_v3, %v2980_v4 }
0x1b8c   : > { %3355 = vmatmul.msk.f32.vlgmr.msra.gmra.mxu3 %vm1117_vm5, %v2982_v40  ;;  %vm3024_vm5 = vcmask 16384  }
0x1c0f   : > { %v3019_v8 = vpop.f32.mrf.mxu3 }
0x1c10   : > { %v3020_v9 = vadd.f32 %v3019_v8, %v2998_v7 }
0x1c12   : > { %v3023_v10 = vadd.f32 %v3022_v41, %v3020_v9 }
0x1c14   : > { %3025 = vst.msk [vmem:[%s832_s5] sm:$0x1] %vm3024_vm5, %v3023_v10 }
0x1c15   : > { %3568 = shalt.err (!%p3565_p8)
}
0x1c16   : > { %3363 = dma.vmem_to_hbm [thread:$0]  (%p3800_p5), %s3043_s6, 16, %s3045_s7, %s3029_s24  }
0x1c17 PF: > { %s4994_s5 = sld [smem:[#allocation13_spill]] }
0x1c18   : > { %s4995_s29 = sld [smem:[#allocation11_spill]] }
0x1c1d   : > { %p3375_p9 = scmp.ge.s32.totalorder %s4994_s5, 2 }
0x1c1e   : > { %s3059_s10 = sand.u32 1, %s4995_s29  }
0x1c1f   : > { %p3370_p10 = pnand %p3375_p9, %p3804_p6  ;;  %s3060_s3 = scalar_lea.sflag [#allocation7], %s3059_s10 }
0x1c21   : > { %p3371_p11 = pneg %p3370_p10 }
0x1c23   : > { %3590 = dma.done.wait (%p3371_p11), %s3060_s3, 16  }
0x1c24   : > { %3592 = vsyncadd (%p3371_p11), %s3060_s3, 4294967280  ;;  %s4997_s18 = sld [smem:[#allocation14_spill]]  ;;  %s5000_s28 = smov %s3599_s0 }
0x1c25   : > { %s4998_s26 = sld [smem:[#allocation12_spill]] }
0x1c26   : > { %s4999_s10 = sld [smem:[#allocation15_spill]] }
0x1c2a   : > { %p45_p12 = scmp.ge.s32.totalorder %s4997_s18, 4  }
0x1c2b   : > { %s5001_s0 = smov %s4998_s26 }
0x1c2c   :  { %47 = sbr.rel (!%p45_p12) target bundleno = 21 (0x15), region = 238 }
0x1c31   :  { %3071 = vsyncpa [#allocation6], 1 }
0x1c32   :  { %3073 = vsyncpa [#allocation6 + $0x1], 1 }
0x1c33   :  { %3074 = vsyncpa [#allocation7], 1 }
0x1c34   :  { %3076 = vsyncpa [#allocation7 + $0x1], 1 }

</bundles_post_ra>
